<compile_context>
chip_gen: v6e
topology: v6e:2x2x1
jax: 0.10.0
libtpu: 0.0.40
codegen_flags: <defaults>
</compile_context>

<pallas_src>
import functools

import jax
import jax.numpy as jnp
from jax.experimental import pallas as pl
from jax.experimental.pallas import tpu as pltpu

NUM_LAYERS = 2  # matches nn.LSTM(..., num_layers=2)
_VMEM_LIMIT = 32 * 1024 * 1024


# --------------------------------------------------------------------------
# Kernel 1: attention + 2-layer single-step LSTM (small, un-gridded).
# enc_proj (per-sequence invariant) is an input, not recomputed per step.
# --------------------------------------------------------------------------
def attn_lstm_kernel(
    # activations
    emb_ref, hid_ref, cell_ref, enc_ref, encp_ref,
    # attention params
    wah_ref, ba_ref, vattn_ref,
    # fused LSTM weights
    w0_ref, b0_ref, w1_ref, b1_ref,
    # outputs
    hid_out_ref, cell_out_ref, feat_ref,
    *, approx_recip,
):
    LB, H = hid_ref.shape
    B = LB // NUM_LAYERS
    cd = wah_ref.dtype  # compute (matmul) dtype, e.g. bfloat16

    embedded = emb_ref[...]                     # [B, E]   f32
    enc = enc_ref[...]                          # [B, S, EH]  compute dtype
    h0 = hid_ref[pl.ds(0, B), :]                # layer 0 state
    h1 = hid_ref[pl.ds(B, B), :]                # layer 1 state (top layer)
    c0 = cell_ref[pl.ds(0, B), :]
    c1 = cell_ref[pl.ds(B, B), :]

    # ---- attention: softmax_s( v . tanh(W [h_top ; enc_s] + b) ) ----
    hid_proj = jnp.dot(h1.astype(cd), wah_ref[...],
                       preferred_element_type=jnp.float32)                     # [B, H]
    energy = jnp.tanh(hid_proj[:, None, :]
                      + encp_ref[...].astype(jnp.float32)                      # hoisted enc_proj
                      + ba_ref[...].astype(jnp.float32)[None, :, :])
    score = jnp.sum(energy * vattn_ref[...][None, :, :], axis=-1)              # [B, S]
    score = score - jnp.max(score, axis=-1, keepdims=True)
    p = jnp.exp(score)
    denom = jnp.sum(p, axis=-1, keepdims=True)
    attn = p * pl.reciprocal(denom, approx=approx_recip)                       # [B, S]
    # context = bmm(attn.unsqueeze(1), encoder_outputs).squeeze(1)
    context = jnp.sum(attn[:, :, None] * enc.astype(jnp.float32), axis=1)      # [B, EH]

    # ---- LSTM layer 0 (single step): one fused gate matmul ----
    x0 = jnp.concatenate([embedded, context, h0], axis=-1).astype(cd)          # [B, E+EH+H]
    gates0 = jnp.dot(x0, w0_ref[...], preferred_element_type=jnp.float32) + b0_ref[...]
    i0 = jax.nn.sigmoid(gates0[:, 0 * H:1 * H])
    f0 = jax.nn.sigmoid(gates0[:, 1 * H:2 * H])
    g0 = jnp.tanh(gates0[:, 2 * H:3 * H])
    o0 = jax.nn.sigmoid(gates0[:, 3 * H:4 * H])
    c0n = f0 * c0 + i0 * g0
    h0n = o0 * jnp.tanh(c0n)

    # ---- LSTM layer 1: one fused gate matmul ----
    x1 = jnp.concatenate([h0n, h1], axis=-1).astype(cd)                        # [B, 2H]
    gates1 = jnp.dot(x1, w1_ref[...], preferred_element_type=jnp.float32) + b1_ref[...]
    i1 = jax.nn.sigmoid(gates1[:, 0 * H:1 * H])
    f1 = jax.nn.sigmoid(gates1[:, 1 * H:2 * H])
    g1 = jnp.tanh(gates1[:, 2 * H:3 * H])
    o1 = jax.nn.sigmoid(gates1[:, 3 * H:4 * H])
    c1n = f1 * c1 + i1 * g1
    h1n = o1 * jnp.tanh(c1n)

    # ---- fused state writeback ([2B, H] single store per state) ----
    hid_out_ref[...] = jnp.concatenate([h0n, h1n], axis=0).astype(hid_out_ref.dtype)
    cell_out_ref[...] = jnp.concatenate([c0n, c1n], axis=0).astype(cell_out_ref.dtype)
    # feature vector for fc_out: cat(output, context, embedded)
    feat_ref[...] = jnp.concatenate([h1n, context, embedded], axis=-1).astype(feat_ref.dtype)


# --------------------------------------------------------------------------
# Kernel 2: fc_out projection, gridded (streamed) over the (padded) vocab.
# Weight tile arrives quantized (int8 / fp8 / compute dtype); it is widened
# in VMEM, matmul'd on the MXU with f32 accumulation, and the per-column
# scale + bias are applied to the f32 result.
# --------------------------------------------------------------------------
def fc_out_kernel(feat_ref, wfc_ref, scale_ref, bfc_ref, pred_ref, *, compute_dtype):
    w = wfc_ref[...].astype(compute_dtype)
    acc = jnp.dot(feat_ref[...], w, preferred_element_type=jnp.float32)
    pred_ref[...] = (acc * scale_ref[...] + bfc_ref[...]).astype(pred_ref.dtype)


# --------------------------------------------------------------------------
# One-time parameter preparation (hoisted out of the per-step hot path).
# --------------------------------------------------------------------------
def init_params(key, output_dim, emb_dim, enc_hid_dim, dec_hid_dim):
    """Deterministic synthetic params with PyTorch-layout weight shapes."""
    V, E, EH, H = output_dim, emb_dim, enc_hid_dim, dec_hid_dim
    ks = jax.random.split(key, 12)
    s = 0.1
    return {
        "emb_table": jax.random.normal(ks[0], (V, E), jnp.float32) * s,
        # attention: Linear(H + EH, H) ; v: Linear(H, 1, bias=False)
        "w_attn":    jax.random.normal(ks[1], (H, H + EH), jnp.float32) * s,
        "b_attn":    jax.random.normal(ks[2], (H,), jnp.float32) * s,
        "v_attn":    jax.random.normal(ks[3], (1, H), jnp.float32) * s,
        # LSTM layer 0: input = E + EH
        "w_ih_l0":   jax.random.normal(ks[4], (4 * H, E + EH), jnp.float32) * s,
        "w_hh_l0":   jax.random.normal(ks[5], (4 * H, H), jnp.float32) * s,
        "b_l0":      jax.random.normal(ks[6], (4 * H,), jnp.float32) * s,   # b_ih + b_hh combined
        # LSTM layer 1: input = H
        "w_ih_l1":   jax.random.normal(ks[7], (4 * H, H), jnp.float32) * s,
        "w_hh_l1":   jax.random.normal(ks[8], (4 * H, H), jnp.float32) * s,
        "b_l1":      jax.random.normal(ks[9], (4 * H,), jnp.float32) * s,
        # fc_out: Linear(H + EH + E, V), concat order = (output, context, embedded)
        "w_fc":      jax.random.normal(ks[10], (V, H + EH + E), jnp.float32) * s,
        "b_fc":      jax.random.normal(ks[11], (V,), jnp.float32) * s,
    }


def default_wfc_quant():
    """int8 weight stream on v5e/v6e (native int MXU path); fp8 on v7x."""
    try:
        kind = jax.devices()[0].device_kind.lower()
    except Exception:
        kind = ""
    return "fp8" if ("v7" in kind or "7x" in kind) else "int8"


def _choose_v_tiling(V, max_v_tile=8192):
    """Pick a lane-dense vocab tile and the padded vocab size (mult. of tile)."""
    t_sel = 128
    for t in (8192, 4096, 2048, 1024, 512, 256, 128):
        if t > max_v_tile:
            continue
        v_pad = ((V + t - 1) // t) * t
        if (v_pad - V) <= max(V // 16, 128):      # keep padding waste small
            t_sel = t
            break
    v_pad = ((V + t_sel - 1) // t_sel) * t_sel
    # guarantee >= 2 tiles when possible so the "parallel" vocab grid splits
    # evenly across v7x's two TensorCores.
    if v_pad // t_sel == 1 and t_sel >= 256:
        t_sel //= 2
    return t_sel, v_pad


def prepare_params(params, compute_dtype=jnp.bfloat16, wfc_quant="int8",
                   max_v_tile=8192):
    """One-time layout prep: split/transpose/stack/pad/quantize weights."""
    H = params["w_hh_l0"].shape[1]
    V, E = params["emb_table"].shape
    cd = compute_dtype
    v_tile, v_pad = _choose_v_tiling(V, max_v_tile)

    # fc_out weight: [F, V] -> pad vocab -> quantize per output column.
    wfc_t = jnp.pad(params["w_fc"].T, ((0, 0), (0, v_pad - V)))         # [F, v_pad] f32
    bfc = jnp.pad(params["b_fc"], (0, v_pad - V)).reshape(1, v_pad).astype(jnp.float32)
    if wfc_quant == "none":
        wfc_q = wfc_t.astype(cd)
        wfc_scale = jnp.ones((1, v_pad), jnp.float32)
    else:
        amax = jnp.max(jnp.abs(wfc_t), axis=0, keepdims=True)           # [1, v_pad]
        if wfc_quant == "int8":
            wfc_scale = jnp.where(amax > 0, amax / 127.0, 1.0).astype(jnp.float32)
            wfc_q = jnp.round(wfc_t / wfc_scale).astype(jnp.int8)
        elif wfc_quant == "fp8":
            wfc_scale = jnp.where(amax > 0, amax / 448.0, 1.0).astype(jnp.float32)
            wfc_q = (wfc_t / wfc_scale).astype(jnp.float8_e4m3fn)
        else:
            raise ValueError(f"unknown wfc_quant: {wfc_quant}")

    prepared = {
        "emb_table": params["emb_table"],                                # f32 (gather source)
        # attention: columns [0:H] act on hidden, [H:] on encoder outputs
        "wah":   params["w_attn"][:, :H].T.astype(cd),                   # [H, H]
        "wae":   params["w_attn"][:, H:].T.astype(cd),                   # [EH, H] (used once/seq)
        "ba":    params["b_attn"].reshape(1, H).astype(jnp.float32),
        "vattn": params["v_attn"].reshape(1, H).astype(jnp.float32),
        # LSTM layer 0: in-kernel concat order is [embedded, context, h0]
        "w0": jnp.concatenate([params["w_ih_l0"].T, params["w_hh_l0"].T],
                              axis=0).astype(cd),                        # [E+EH+H, 4H]
        "b0": params["b_l0"].reshape(1, 4 * H).astype(jnp.float32),
        # LSTM layer 1: in-kernel concat order is [h0n, h1]
        "w1": jnp.concatenate([params["w_ih_l1"].T, params["w_hh_l1"].T],
                              axis=0).astype(cd),                        # [2H, 4H]
        "b1": params["b_l1"].reshape(1, 4 * H).astype(jnp.float32),
        # fc_out: feat order [output, context, embedded] == w_fc column order
        "wfc":       wfc_q,                                              # [F, v_pad] int8/fp8/cd
        "wfc_scale": wfc_scale,                                          # [1, v_pad] f32
        "bfc":       bfc,                                                # [1, v_pad] f32
    }
    meta = {"v_tile": v_tile, "v_pad": v_pad, "V": V}
    return prepared, meta


def prepare_encoder(prepared, encoder_outputs):
    """Once per sequence: cast encoder outputs and hoist the enc projection."""
    cd = prepared["wae"].dtype
    B, S, EH = encoder_outputs.shape
    H = prepared["wae"].shape[1]
    enc_cd = encoder_outputs.astype(cd)                                  # [B, S, EH]
    enc_proj = jnp.dot(enc_cd.reshape(B * S, EH), prepared["wae"],
                       preferred_element_type=jnp.float32)
    enc_proj = enc_proj.reshape(B, S, H).astype(cd)                      # [B, S, H]
    return enc_cd, enc_proj


# --------------------------------------------------------------------------
# Forward wrapper (per decode step) — one jitted dispatch per step.
# --------------------------------------------------------------------------
@functools.partial(jax.jit, static_argnames=("v_tile", "out_dim"))
def decoder_forward(prepared, input_ids, hidden, cell, enc_cd, enc_proj_cd,
                    *, v_tile, out_dim):
    B, S, EH = enc_cd.shape
    L, _, H = hidden.shape
    E = prepared["emb_table"].shape[1]
    F = H + EH + E
    cd = prepared["w0"].dtype
    v_pad = prepared["bfc"].shape[1]
    n_v = v_pad // v_tile
    approx_recip = (cd != jnp.float32)   # exact reciprocal in the f32 validation path

    # glue: embedding gather (dropout = identity at eval); fused under this jit.
    embedded = prepared["emb_table"][input_ids]            # [B, E]  f32

    # hidden/cell as a single [L*B, H] slab (free reshape; contiguous)
    hid2d = hidden.reshape(L * B, H)
    cell2d = cell.reshape(L * B, H)

    vmem = lambda: pl.BlockSpec(memory_space=pltpu.MemorySpace.VMEM)
    kernel1 = functools.partial(attn_lstm_kernel, approx_recip=approx_recip)

    hid_new2d, cell_new2d, feat = pl.pallas_call(
        kernel1,
        out_shape=(
            jax.ShapeDtypeStruct((L * B, H), jnp.float32),
            jax.ShapeDtypeStruct((L * B, H), jnp.float32),
            jax.ShapeDtypeStruct((B, F), cd),
        ),
        in_specs=[vmem() for _ in range(12)],
        out_specs=(vmem(), vmem(), vmem()),
        compiler_params=pltpu.CompilerParams(vmem_limit_bytes=_VMEM_LIMIT),
    )(embedded, hid2d, cell2d, enc_cd, enc_proj_cd,
      prepared["wah"], prepared["ba"], prepared["vattn"],
      prepared["w0"], prepared["b0"], prepared["w1"], prepared["b1"])

    # fc_out: stream the [F, v_pad] (quantized) weight through VMEM in vocab
    # tiles; the grid axis is "parallel" so v7x can shard tiles across its
    # two TensorCores.
    fc_kernel = functools.partial(fc_out_kernel, compute_dtype=cd)
    pred_pad = pl.pallas_call(
        fc_kernel,
        out_shape=jax.ShapeDtypeStruct((B, v_pad), jnp.float32),
        grid_spec=pltpu.PrefetchScalarGridSpec(
            num_scalar_prefetch=0,
            grid=(n_v,),
            in_specs=[
                pl.BlockSpec((B, F), lambda v: (0, 0)),        # feat: resident
                pl.BlockSpec((F, v_tile), lambda v: (0, v)),   # weight: streamed (int8/fp8)
                pl.BlockSpec((1, v_tile), lambda v: (0, v)),   # per-column scale
                pl.BlockSpec((1, v_tile), lambda v: (0, v)),   # bias
            ],
            out_specs=pl.BlockSpec((B, v_tile), lambda v: (0, v)),
        ),
        compiler_params=pltpu.CompilerParams(
            dimension_semantics=("parallel",),
            vmem_limit_bytes=_VMEM_LIMIT,
        ),
    )(feat, prepared["wfc"], prepared["wfc_scale"], prepared["bfc"])

    pred = pred_pad[:, :out_dim]
    return pred, hid_new2d.reshape(L, B, H), cell_new2d.reshape(L, B, H)


# --------------------------------------------------------------------------
# Pure-JAX reference (same math, original PyTorch-layout params).
# --------------------------------------------------------------------------
def decoder_forward_ref(params, input_ids, hidden, cell, encoder_outputs):
    B, S, EH = encoder_outputs.shape
    L, _, H = hidden.shape

    embedded = params["emb_table"][input_ids]
    h_top = hidden[-1]
    cat_he = jnp.concatenate(
        [jnp.repeat(h_top[:, None, :], S, axis=1), encoder_outputs], axis=-1)
    energy = jnp.tanh(cat_he @ params["w_attn"].T + params["b_attn"])
    score = (energy @ params["v_attn"].T)[..., 0]
    attn = jax.nn.softmax(score, axis=-1)
    context = jnp.einsum("bs,bse->be", attn, encoder_outputs)

    def lstm_step(x, h, c, w_ih, w_hh, b):
        gates = x @ w_ih.T + h @ w_hh.T + b
        i, f, g, o = jnp.split(gates, 4, axis=-1)
        cn = jax.nn.sigmoid(f) * c + jax.nn.sigmoid(i) * jnp.tanh(g)
        hn = jax.nn.sigmoid(o) * jnp.tanh(cn)
        return hn, cn

    x0 = jnp.concatenate([embedded, context], axis=-1)
    h0n, c0n = lstm_step(x0, hidden[0], cell[0],
                         params["w_ih_l0"], params["w_hh_l0"], params["b_l0"])
    h1n, c1n = lstm_step(h0n, hidden[1], cell[1],
                         params["w_ih_l1"], params["w_hh_l1"], params["b_l1"])
    feat = jnp.concatenate([h1n, context, embedded], axis=-1)
    pred = feat @ params["w_fc"].T + params["b_fc"]
    return pred, jnp.stack([h0n, h1n]), jnp.stack([c0n, c1n])


if __name__ == "__main__":
    # Lane-dense (128-multiple) feature dims; B >= 16 (packed bf16 sublane pair).
    B, S = 16, 16
    output_dim, emb_dim, enc_hid_dim, dec_hid_dim = 512, 128, 128, 128
    L = NUM_LAYERS

    key = jax.random.PRNGKey(0)
    k_par, k_in, k_h, k_c, k_enc = jax.random.split(key, 5)

    params = init_params(k_par, output_dim, emb_dim, enc_hid_dim, dec_hid_dim)
    input_ids = jax.random.randint(k_in, (B,), 0, output_dim)
    hidden = jax.random.normal(k_h, (L, B, dec_hid_dim), jnp.float32)
    cell = jax.random.normal(k_c, (L, B, dec_hid_dim), jnp.float32)
    encoder_outputs = jax.random.normal(k_enc, (B, S, enc_hid_dim), jnp.float32)

    pred_r, h_r, c_r = decoder_forward_ref(params, input_ids, hidden, cell, encoder_outputs)

    # ---- f32 / unquantized path (validation): exact reciprocal, tight tolerance ----
    prep_f32, meta_f32 = prepare_params(params, compute_dtype=jnp.float32,
                                        wfc_quant="none", max_v_tile=128)
    enc_f32, encp_f32 = prepare_encoder(prep_f32, encoder_outputs)
    pred, h_new, c_new = decoder_forward(
        prep_f32, input_ids, hidden, cell, enc_f32, encp_f32,
        v_tile=meta_f32["v_tile"], out_dim=meta_f32["V"])
    jax.block_until_ready((pred, h_new, c_new))
    assert pred.shape == (B, output_dim)
    assert h_new.shape == (L, B, dec_hid_dim) and c_new.shape == (L, B, dec_hid_dim)
    assert jnp.allclose(pred, pred_r, atol=2e-3, rtol=2e-3)
    assert jnp.allclose(h_new, h_r, atol=2e-3, rtol=2e-3)
    assert jnp.allclose(c_new, c_r, atol=2e-3, rtol=2e-3)

    # ---- bf16 + quantized-wfc path (production default) ----
    # NOTE: approx reciprocal means attention weights don't sum exactly to 1,
    # and feat/enc are bf16 — verified against a loose tolerance.
    wfc_quant = default_wfc_quant()          # int8 (v5e/v6e) or fp8 (v7x)
    prep_q, meta_q = prepare_params(params, compute_dtype=jnp.bfloat16,
                                    wfc_quant=wfc_quant, max_v_tile=8192)
    enc_q, encp_q = prepare_encoder(prep_q, encoder_outputs)
    pred_b, h_b, c_b = decoder_forward(
        prep_q, input_ids, hidden, cell, enc_q, encp_q,
        v_tile=meta_q["v_tile"], out_dim=meta_q["V"])
    jax.block_until_ready((pred_b, h_b, c_b))

    # states are unaffected by the fc_out quantization
    assert jnp.allclose(h_b, h_r, atol=5e-2, rtol=5e-2)
    assert jnp.allclose(c_b, c_r, atol=5e-2, rtol=5e-2)
    # prediction: compare against a quantization-aware reference (isolates the
    # intended weight-quantization error from the kernel-correctness check).
    wfc_deq = (prep_q["wfc"].astype(jnp.float32) * prep_q["wfc_scale"])[:, :output_dim].T
    params_q = dict(params)
    params_q["w_fc"] = wfc_deq
    pred_rq, _, _ = decoder_forward_ref(params_q, input_ids, hidden, cell, encoder_outputs)
    assert jnp.allclose(pred_b, pred_rq, atol=5e-2, rtol=5e-2)

    print("KERNEL_OK")
</pallas_src>

<mosaic_0001>
module attributes {stable_mosaic.version = 11 : i64} {
  func.func @attn_lstm_kernel(%arg0: memref<16x128xf32, #tpu.memory_space<vmem>>, %arg1: memref<32x128xf32, #tpu.memory_space<vmem>>, %arg2: memref<32x128xf32, #tpu.memory_space<vmem>>, %arg3: memref<16x16x128xf32, #tpu.memory_space<vmem>>, %arg4: memref<16x16x128xf32, #tpu.memory_space<vmem>>, %arg5: memref<128x128xf32, #tpu.memory_space<vmem>>, %arg6: memref<1x128xf32, #tpu.memory_space<vmem>>, %arg7: memref<1x128xf32, #tpu.memory_space<vmem>>, %arg8: memref<384x512xf32, #tpu.memory_space<vmem>>, %arg9: memref<1x512xf32, #tpu.memory_space<vmem>>, %arg10: memref<256x512xf32, #tpu.memory_space<vmem>>, %arg11: memref<1x512xf32, #tpu.memory_space<vmem>>, %arg12: memref<32x128xf32, #tpu.memory_space<vmem>>, %arg13: memref<32x128xf32, #tpu.memory_space<vmem>>, %arg14: memref<16x384xf32, #tpu.memory_space<vmem>>) attributes {dimension_semantics = [], scalar_prefetch = 0 : i64, scratch_operands = 0 : i64, tpu.core_type = #tpu.core_type<tc>} {
    %c0 = arith.constant 0 : index
    %c0_0 = arith.constant 0 : index
    %0 = vector.load %arg0[%c0, %c0_0] : memref<16x128xf32, #tpu.memory_space<vmem>>, vector<16x128xf32>
    %c0_1 = arith.constant 0 : index
    %c0_2 = arith.constant 0 : index
    %c0_3 = arith.constant 0 : index
    %1 = vector.load %arg3[%c0_1, %c0_2, %c0_3] : memref<16x16x128xf32, #tpu.memory_space<vmem>>, vector<16x16x128xf32>
    %c0_4 = arith.constant 0 : index
    %c0_5 = arith.constant 0 : index
    %2 = vector.load %arg1[%c0_4, %c0_5] : memref<32x128xf32, #tpu.memory_space<vmem>>, vector<16x128xf32>
    %c16 = arith.constant 16 : index
    %c0_6 = arith.constant 0 : index
    %3 = vector.load %arg1[%c16, %c0_6] : memref<32x128xf32, #tpu.memory_space<vmem>>, vector<16x128xf32>
    %c0_7 = arith.constant 0 : index
    %c0_8 = arith.constant 0 : index
    %4 = vector.load %arg2[%c0_7, %c0_8] : memref<32x128xf32, #tpu.memory_space<vmem>>, vector<16x128xf32>
    %c16_9 = arith.constant 16 : index
    %c0_10 = arith.constant 0 : index
    %5 = vector.load %arg2[%c16_9, %c0_10] : memref<32x128xf32, #tpu.memory_space<vmem>>, vector<16x128xf32>
    %c0_11 = arith.constant 0 : index
    %c0_12 = arith.constant 0 : index
    %6 = vector.load %arg5[%c0_11, %c0_12] : memref<128x128xf32, #tpu.memory_space<vmem>>, vector<128x128xf32>
    %cst = arith.constant dense<0.000000e+00> : vector<16x128xf32>
    %7 = tpu.matmul %3, %6, %cst {dimension_numbers = #tpu.dot_dimension_numbers<[1], [0], [0], [1], [0, 0, 1, 1], [], []>} : vector<16x128xf32>, vector<128x128xf32>, vector<16x128xf32> -> vector<16x128xf32>
    %8 = vector.shape_cast %7 : vector<16x128xf32> to vector<16x1x128xf32>
    %c0_13 = arith.constant 0 : index
    %c0_14 = arith.constant 0 : index
    %c0_15 = arith.constant 0 : index
    %9 = vector.load %arg4[%c0_13, %c0_14, %c0_15] : memref<16x16x128xf32, #tpu.memory_space<vmem>>, vector<16x16x128xf32>
    %10 = vector.broadcast %8 : vector<16x1x128xf32> to vector<16x16x128xf32>
    %11 = arith.addf %10, %9 : vector<16x16x128xf32>
    %c0_16 = arith.constant 0 : index
    %c0_17 = arith.constant 0 : index
    %12 = vector.load %arg6[%c0_16, %c0_17] : memref<1x128xf32, #tpu.memory_space<vmem>>, vector<1x128xf32>
    %13 = vector.shape_cast %12 : vector<1x128xf32> to vector<1x1x128xf32>
    %14 = vector.broadcast %13 : vector<1x1x128xf32> to vector<16x16x128xf32>
    %15 = arith.addf %11, %14 : vector<16x16x128xf32>
    %16 = math.tanh %15 : vector<16x16x128xf32>
    %c0_18 = arith.constant 0 : index
    %c0_19 = arith.constant 0 : index
    %17 = vector.load %arg7[%c0_18, %c0_19] : memref<1x128xf32, #tpu.memory_space<vmem>>, vector<1x128xf32>
    %18 = vector.shape_cast %17 : vector<1x128xf32> to vector<1x1x128xf32>
    %19 = vector.broadcast %18 : vector<1x1x128xf32> to vector<16x16x128xf32>
    %20 = arith.mulf %16, %19 : vector<16x16x128xf32>
    %cst_20 = arith.constant dense<0.000000e+00> : vector<16x16xf32>
    %21 = vector.multi_reduction <add>, %20, %cst_20 [2] : vector<16x16x128xf32> to vector<16x16xf32>
    %cst_21 = arith.constant dense<0xFF800000> : vector<16xf32>
    %22 = vector.multi_reduction <maximumf>, %21, %cst_21 [1] : vector<16x16xf32> to vector<16xf32>
    %23 = vector.shape_cast %22 : vector<16xf32> to vector<16x1xf32>
    %24 = vector.broadcast %23 : vector<16x1xf32> to vector<16x16xf32>
    %25 = arith.subf %21, %24 : vector<16x16xf32>
    %26 = math.exp %25 : vector<16x16xf32>
    %cst_22 = arith.constant dense<0.000000e+00> : vector<16xf32>
    %27 = vector.multi_reduction <add>, %26, %cst_22 [1] : vector<16x16xf32> to vector<16xf32>
    %28 = vector.shape_cast %27 : vector<16xf32> to vector<16x1xf32>
    %29 = tpu.reciprocal %28 : vector<16x1xf32> -> vector<16x1xf32>
    %30 = vector.broadcast %29 : vector<16x1xf32> to vector<16x16xf32>
    %31 = arith.mulf %26, %30 : vector<16x16xf32>
    %32 = vector.shape_cast %31 : vector<16x16xf32> to vector<16x16x1xf32>
    %33 = vector.broadcast %32 : vector<16x16x1xf32> to vector<16x16x128xf32>
    %34 = arith.mulf %33, %1 : vector<16x16x128xf32>
    %cst_23 = arith.constant dense<0.000000e+00> : vector<16x128xf32>
    %35 = vector.multi_reduction <add>, %34, %cst_23 [1] : vector<16x16x128xf32> to vector<16x128xf32>
    %36 = tpu.concatenate %0, %35, %2 in 1 : vector<16x128xf32>, vector<16x128xf32>, vector<16x128xf32> -> vector<16x384xf32>
    %c0_24 = arith.constant 0 : index
    %c0_25 = arith.constant 0 : index
    %37 = vector.load %arg8[%c0_24, %c0_25] : memref<384x512xf32, #tpu.memory_space<vmem>>, vector<384x512xf32>
    %cst_26 = arith.constant dense<0.000000e+00> : vector<16x512xf32>
    %38 = tpu.matmul %36, %37, %cst_26 {dimension_numbers = #tpu.dot_dimension_numbers<[1], [0], [0], [1], [0, 0, 1, 1], [], []>} : vector<16x384xf32>, vector<384x512xf32>, vector<16x512xf32> -> vector<16x512xf32>
    %c0_27 = arith.constant 0 : index
    %c0_28 = arith.constant 0 : index
    %39 = vector.load %arg9[%c0_27, %c0_28] : memref<1x512xf32, #tpu.memory_space<vmem>>, vector<1x512xf32>
    %40 = vector.broadcast %39 : vector<1x512xf32> to vector<16x512xf32>
    %41 = arith.addf %38, %40 : vector<16x512xf32>
    %42 = vector.extract_strided_slice %41 {offsets = [0, 0], sizes = [16, 128], strides = [1, 1]} : vector<16x512xf32> to vector<16x128xf32>
    %43 = arith.negf %42 : vector<16x128xf32>
    %44 = math.exp %43 : vector<16x128xf32>
    %cst_29 = arith.constant 1.000000e+00 : f32
    %45 = vector.broadcast %cst_29 : f32 to vector<16x128xf32>
    %46 = arith.addf %45, %44 : vector<16x128xf32>
    %47 = arith.divf %45, %46 : vector<16x128xf32>
    %48 = vector.extract_strided_slice %41 {offsets = [0, 128], sizes = [16, 128], strides = [1, 1]} : vector<16x512xf32> to vector<16x128xf32>
    %49 = arith.negf %48 : vector<16x128xf32>
    %50 = math.exp %49 : vector<16x128xf32>
    %cst_30 = arith.constant 1.000000e+00 : f32
    %51 = vector.broadcast %cst_30 : f32 to vector<16x128xf32>
    %52 = arith.addf %51, %50 : vector<16x128xf32>
    %53 = arith.divf %51, %52 : vector<16x128xf32>
    %54 = vector.extract_strided_slice %41 {offsets = [0, 256], sizes = [16, 128], strides = [1, 1]} : vector<16x512xf32> to vector<16x128xf32>
    %55 = math.tanh %54 : vector<16x128xf32>
    %56 = vector.extract_strided_slice %41 {offsets = [0, 384], sizes = [16, 128], strides = [1, 1]} : vector<16x512xf32> to vector<16x128xf32>
    %57 = arith.negf %56 : vector<16x128xf32>
    %58 = math.exp %57 : vector<16x128xf32>
    %cst_31 = arith.constant 1.000000e+00 : f32
    %59 = vector.broadcast %cst_31 : f32 to vector<16x128xf32>
    %60 = arith.addf %59, %58 : vector<16x128xf32>
    %61 = arith.divf %59, %60 : vector<16x128xf32>
    %62 = arith.mulf %53, %4 : vector<16x128xf32>
    %63 = arith.mulf %47, %55 : vector<16x128xf32>
    %64 = arith.addf %62, %63 : vector<16x128xf32>
    %65 = math.tanh %64 : vector<16x128xf32>
    %66 = arith.mulf %61, %65 : vector<16x128xf32>
    %67 = tpu.concatenate %66, %3 in 1 : vector<16x128xf32>, vector<16x128xf32> -> vector<16x256xf32>
    %c0_32 = arith.constant 0 : index
    %c0_33 = arith.constant 0 : index
    %68 = vector.load %arg10[%c0_32, %c0_33] : memref<256x512xf32, #tpu.memory_space<vmem>>, vector<256x512xf32>
    %cst_34 = arith.constant dense<0.000000e+00> : vector<16x512xf32>
    %69 = tpu.matmul %67, %68, %cst_34 {dimension_numbers = #tpu.dot_dimension_numbers<[1], [0], [0], [1], [0, 0, 1, 1], [], []>} : vector<16x256xf32>, vector<256x512xf32>, vector<16x512xf32> -> vector<16x512xf32>
    %c0_35 = arith.constant 0 : index
    %c0_36 = arith.constant 0 : index
    %70 = vector.load %arg11[%c0_35, %c0_36] : memref<1x512xf32, #tpu.memory_space<vmem>>, vector<1x512xf32>
    %71 = vector.broadcast %70 : vector<1x512xf32> to vector<16x512xf32>
    %72 = arith.addf %69, %71 : vector<16x512xf32>
    %73 = vector.extract_strided_slice %72 {offsets = [0, 0], sizes = [16, 128], strides = [1, 1]} : vector<16x512xf32> to vector<16x128xf32>
    %74 = arith.negf %73 : vector<16x128xf32>
    %75 = math.exp %74 : vector<16x128xf32>
    %cst_37 = arith.constant 1.000000e+00 : f32
    %76 = vector.broadcast %cst_37 : f32 to vector<16x128xf32>
    %77 = arith.addf %76, %75 : vector<16x128xf32>
    %78 = arith.divf %76, %77 : vector<16x128xf32>
    %79 = vector.extract_strided_slice %72 {offsets = [0, 128], sizes = [16, 128], strides = [1, 1]} : vector<16x512xf32> to vector<16x128xf32>
    %80 = arith.negf %79 : vector<16x128xf32>
    %81 = math.exp %80 : vector<16x128xf32>
    %cst_38 = arith.constant 1.000000e+00 : f32
    %82 = vector.broadcast %cst_38 : f32 to vector<16x128xf32>
    %83 = arith.addf %82, %81 : vector<16x128xf32>
    %84 = arith.divf %82, %83 : vector<16x128xf32>
    %85 = vector.extract_strided_slice %72 {offsets = [0, 256], sizes = [16, 128], strides = [1, 1]} : vector<16x512xf32> to vector<16x128xf32>
    %86 = math.tanh %85 : vector<16x128xf32>
    %87 = vector.extract_strided_slice %72 {offsets = [0, 384], sizes = [16, 128], strides = [1, 1]} : vector<16x512xf32> to vector<16x128xf32>
    %88 = arith.negf %87 : vector<16x128xf32>
    %89 = math.exp %88 : vector<16x128xf32>
    %cst_39 = arith.constant 1.000000e+00 : f32
    %90 = vector.broadcast %cst_39 : f32 to vector<16x128xf32>
    %91 = arith.addf %90, %89 : vector<16x128xf32>
    %92 = arith.divf %90, %91 : vector<16x128xf32>
    %93 = arith.mulf %84, %5 : vector<16x128xf32>
    %94 = arith.mulf %78, %86 : vector<16x128xf32>
    %95 = arith.addf %93, %94 : vector<16x128xf32>
    %96 = math.tanh %95 : vector<16x128xf32>
    %97 = arith.mulf %92, %96 : vector<16x128xf32>
    %98 = tpu.concatenate %66, %97 in 0 : vector<16x128xf32>, vector<16x128xf32> -> vector<32x128xf32>
    %c0_40 = arith.constant 0 : index
    %c0_41 = arith.constant 0 : index
    %99 = vector.load %arg12[%c0_40, %c0_41] : memref<32x128xf32, #tpu.memory_space<vmem>>, vector<32x128xf32>
    tpu.vector_store %arg12[%c0_40, %c0_41], %98 {strides = array<i32>} : memref<32x128xf32, #tpu.memory_space<vmem>>, vector<32x128xf32>,
    %100 = tpu.concatenate %64, %95 in 0 : vector<16x128xf32>, vector<16x128xf32> -> vector<32x128xf32>
    %c0_42 = arith.constant 0 : index
    %c0_43 = arith.constant 0 : index
    %101 = vector.load %arg13[%c0_42, %c0_43] : memref<32x128xf32, #tpu.memory_space<vmem>>, vector<32x128xf32>
    tpu.vector_store %arg13[%c0_42, %c0_43], %100 {strides = array<i32>} : memref<32x128xf32, #tpu.memory_space<vmem>>, vector<32x128xf32>,
    %102 = tpu.concatenate %97, %35, %0 in 1 : vector<16x128xf32>, vector<16x128xf32>, vector<16x128xf32> -> vector<16x384xf32>
    %c0_44 = arith.constant 0 : index
    %c0_45 = arith.constant 0 : index
    %103 = vector.load %arg14[%c0_44, %c0_45] : memref<16x384xf32, #tpu.memory_space<vmem>>, vector<16x384xf32>
    tpu.vector_store %arg14[%c0_44, %c0_45], %102 {strides = array<i32>} : memref<16x384xf32, #tpu.memory_space<vmem>>, vector<16x384xf32>,
    return
  }
}

module attributes {stable_mosaic.version = 11 : i64} {
  func.func @fc_out_kernel(%arg0: i32, %arg1: memref<16x384xf32, #tpu.memory_space<vmem>>, %arg2: memref<384x128xf32, #tpu.memory_space<vmem>>, %arg3: memref<1x128xf32, #tpu.memory_space<vmem>>, %arg4: memref<1x128xf32, #tpu.memory_space<vmem>>, %arg5: memref<16x128xf32, #tpu.memory_space<vmem>>) attributes {dimension_semantics = [#tpu.dimension_semantics<parallel>], iteration_bounds = array<i64: 4>, scalar_prefetch = 0 : i64, scratch_operands = 0 : i64, tpu.core_type = #tpu.core_type<tc>, window_params = [{pipeline_mode = #tpu.pipeline_mode<synchronous>, transform_indices = @transform_0, window_bounds = array<i64: 16, 384>}, {transform_indices = @transform_1, window_bounds = array<i64: 384, 128>}, {transform_indices = @transform_2, window_bounds = array<i64: 1, 128>}, {transform_indices = @transform_3, window_bounds = array<i64: 1, 128>}, {transform_indices = @transform_4, window_bounds = array<i64: 16, 128>}]} {
    %c0 = arith.constant 0 : index
    %c0_0 = arith.constant 0 : index
    %0 = vector.load %arg2[%c0, %c0_0] : memref<384x128xf32, #tpu.memory_space<vmem>>, vector<384x128xf32>
    %c0_1 = arith.constant 0 : index
    %c0_2 = arith.constant 0 : index
    %1 = vector.load %arg1[%c0_1, %c0_2] : memref<16x384xf32, #tpu.memory_space<vmem>>, vector<16x384xf32>
    %cst = arith.constant dense<0.000000e+00> : vector<16x128xf32>
    %2 = tpu.matmul %1, %0, %cst {dimension_numbers = #tpu.dot_dimension_numbers<[1], [0], [0], [1], [0, 0, 1, 1], [], []>} : vector<16x384xf32>, vector<384x128xf32>, vector<16x128xf32> -> vector<16x128xf32>
    %c0_3 = arith.constant 0 : index
    %c0_4 = arith.constant 0 : index
    %3 = vector.load %arg3[%c0_3, %c0_4] : memref<1x128xf32, #tpu.memory_space<vmem>>, vector<1x128xf32>
    %4 = vector.broadcast %3 : vector<1x128xf32> to vector<16x128xf32>
    %5 = arith.mulf %2, %4 : vector<16x128xf32>
    %c0_5 = arith.constant 0 : index
    %c0_6 = arith.constant 0 : index
    %6 = vector.load %arg4[%c0_5, %c0_6] : memref<1x128xf32, #tpu.memory_space<vmem>>, vector<1x128xf32>
    %7 = vector.broadcast %6 : vector<1x128xf32> to vector<16x128xf32>
    %8 = arith.addf %5, %7 : vector<16x128xf32>
    %c0_7 = arith.constant 0 : index
    %c0_8 = arith.constant 0 : index
    %9 = vector.load %arg5[%c0_7, %c0_8] : memref<16x128xf32, #tpu.memory_space<vmem>>, vector<16x128xf32>
    tpu.vector_store %arg5[%c0_7, %c0_8], %8 {strides = array<i32>} : memref<16x128xf32, #tpu.memory_space<vmem>>, vector<16x128xf32>,
    return
  }
  func.func @transform_0(%arg0: i32) -> (i32, i32) {
    %c0_i32 = arith.constant 0 : i32
    %c0_i32_0 = arith.constant 0 : i32
    %c0_i32_1 = arith.constant 0 : i32
    return %c0_i32, %c0_i32_0 : i32, i32
  }
  func.func @transform_1(%arg0: i32) -> (i32, i32) {
    %c0_i32 = arith.constant 0 : i32
    %c0_i32_0 = arith.constant 0 : i32
    return %c0_i32, %arg0 : i32, i32
  }
  func.func @transform_2(%arg0: i32) -> (i32, i32) {
    %c0_i32 = arith.constant 0 : i32
    %c0_i32_0 = arith.constant 0 : i32
    return %c0_i32, %arg0 : i32, i32
  }
  func.func @transform_3(%arg0: i32) -> (i32, i32) {
    %c0_i32 = arith.constant 0 : i32
    %c0_i32_0 = arith.constant 0 : i32
    return %c0_i32, %arg0 : i32, i32
  }
  func.func @transform_4(%arg0: i32) -> (i32, i32) {
    %c0_i32 = arith.constant 0 : i32
    %c0_i32_0 = arith.constant 0 : i32
    return %c0_i32, %arg0 : i32, i32
  }
}

</mosaic_0001>

<bundles_post_ra>
// kernel: decoder_forward.3
= control target key start
LH: loop header
LB: loop body
LE: loop exit
PB: predicated region body
PF: predicated region fallthrough
CT: control target
= control target key end

     0   :  { %9 = vsyncpa [#allocation4], 0  ;;  %s1292_s0 = inlined_call_operand.vmem [shape: f32[16,384], index: 0, kind: input, shape index: {}]   ;;  %s1293_s1 = inlined_call_operand.vmem [shape: f32[384,512], index: 1, kind: input, shape index: {}]   ;;  %s1294_s2 = inlined_call_operand.vmem [shape: f32[1,512], index: 2, kind: input, shape index: {}]   ;;  %s1295_s3 = inlined_call_operand.vmem [shape: f32[1,512], index: 3, kind: input, shape index: {}]   ;;  %s1296_s4 = inlined_call_operand.hbm [shape: f32[16,512], index: 4, kind: output, shape index: {}]  }
   0x1   :  { %11 = vsyncpa [#allocation4 + $0x1], 0  ;;  %s1008_s15 = smov 0   ;;  %s1010_s16 = smov 0  }
   0x2   :  { %s1012_s17 = smov 0   ;;  %s1014_s18 = smov 0  }
   0x3 LB: > { %s1029_s19 = sadd.s32 4294967295, %s977_s18   ;;  %s770_s20 = sadd.s32 4294967294, %s977_s18   ;;  %s977_s18 = sphi %s1014_s18, %s1302_s18   ;;  %s973_s17 = sphi %s1012_s17, %s1301_s17   ;;  %s969_s16 = sphi %s1010_s16, %s1300_s16   ;;  %s965_s15 = sphi %s1008_s15, %s1299_s15  }
   0x4   : > { %s1033_s21 = sadd.s32 1, %s977_s18   ;;  %s45_s22 = sadd.s32 1, %s973_s17 }
   0x5   : > { %s42_s23 = ssub.s32 %s977_s18, %s1033_s21  ;;  %p52_p0 = scmp.ne.s32.totalorder %s973_s17, %s969_s16 }
   0x6   : > { %p43_p1 = scmp.eq.s32.totalorder %s42_s23, 0  ;;  %p53_p2 = scmp.eq.s32.totalorder %s977_s18, 0 }
   0x7   : > { %p134_p3 = scmp.eq.s32.totalorder %s1029_s19, 3  ;;  %p139_p4 = scmp.ne.s32.totalorder %s969_s16, %s965_s15 }
   0x8   : > { %s1045_s24 = scalar_select %p43_p1, %s973_s17, %s45_s22  }
   0x9   : > { %p54_p5 = por %p53_p2, %p52_p0  ;;  %p1047_p6 = por %p134_p3, %p52_p0 }
   0xa   : > { %p140_p7 = scmp.eq.s32.totalorder %s770_s20, 3  ;;  %p772_p9 = scmp.ge.s32.totalorder %s977_s18, 4 }
   0xc   : > { %p1051_p8 = por %p140_p7, %p139_p4  ;;  %159 = sbr.rel (%p772_p9) target bundleno = 69 (0x45), region = 20 }
  0x11   : > { %162 = sbr.rel (!%p54_p5) target bundleno = 69 (0x45), region = 24  ;;  %s164_s27 = sand.u32 (%p54_p5), 1, %s973_s17  }
  0x12   : > { %s773_s28 = sshll.u32 (%p54_p5), %s977_s18, 3  ;;  %s873_s29 = smul.u32 (%p54_p5), 384, %s164_s27 }
  0x13   : > { %s1061_s6 = scalar_lea.vmem (%p54_p5), %s1293_s1, %s773_s28 }
  0x14   : > { %v291_v0 = vld [vmem:[%s1061_s6] sm:$0xff] (%p54_p5)  ;;  %s1069_s7 = scalar_lea.vmem (%p54_p5), [#allocation2], %s873_s29 }
  0x15   : > { %v293_v1 = vld [vmem:[%s1061_s6 + $0x20] sm:$0xff] (%p54_p5)  ;;  %292 = vst [vmem:[%s1069_s7] sm:$0xff] (%p54_p5), %v291_v0 }
  0x16   : > { %v295_v2 = vld [vmem:[%s1061_s6 + $0x40] sm:$0xff]  ;;  %294 = vst [vmem:[%s1069_s7 + $0x8] sm:$0xff] %v293_v1 }
  0x17   : > { %v297_v3 = vld [vmem:[%s1061_s6 + $0x60] sm:$0xff]  ;;  %296 = vst [vmem:[%s1069_s7 + $0x10] sm:$0xff] %v295_v2 }
  0x18   : > { %v299_v4 = vld [vmem:[%s1061_s6 + $0x80] sm:$0xff]  ;;  %298 = vst [vmem:[%s1069_s7 + $0x18] sm:$0xff] %v297_v3 }
  0x19   : > { %v301_v5 = vld [vmem:[%s1061_s6 + $0xa0] sm:$0xff]  ;;  %300 = vst [vmem:[%s1069_s7 + $0x20] sm:$0xff] %v299_v4 }
  0x1a   : > { %302 = vst [vmem:[%s1069_s7 + $0x28] sm:$0xff] %v301_v5  ;;  %v303_v6 = vld [vmem:[%s1061_s6 + $0xc0] sm:$0xff] }
  0x1b   : > { %v305_v7 = vld [vmem:[%s1061_s6 + $0xe0] sm:$0xff]  ;;  %304 = vst [vmem:[%s1069_s7 + $0x30] sm:$0xff] %v303_v6 }
  0x1c   : > { %v307_v8 = vld [vmem:[%s1061_s6 + $0x100] sm:$0xff]  ;;  %306 = vst [vmem:[%s1069_s7 + $0x38] sm:$0xff] %v305_v7 }
  0x1d   : > { %308 = vst [vmem:[%s1069_s7 + $0x40] sm:$0xff] %v307_v8  ;;  %v309_v9 = vld [vmem:[%s1061_s6 + $0x120] sm:$0xff] }
  0x1e   : > { %v311_v10 = vld [vmem:[%s1061_s6 + $0x140] sm:$0xff]  ;;  %310 = vst [vmem:[%s1069_s7 + $0x48] sm:$0xff] %v309_v9 }
  0x1f   : > { %v313_v11 = vld [vmem:[%s1061_s6 + $0x160] sm:$0xff]  ;;  %312 = vst [vmem:[%s1069_s7 + $0x50] sm:$0xff] %v311_v10 }
  0x20   : > { %314 = vst [vmem:[%s1069_s7 + $0x58] sm:$0xff] %v313_v11  ;;  %v315_v12 = vld [vmem:[%s1061_s6 + $0x180] sm:$0xff] }
  0x21   : > { %v317_v13 = vld [vmem:[%s1061_s6 + $0x1a0] sm:$0xff]  ;;  %316 = vst [vmem:[%s1069_s7 + $0x60] sm:$0xff] %v315_v12 }
  0x22   : > { %v319_v14 = vld [vmem:[%s1061_s6 + $0x1c0] sm:$0xff]  ;;  %318 = vst [vmem:[%s1069_s7 + $0x68] sm:$0xff] %v317_v13 }
  0x23   : > { %320 = vst [vmem:[%s1069_s7 + $0x70] sm:$0xff] %v319_v14  ;;  %v321_v15 = vld [vmem:[%s1061_s6 + $0x1e0] sm:$0xff] }
  0x24   : > { %v323_v16 = vld [vmem:[%s1061_s6 + $0x200] sm:$0xff]  ;;  %322 = vst [vmem:[%s1069_s7 + $0x78] sm:$0xff] %v321_v15 }
  0x25   : > { %v325_v17 = vld [vmem:[%s1061_s6 + $0x220] sm:$0xff]  ;;  %324 = vst [vmem:[%s1069_s7 + $0x80] sm:$0xff] %v323_v16 }
  0x26   : > { %326 = vst [vmem:[%s1069_s7 + $0x88] sm:$0xff] %v325_v17  ;;  %v327_v18 = vld [vmem:[%s1061_s6 + $0x240] sm:$0xff] }
  0x27   : > { %v329_v19 = vld [vmem:[%s1061_s6 + $0x260] sm:$0xff]  ;;  %328 = vst [vmem:[%s1069_s7 + $0x90] sm:$0xff] %v327_v18 }
  0x28   : > { %v331_v20 = vld [vmem:[%s1061_s6 + $0x280] sm:$0xff]  ;;  %330 = vst [vmem:[%s1069_s7 + $0x98] sm:$0xff] %v329_v19 }
  0x29   : > { %332 = vst [vmem:[%s1069_s7 + $0xa0] sm:$0xff] %v331_v20  ;;  %v333_v21 = vld [vmem:[%s1061_s6 + $0x2a0] sm:$0xff] }
  0x2a   : > { %v335_v22 = vld [vmem:[%s1061_s6 + $0x2c0] sm:$0xff]  ;;  %334 = vst [vmem:[%s1069_s7 + $0xa8] sm:$0xff] %v333_v21 }
  0x2b   : > { %v337_v23 = vld [vmem:[%s1061_s6 + $0x2e0] sm:$0xff]  ;;  %336 = vst [vmem:[%s1069_s7 + $0xb0] sm:$0xff] %v335_v22 }
  0x2c   : > { %338 = vst [vmem:[%s1069_s7 + $0xb8] sm:$0xff] %v337_v23  ;;  %v339_v24 = vld [vmem:[%s1061_s6 + $0x300] sm:$0xff] }
  0x2d   : > { %v341_v25 = vld [vmem:[%s1061_s6 + $0x320] sm:$0xff]  ;;  %340 = vst [vmem:[%s1069_s7 + $0xc0] sm:$0xff] %v339_v24 }
  0x2e   : > { %v343_v26 = vld [vmem:[%s1061_s6 + $0x340] sm:$0xff]  ;;  %342 = vst [vmem:[%s1069_s7 + $0xc8] sm:$0xff] %v341_v25 }
  0x2f   : > { %344 = vst [vmem:[%s1069_s7 + $0xd0] sm:$0xff] %v343_v26  ;;  %v345_v27 = vld [vmem:[%s1061_s6 + $0x360] sm:$0xff] }
  0x30   : > { %v347_v28 = vld [vmem:[%s1061_s6 + $0x380] sm:$0xff]  ;;  %346 = vst [vmem:[%s1069_s7 + $0xd8] sm:$0xff] %v345_v27 }
  0x31   : > { %v349_v29 = vld [vmem:[%s1061_s6 + $0x3a0] sm:$0xff]  ;;  %348 = vst [vmem:[%s1069_s7 + $0xe0] sm:$0xff] %v347_v28 }
  0x32   : > { %350 = vst [vmem:[%s1069_s7 + $0xe8] sm:$0xff] %v349_v29  ;;  %v351_v30 = vld [vmem:[%s1061_s6 + $0x3c0] sm:$0xff] }
  0x33   : > { %v353_v31 = vld [vmem:[%s1061_s6 + $0x3e0] sm:$0xff]  ;;  %352 = vst [vmem:[%s1069_s7 + $0xf0] sm:$0xff] %v351_v30 }
  0x34   : > { %v355_v32 = vld [vmem:[%s1061_s6 + $0x400] sm:$0xff]  ;;  %354 = vst [vmem:[%s1069_s7 + $0xf8] sm:$0xff] %v353_v31 }
  0x35   : > { %356 = vst [vmem:[%s1069_s7 + $0x100] sm:$0xff] %v355_v32  ;;  %v357_v33 = vld [vmem:[%s1061_s6 + $0x420] sm:$0xff] }
  0x36   : > { %v359_v34 = vld [vmem:[%s1061_s6 + $0x440] sm:$0xff]  ;;  %358 = vst [vmem:[%s1069_s7 + $0x108] sm:$0xff] %v357_v33 }
  0x37   : > { %v361_v35 = vld [vmem:[%s1061_s6 + $0x460] sm:$0xff]  ;;  %360 = vst [vmem:[%s1069_s7 + $0x110] sm:$0xff] %v359_v34 }
  0x38   : > { %362 = vst [vmem:[%s1069_s7 + $0x118] sm:$0xff] %v361_v35  ;;  %v363_v36 = vld [vmem:[%s1061_s6 + $0x480] sm:$0xff] }
  0x39   : > { %v365_v37 = vld [vmem:[%s1061_s6 + $0x4a0] sm:$0xff]  ;;  %364 = vst [vmem:[%s1069_s7 + $0x120] sm:$0xff] %v363_v36 }
  0x3a   : > { %v367_v38 = vld [vmem:[%s1061_s6 + $0x4c0] sm:$0xff]  ;;  %366 = vst [vmem:[%s1069_s7 + $0x128] sm:$0xff] %v365_v37 }
  0x3b   : > { %368 = vst [vmem:[%s1069_s7 + $0x130] sm:$0xff] %v367_v38  ;;  %v369_v39 = vld [vmem:[%s1061_s6 + $0x4e0] sm:$0xff] }
  0x3c   : > { %v371_v40 = vld [vmem:[%s1061_s6 + $0x500] sm:$0xff]  ;;  %370 = vst [vmem:[%s1069_s7 + $0x138] sm:$0xff] %v369_v39 }
  0x3d   : > { %v373_v41 = vld [vmem:[%s1061_s6 + $0x520] sm:$0xff]  ;;  %372 = vst [vmem:[%s1069_s7 + $0x140] sm:$0xff] %v371_v40 }
  0x3e   : > { %374 = vst [vmem:[%s1069_s7 + $0x148] sm:$0xff] %v373_v41  ;;  %v375_v42 = vld [vmem:[%s1061_s6 + $0x540] sm:$0xff] }
  0x3f   : > { %v377_v43 = vld [vmem:[%s1061_s6 + $0x560] sm:$0xff]  ;;  %376 = vst [vmem:[%s1069_s7 + $0x150] sm:$0xff] %v375_v42 }
  0x40   : > { %v379_v44 = vld [vmem:[%s1061_s6 + $0x580] sm:$0xff]  ;;  %378 = vst [vmem:[%s1069_s7 + $0x158] sm:$0xff] %v377_v43 }
  0x41   : > { %380 = vst [vmem:[%s1069_s7 + $0x160] sm:$0xff] %v379_v44  ;;  %v381_v45 = vld [vmem:[%s1061_s6 + $0x5a0] sm:$0xff] }
  0x42   : > { %v383_v46 = vld [vmem:[%s1061_s6 + $0x5c0] sm:$0xff]  ;;  %382 = vst [vmem:[%s1069_s7 + $0x168] sm:$0xff] %v381_v45 }
  0x43   : > { %v385_v47 = vld [vmem:[%s1061_s6 + $0x5e0] sm:$0xff]  ;;  %384 = vst [vmem:[%s1069_s7 + $0x170] sm:$0xff] %v383_v46 }
  0x44   : > { %386 = vst [vmem:[%s1069_s7 + $0x178] sm:$0xff] %v385_v47 }
  0x45 PF: > { %p774_p10 = scmp.ge.s32.totalorder %s977_s18, 1  ;;  %p403_p11 = scmp.lt.s32.totalorder %s977_s18, 5 }
  0x47   : > { %p404_p12 = pnand %p774_p10, %p403_p11 }
  0x48   : > { %s1164_s8 = sand.u32 (!%p404_p12), 1, %s969_s16   ;;  %p441_p13 = scmp.lt.s32.totalorder (!%p404_p12), %s1029_s19, 3 }
  0x49   : > { %407 = sbr.rel (%p404_p12) target bundleno = 334 (0x14e), region = 70  ;;  %s779_s23 = sshll.u32 (!%p404_p12), %s1029_s19, 7 }
  0x4a   : > { %s874_s13 = smul.u32 (!%p404_p12), 384, %s1164_s8  ;;  %s1250_s29 = scalar_lea.hbm (!%p404_p12), %s1296_s4, %s779_s23 }
  0x4b   : > { %s672_s30 = scalar_lea.sflag (!%p404_p12), [#allocation4], %s1164_s8 }
  0x4c   : > { %s1173_s14 = scalar_lea.vmem (!%p404_p12), [#allocation2], %s874_s13 }
  0x4e   : > { %v496_v48 = vld [vmem:[%s1292_s0 + $0x8] sm:$0xff]  ;;  %v497_v49 = vld [vmem:[%s1292_s0 + $0x10] sm:$0xff]  ;;  %v478_v50 = vld [vmem:[%s1173_s14 + $0xf8] sm:$0xff]  ;;  %s442_s6 = scalar_select %p441_p13, %s1029_s19, 3 }
  0x4f   : > { %565 = vmatprep.mubr.f32.mxu0 %v496_v48  ;;  %870 = vmatprep.mubr.f32.mxu1 %v497_v49  ;;  %v462_v51 = vld [vmem:[%s1173_s14 + $0x78] sm:$0xff]  ;;  %v477_v52 = vld [vmem:[%s1173_s14 + $0xf0] sm:$0xff]  ;;  %v476_v55 = vld [vmem:[%s1173_s14 + $0xe8] sm:$0xff]  ;;  %s979_s19 = smov [#allocation3]  }
  0x50   : > { %782 = vmatprep.subr.mxu0 %v478_v50  ;;  %v494_v53 = vld [vmem:[%s1173_s14 + $0x178] sm:$0xff]  ;;  %v461_v54 = vld [vmem:[%s1173_s14 + $0x70] sm:$0xff]  ;;  %v460_v57 = vld [vmem:[%s1173_s14 + $0x68] sm:$0xff]  ;;  %s443_s10 = scalar_lea.vmem %s1294_s2, %s442_s6  ;;  %s446_s13 = scalar_lea.vmem %s1295_s3, %s442_s6 }
  0x51   : > { %783 = vmatpush3.msra.mxu0 %v462_v51  ;;  %838 = vmatprep.subr.mxu1 %v494_v53  ;;  %v493_v56 = vld [vmem:[%s1173_s14 + $0x170] sm:$0xff]  ;;  %v492_v58 = vld [vmem:[%s1173_s14 + $0x168] sm:$0xff]  ;;  %v475_v59 = vld [vmem:[%s1173_s14 + $0xe0] sm:$0xff]  ;;  %s921_s6 = sshll.u32 %s979_s19, 4  ;;  %s922_s6 = int_to_ptr.vmem [resolvable:$false] %s921_s6 }
  0x52   : > { %784 = vmatprep.subr.mxu0 %v477_v52  ;;  %839 = vmatpush3.msra.mxu1 %v494_v53  ;;  %v459_v60 = vld [vmem:[%s1173_s14 + $0x60] sm:$0xff]  ;;  %v474_v62 = vld [vmem:[%s1173_s14 + $0xd8] sm:$0xff]  ;;  %v473_v1 = vld [vmem:[%s1173_s14 + $0xd0] sm:$0xff]  ;;  %s923_s7 = scalar_lea.vmem %s922_s6, 512 }
  0x53   : > { %785 = vmatpush3.msra.mxu0 %v461_v54  ;;  %840 = vmatprep.subr.mxu1 %v493_v56  ;;  %v491_v61 = vld [vmem:[%s1173_s14 + $0x160] sm:$0xff]  ;;  %v458_v63 = vld [vmem:[%s1173_s14 + $0x58] sm:$0xff]  ;;  %v457_v2 = vld [vmem:[%s1173_s14 + $0x50] sm:$0xff] }
  0x54   : > { %786 = vmatprep.subr.mxu0 %v476_v55  ;;  %841 = vmatpush3.msra.mxu1 %v493_v56  ;;  %v490_v0 = vld [vmem:[%s1173_s14 + $0x158] sm:$0xff]  ;;  %v489_v3 = vld [vmem:[%s1173_s14 + $0x150] sm:$0xff]  ;;  %v472_v4 = vld [vmem:[%s1173_s14 + $0xc8] sm:$0xff] }
  0x55   : > { %787 = vmatpush3.msra.mxu0 %v460_v57  ;;  %842 = vmatprep.subr.mxu1 %v492_v58  ;;  %v456_v5 = vld [vmem:[%s1173_s14 + $0x48] sm:$0xff]  ;;  %v471_v7 = vld [vmem:[%s1173_s14 + $0xc0] sm:$0xff]  ;;  %v470_v10 = vld [vmem:[%s1173_s14 + $0xb8] sm:$0xff] }
  0x56   : > { %788 = vmatprep.subr.mxu0 %v475_v59  ;;  %843 = vmatpush3.msra.mxu1 %v492_v58  ;;  %v488_v6 = vld [vmem:[%s1173_s14 + $0x148] sm:$0xff]  ;;  %v455_v8 = vld [vmem:[%s1173_s14 + $0x40] sm:$0xff]  ;;  %v454_v11 = vld [vmem:[%s1173_s14 + $0x38] sm:$0xff] }
  0x57   : > { %789 = vmatpush3.msra.mxu0 %v459_v60  ;;  %844 = vmatprep.subr.mxu1 %v491_v61  ;;  %v487_v9 = vld [vmem:[%s1173_s14 + $0x140] sm:$0xff]  ;;  %v486_v12 = vld [vmem:[%s1173_s14 + $0x138] sm:$0xff]  ;;  %v469_v13 = vld [vmem:[%s1173_s14 + $0xb0] sm:$0xff] }
  0x58   : > { %790 = vmatprep.subr.mxu0 %v474_v62  ;;  %845 = vmatpush3.msra.mxu1 %v491_v61  ;;  %v453_v14 = vld [vmem:[%s1173_s14 + $0x30] sm:$0xff]  ;;  %v468_v16 = vld [vmem:[%s1173_s14 + $0xa8] sm:$0xff]  ;;  %v467_v19 = vld [vmem:[%s1173_s14 + $0xa0] sm:$0xff] }
  0x59   : > { %791 = vmatpush3.msra.mxu0 %v458_v63  ;;  %846 = vmatprep.subr.mxu1 %v490_v0  ;;  %v485_v15 = vld [vmem:[%s1173_s14 + $0x130] sm:$0xff]  ;;  %v452_v17 = vld [vmem:[%s1173_s14 + $0x28] sm:$0xff]  ;;  %v451_v20 = vld [vmem:[%s1173_s14 + $0x20] sm:$0xff] }
  0x5a   : > { %792 = vmatprep.subr.mxu0 %v473_v1  ;;  %847 = vmatpush3.msra.mxu1 %v490_v0  ;;  %v484_v18 = vld [vmem:[%s1173_s14 + $0x128] sm:$0xff]  ;;  %v483_v21 = vld [vmem:[%s1173_s14 + $0x120] sm:$0xff]  ;;  %v466_v22 = vld [vmem:[%s1173_s14 + $0x98] sm:$0xff] }
  0x5b   : > { %793 = vmatpush3.msra.mxu0 %v457_v2  ;;  %848 = vmatprep.subr.mxu1 %v489_v3  ;;  %v450_v23 = vld [vmem:[%s1173_s14 + $0x18] sm:$0xff]  ;;  %v465_v25 = vld [vmem:[%s1173_s14 + $0x90] sm:$0xff]  ;;  %v464_v28 = vld [vmem:[%s1173_s14 + $0x88] sm:$0xff] }
  0x5c   : > { %794 = vmatprep.subr.mxu0 %v472_v4  ;;  %849 = vmatpush3.msra.mxu1 %v489_v3  ;;  %v482_v24 = vld [vmem:[%s1173_s14 + $0x118] sm:$0xff]  ;;  %v449_v26 = vld [vmem:[%s1173_s14 + $0x10] sm:$0xff]  ;;  %v448_v29 = vld [vmem:[%s1173_s14 + $0x8] sm:$0xff] }
  0x5d   : > { %795 = vmatpush3.msra.mxu0 %v456_v5  ;;  %850 = vmatprep.subr.mxu1 %v488_v6  ;;  %v481_v27 = vld [vmem:[%s1173_s14 + $0x110] sm:$0xff]  ;;  %v480_v30 = vld [vmem:[%s1173_s14 + $0x108] sm:$0xff]  ;;  %v463_v31 = vld [vmem:[%s1173_s14 + $0x80] sm:$0xff] }
  0x5e   : > { %796 = vmatprep.subr.mxu0 %v471_v7  ;;  %851 = vmatpush3.msra.mxu1 %v488_v6  ;;  %v447_v32 = vld [vmem:[%s1173_s14] sm:$0xff]  ;;  %v500_v35 = vld [vmem:[%s1292_s0 + $0x28] sm:$0xff]  ;;  %v498_v37 = vld [vmem:[%s1292_s0 + $0x18] sm:$0xff] }
  0x5f   : > { %797 = vmatpush3.msra.mxu0 %v455_v8  ;;  %852 = vmatprep.subr.mxu1 %v487_v9  ;;  %v479_v33 = vld [vmem:[%s1173_s14 + $0x100] sm:$0xff]  ;;  %s775_s14 = sshll.u32 %s1164_s8, 4 }
  0x60   : > { %798 = vmatprep.subr.mxu0 %v470_v10  ;;  %853 = vmatpush3.msra.mxu1 %v487_v9  ;;  %v495_v34 = vld [vmem:[%s1292_s0] sm:$0xff]  ;;  %s440_s20 = scalar_lea.vmem [#allocation3], %s775_s14 }
  0x61   : > { %799 = vmatpush3.msra.mxu0 %v454_v11  ;;  %854 = vmatprep.subr.mxu1 %v486_v12  ;;  %v499_v36 = vld [vmem:[%s1292_s0 + $0x20] sm:$0xff]  ;;  %s684_s22 = sshll.u32 %s440_s20, 4  ;;  %s1245_s22 = int_to_ptr.vmem [resolvable:$true] %s684_s22 }
  0x62   : > { %800 = vmatprep.subr.mxu0 %v469_v13  ;;  %855 = vmatpush3.msra.mxu1 %v486_v12  ;;  %v776_v44 = vld [vmem:[%s443_s10] ss:$0 sm:$0xff]  ;;  %s917_s5 = scalar_lea.vmem %s1245_s22, 256  ;;  %p924_p3 = scmp.lt.s32.totalorder %s1245_s22, %s922_s6 }
  0x63   : > { %801 = vmatpush3.msra.mxu0 %v453_v14  ;;  %856 = vmatprep.subr.mxu1 %v485_v15  ;;  %v777_v46 = vld [vmem:[%s446_s13] ss:$0 sm:$0xff]  ;;  %p918_p0 = scmp.ne.s32.totalorder %s1245_s22, %s917_s5  ;;  %p925_p4 = scmp.lt.s32.totalorder %s923_s7, %s917_s5 }
  0x64   : > { %802 = vmatprep.subr.mxu0 %v468_v16  ;;  %857 = vmatpush3.msra.mxu1 %v485_v15 }
  0x65   : > { %803 = vmatpush3.msra.mxu0 %v452_v17  ;;  %858 = vmatprep.subr.mxu1 %v484_v18  ;;  %p919_p1 = pnand %p918_p0, %p1047_p6  ;;  %p926_p5 = por %p925_p4, %p924_p3 }
  0x66   : > { %804 = vmatprep.subr.mxu0 %v467_v19  ;;  %859 = vmatpush3.msra.mxu1 %v484_v18 }
  0x67   : > { %805 = vmatpush3.msra.mxu0 %v451_v20  ;;  %860 = vmatprep.subr.mxu1 %v483_v21  ;;  %p920_p2 = pneg %p919_p1 }
  0x68   : > { %806 = vmatprep.subr.mxu0 %v466_v22  ;;  %861 = vmatpush3.msra.mxu1 %v483_v21 }
  0x69   : > { %807 = vmatpush3.msra.mxu0 %v450_v23  ;;  %862 = vmatprep.subr.mxu1 %v482_v24  ;;  %p927_p7 = pnand %p926_p5, %p920_p2 }
  0x6a   : > { %808 = vmatprep.subr.mxu0 %v465_v25  ;;  %863 = vmatpush3.msra.mxu1 %v482_v24 }
  0x6b   : > { %809 = vmatpush3.msra.mxu0 %v449_v26  ;;  %864 = vmatprep.subr.mxu1 %v481_v27 }
  0x6c   : > { %810 = vmatprep.subr.mxu0 %v464_v28  ;;  %865 = vmatpush3.msra.mxu1 %v481_v27 }
  0x6d   : > { %811 = vmatpush3.msra.mxu0 %v448_v29  ;;  %866 = vmatprep.subr.mxu1 %v480_v30 }
  0x6e   : > { %812 = vmatprep.subr.mxu0 %v463_v31  ;;  %867 = vmatpush3.msra.mxu1 %v480_v30 }
  0x6f   : > { %813 = vmatpush3.msra.mxu0 %v447_v32  ;;  %868 = vmatprep.subr.mxu1 %v479_v33 }
  0x70   : > { %566 = vmatmul.mubr.f32.vlgmr.msra.gmra.mxu0 %v495_v34  ;;  %869 = vmatpush3.msra.mxu1 %v479_v33 }
  0x71   : > { %871 = vmatmul.mubr.f32.vlgmr.msra.gmra.mxu1 %v500_v35  ;;  %570 = vmatprep.mubr.f32.mxu0 %v499_v36 }
  0x74   : > { %571 = vmatmul.mubr.f32.gmra.mxu0 %v498_v37 }
 0x130   : > { %v814_v38 = vpop.f32.mrf.mxu0 }
 0x131   : > { %v872_v39 = vpop.f32.mrf.mxu1 }
 0x132   : > { %v815_v40 = vpop.f32.mrf.mxu0 }
 0x133   : > { %v816_v41 = vadd.f32 %v815_v40, %v814_v38  ;;  %v642_v42 = vpop.f32.mrf.mxu1 }
 0x134   : > { %v817_v43 = vpop.f32.mrf.mxu0 }
 0x135   : > { %v643_v45 = vadd.f32 %v816_v41, %v642_v42 }
 0x136   : > { %v818_v47 = vpop.f32.mrf.mxu0 }
 0x137   : > { %v658_v48 = vmul.f32 %v776_v44, %v643_v45  ;;  %v819_v49 = vadd.f32 %v818_v47, %v817_v43 }
 0x139   : > { %v667_v50 = vadd.f32 %v777_v46, %v658_v48  ;;  %v648_v51 = vadd.f32 %v872_v39, %v819_v49 }
 0x13b   : > { %669 = vst [vmem:[%s440_s20] sm:$0xff] %v667_v50  ;;  %v659_v52 = vmul.f32 %v776_v44, %v648_v51 }
 0x13d   : > { %v668_v53 = vadd.f32 %v777_v46, %v659_v52 }
 0x13f   : > { %670 = vst [vmem:[%s440_s20 + $0x8] sm:$0xff] %v668_v53 }
 0x140   : > { %930 = shalt.err (!%p927_p7)
}
 0x141   : > { %s931_s9 = scalar_lea.hbm %s1250_s29, 256  ;;  %s935_s12 = scalar_lea.hbm %s1296_s4, 1024 }
 0x142   : > { %p932_p9 = scmp.ne.s32.totalorder %s1250_s29, %s931_s9  ;;  %p936_p12 = scmp.lt.s32.totalorder %s1250_s29, %s1296_s4 }
 0x143   : > { %p937_p13 = scmp.lt.s32.totalorder %s935_s12, %s931_s9 }
 0x144   : > { %p933_p10 = pnand %p932_p9, %p1047_p6 }
 0x145   : > { %p938_p0 = por %p937_p13, %p936_p12 }
 0x146   : > { %p934_p11 = pneg %p933_p10 }
 0x148   : > { %p939_p1 = pnand %p938_p0, %p934_p11 }
 0x14a   : > { %942 = shalt.err (!%p939_p1)
}
 0x14b   : > { %s980_s20 = smov 128   ;;  %s981_s23 = smov 512  }
 0x14c   : > { %s982_s27 = smov 8  }
 0x14d   : > { %875 = dma.vmem_to_hbm [thread:$0]  (%p1047_p6), %s1245_s22, 256, %s1250_s29, %s672_s30, %s980_s20, %s981_s23, %s982_s27  }
 0x14e PF: > { %p881_p2 = scmp.ge.s32.totalorder %s977_s18, 2  ;;  %s699_s28 = sand.u32 1, %s965_s15  }
 0x14f   : > { %s700_s5 = scalar_lea.sflag [#allocation4], %s699_s28 }
 0x150   : > { %p878_p3 = pnand %p881_p2, %p1051_p8 }
 0x152   : > { %p879_p4 = pneg %p878_p3 }
 0x154   : > { %960 = dma.done.wait (%p879_p4), %s700_s5, 256  }
 0x155   : > { %962 = vsyncadd (%p879_p4), %s700_s5, 4294967040  ;;  %p14_p5 = scmp.ge.s32.totalorder %s1033_s21, 6   ;;  %s1299_s15 = smov %s969_s16 }
 0x156   : > { %s1300_s16 = smov %s973_s17  ;;  %s1301_s17 = smov %s1045_s24 }
 0x157   : > { %s1302_s18 = smov %s1033_s21  ;;  %16 = sbr.rel (!%p14_p5) target bundleno = 3 (0x3), region = 120 }
 0x15c   :  { %705 = vsyncpa [#allocation4], 1 }
 0x15d   :  { %707 = vsyncpa [#allocation4 + $0x1], 1 }

// kernel: decoder_forward.2
= control target key start
LH: loop header
LB: loop body
LE: loop exit
PB: predicated region body
PF: predicated region fallthrough
CT: control target
= control target key end

     0   :  { %20 = vsyncpa [#allocation3], 0  ;;  %s4164_s0 = inlined_call_operand.vmem [shape: f32[16,128], index: 0, kind: input, shape index: {}]   ;;  %s4165_s1 = inlined_call_operand.vmem [shape: f32[32,128], index: 1, kind: input, shape index: {}]   ;;  %s4166_s2 = inlined_call_operand.hbm [shape: f32[32,128], index: 2, kind: input, shape index: {}]   ;;  %s4167_s3 = inlined_call_operand.hbm [shape: f32[16,16,128], index: 3, kind: input, shape index: {}]   ;;  %s4168_s4 = inlined_call_operand.hbm [shape: f32[16,16,128], index: 4, kind: input, shape index: {}]   ;;  %s4169_s5 = inlined_call_operand.vmem [shape: f32[128,128], index: 5, kind: input, shape index: {}]   ;;  %s4170_s6 = inlined_call_operand.vmem [shape: f32[1,128], index: 6, kind: input, shape index: {}]   ;;  %s4171_s7 = inlined_call_operand.vmem [shape: f32[1,128], index: 7, kind: input, shape index: {}]   ;;  %s4172_s8 = inlined_call_operand.hbm [shape: f32[384,512], index: 8, kind: input, shape index: {}]   ;;  %s4173_s9 = inlined_call_operand.vmem [shape: f32[1,512], index: 9, kind: input, shape index: {}]   ;;  %s4174_s10 = inlined_call_operand.hbm [shape: f32[256,512], index: 10, kind: input, shape index: {}]   ;;  %s4175_s11 = inlined_call_operand.vmem [shape: f32[1,512], index: 11, kind: input, shape index: {}]   ;;  %s4176_s12 = inlined_call_operand.hbm [shape: f32[32,128], index: 12, kind: output, shape index: {0}]   ;;  %s4177_s13 = inlined_call_operand.hbm [shape: f32[32,128], index: 13, kind: output, shape index: {1}]   ;;  %s4178_s14 = inlined_call_operand.vmem [shape: f32[16,384], index: 14, kind: output, shape index: {2}]  }
   0x1   :  { %21 = vsyncpa [#allocation6], 0 }
   0x2   :  { %22 = vsyncpa [#allocation9], 0 }
   0x3   :  { %23 = vsyncpa [#allocation4], 0 }
   0x4   :  { %24 = vsyncpa [#allocation13], 0  ;;  %s3206_s29 = smov [#allocation5]   ;;  %s3207_s15 = smov [#allocation8]  }
   0x5   :  { %s46_s30 = sshll.u32 %s3206_s29, 4  ;;  %s76_s16 = sshll.u32 %s3207_s15, 4  ;;  %s47_s30 = int_to_ptr.vmem [resolvable:$true] %s46_s30  ;;  %s77_s16 = int_to_ptr.vmem [resolvable:$true] %s76_s16 }
   0x6   :  { %s3064_s17 = scalar_lea.vmem %s47_s30, 4096  ;;  %p3069_p1 = scmp.lt.s32.totalorder %s47_s30, %s47_s30 }
   0x7   :  { %p3065_p0 = scmp.ne.s32.totalorder %s47_s30, %s3064_s17  ;;  %p3070_p2 = scmp.lt.s32.totalorder %s3064_s17, %s3064_s17 }
   0x9   :  { %p3071_p3 = por %p3070_p2, %p3069_p1 }
   0xb   :  { %p3072_p4 = pnand %p3071_p3, %p3065_p0 }
   0xd   :  { %3075 = shalt.err (!%p3072_p4)
}
   0xe   :  { %s3208_s18 = smov 128   ;;  %s3209_s19 = smov 8  }
   0xf   :  { %52 = dma.hbm_to_vmem [thread:$0]  %s4167_s3, 4096, %s47_s30, [#allocation6], %s3208_s18, %s3208_s18, %s3209_s19  }
  0x10   :  { %s3084_s22 = scalar_lea.vmem %s77_s16, 24576  ;;  %p3089_p6 = scmp.lt.s32.totalorder %s77_s16, %s77_s16 }
  0x11   :  { %p3085_p5 = scmp.ne.s32.totalorder %s77_s16, %s3084_s22  ;;  %p3090_p7 = scmp.lt.s32.totalorder %s3084_s22, %s3084_s22 }
  0x13   :  { %p3091_p8 = por %p3090_p7, %p3089_p6 }
  0x15   :  { %p3092_p9 = pnand %p3091_p8, %p3085_p5 }
  0x17   :  { %3095 = shalt.err (!%p3092_p9)
}
  0x18   :  { %s3210_s23 = smov 512   ;;  %s3211_s24 = smov 32  }
  0x19   :  { %82 = dma.hbm_to_vmem [thread:$0]  %s4172_s8, 24576, %s77_s16, [#allocation9], %s3210_s23, %s3210_s23, %s3211_s24  }
  0x1a   :  { %s3212_s27 = smov [#allocation2]   ;;  %s3213_s29 = smov [#allocation7]  }
  0x1b   :  { %s34_s28 = sshll.u32 %s3212_s27, 4  ;;  %s58_s3 = sshll.u32 %s3213_s29, 4  ;;  %s35_s28 = int_to_ptr.vmem [resolvable:$true] %s34_s28  ;;  %s59_s3 = int_to_ptr.vmem [resolvable:$true] %s58_s3 }
  0x1c   :  { %s3104_s30 = scalar_lea.vmem %s35_s28, 512  ;;  %p3109_p11 = scmp.lt.s32.totalorder %s35_s28, %s35_s28 }
  0x1d   :  { %p3105_p10 = scmp.ne.s32.totalorder %s35_s28, %s3104_s30  ;;  %p3110_p12 = scmp.lt.s32.totalorder %s3104_s30, %s3104_s30 }
  0x1f   :  { %p3111_p13 = por %p3110_p12, %p3109_p11 }
  0x21   :  { %p3112_p0 = pnand %p3111_p13, %p3105_p10 }
  0x23   :  { %3115 = shalt.err (!%p3112_p0)
}
  0x24   :  { %40 = dma.hbm_to_vmem [thread:$0]  %s4166_s2, 512, %s35_s28, [#allocation3], %s3208_s18, %s3208_s18, %s3209_s19  }
  0x25   :  { %s3124_s8 = scalar_lea.vmem %s59_s3, 4096  ;;  %p3129_p2 = scmp.lt.s32.totalorder %s59_s3, %s59_s3 }
  0x26   :  { %p3125_p1 = scmp.ne.s32.totalorder %s59_s3, %s3124_s8  ;;  %p3130_p3 = scmp.lt.s32.totalorder %s3124_s8, %s3124_s8 }
  0x28   :  { %p3131_p4 = por %p3130_p3, %p3129_p2 }
  0x2a   :  { %p3132_p5 = pnand %p3131_p4, %p3125_p1 }
  0x2c   :  { %3135 = shalt.err (!%p3132_p5)
}
  0x2d   :  { %64 = dma.hbm_to_vmem [thread:$0]  %s4168_s4, 4096, %s59_s3, [#allocation6], %s3208_s18, %s3208_s18, %s3209_s19  }
  0x2e   :  { %s3214_s21 = smov [#allocation10]  }
  0x2f   :  { %s90_s22 = sshll.u32 %s3214_s21, 4  ;;  %s91_s22 = int_to_ptr.vmem [resolvable:$true] %s90_s22 }
  0x30   :  { %s3144_s25 = scalar_lea.vmem %s91_s22, 16384  ;;  %p3149_p7 = scmp.lt.s32.totalorder %s91_s22, %s91_s22 }
  0x31   :  { %p3145_p6 = scmp.ne.s32.totalorder %s91_s22, %s3144_s25  ;;  %p3150_p8 = scmp.lt.s32.totalorder %s3144_s25, %s3144_s25 }
  0x33   :  { %p3151_p9 = por %p3150_p8, %p3149_p7 }
  0x35   :  { %p3152_p10 = pnand %p3151_p9, %p3145_p6 }
  0x37   :  { %3155 = shalt.err (!%p3152_p10)
}
  0x38   :  { %96 = dma.hbm_to_vmem [thread:$0]  %s4174_s10, 16384, %s91_s22, [#allocation9], %s3210_s23, %s3210_s23, %s3211_s24  }
  0x39   :  { %3196 = dma.done.wait [#allocation3], 512  }
  0x3a   :  { %3197 = vsyncadd [#allocation3], 4294966784 }
  0x3b   :  { %3198 = dma.done.wait [#allocation6], 8192  }
  0x3c   :  { %3199 = vsyncadd [#allocation6], 4294959104 }
  0x3d   :  { %3200 = dma.done.wait [#allocation9], 40960  }
  0x3e   :  { %3201 = vsyncadd [#allocation9], 4294926336  ;;  %v171_v0 = vld [vmem:[%s4169_s5 + $0x78] sm:$0xff]  ;;  %v170_v1 = vld [vmem:[%s4169_s5 + $0x70] sm:$0xff]  ;;  %v3215_v18 = vmov 1966171168   ;;  %v253_v20 = vlaneseq }
  0x3f   :  { %2806 = vmatprep.subr.mxu0 %v171_v0  ;;  %v169_v2 = vld [vmem:[%s4169_s5 + $0x68] sm:$0xff]  ;;  %v168_v3 = vld [vmem:[%s4169_s5 + $0x60] sm:$0xff]  ;;  %v150_v4 = vld [vmem:[%s4165_s1 + $0x10] sm:$0xff]  ;;  %v251_v19 = vunpack.c.l.s4 %v3215_v18  ;;  %vm708_vm0 = vcmask 130112   ;;  %vm845_vm1 = vcmask 1041409   ;;  %vm847_vm2 = vcmask 1042434  }
  0x40   :  { %2807 = vmatpush3.msra.mxu0 %v171_v0  ;;  %v167_v5 = vld [vmem:[%s4169_s5 + $0x58] sm:$0xff]  ;;  %2838 = vmatprep.mubr.f32.mxu0 %v150_v4  ;;  %v166_v6 = vld [vmem:[%s4169_s5 + $0x50] sm:$0xff]  ;;  %v165_v7 = vld [vmem:[%s4169_s5 + $0x48] sm:$0xff]  ;;  %v3380_v22 = vshrl.u32 %v253_v20, 7  ;;  %vm849_vm3 = vcmask 1043459   ;;  %vm851_vm4 = vcmask 1044484  }
  0x41   :  { %2808 = vmatprep.subr.mxu0 %v170_v1  ;;  %v164_v8 = vld [vmem:[%s4169_s5 + $0x40] sm:$0xff]  ;;  %v163_v9 = vld [vmem:[%s4169_s5 + $0x38] sm:$0xff]  ;;  %v162_v10 = vld [vmem:[%s4169_s5 + $0x30] sm:$0xff]  ;;  %v252_v21 = vunpack.c.0.s8 %v251_v19  ;;  %vm853_vm5 = vcmask 1045509   ;;  %vm855_vm6 = vcmask 1046534   ;;  %vm857_vm7 = vcmask 1047559  }
  0x42   :  { %2809 = vmatpush3.msra.mxu0 %v170_v1  ;;  %v161_v11 = vld [vmem:[%s4169_s5 + $0x28] sm:$0xff]  ;;  %v160_v12 = vld [vmem:[%s4169_s5 + $0x20] sm:$0xff]  ;;  %v159_v13 = vld [vmem:[%s4169_s5 + $0x18] sm:$0xff]  ;;  %v3387_v27 = vsub.s32 0, %v3380_v22  ;;  %vm868_vm8 = vcmask 130048  }
  0x43   :  { %2810 = vmatprep.subr.mxu0 %v169_v2  ;;  %v158_v14 = vld [vmem:[%s4169_s5 + $0x10] sm:$0xff]  ;;  %v157_v15 = vld [vmem:[%s4169_s5 + $0x8] sm:$0xff]  ;;  %v156_v16 = vld [vmem:[%s4169_s5] sm:$0xff]  ;;  %v3383_v23 = vsub.s32 %v252_v21, %v3380_v22 }
  0x44   :  { %2811 = vmatpush3.msra.mxu0 %v169_v2  ;;  %v151_v17 = vld [vmem:[%s4165_s1 + $0x18] sm:$0xff]  ;;  %v363_v32 = vld [vmem:[#allocation7 + $0x80] sm:$0xff]  ;;  %v364_v34 = vld [vmem:[#allocation7 + $0x88] sm:$0xff] }
  0x45   :  { %2812 = vmatprep.subr.mxu0 %v168_v3  ;;  %v366_v40 = vld [vmem:[#allocation7 + $0x98] sm:$0xff]  ;;  %v3403_v42 = vld [vmem:[%s4170_s6] ss:$0 sm:$0xff]  ;;  %v368_v48 = vld [vmem:[#allocation7 + $0xa8] sm:$0xff] }
  0x46   :  { %2813 = vmatpush3.msra.mxu0 %v168_v3  ;;  %v375_v55 = vld [vmem:[#allocation7 + $0xe0] sm:$0xff]  ;;  %v348_v62 = vld [vmem:[#allocation7 + $0x8] sm:$0xff]  ;;  %v349_v2 = vld [vmem:[#allocation7 + $0x10] sm:$0xff] }
  0x47   :  { %2814 = vmatprep.subr.mxu0 %v167_v5  ;;  %v347_v61 = vld [vmem:[#allocation7] sm:$0xff] }
  0x48   :  { %2815 = vmatpush3.msra.mxu0 %v167_v5  ;;  %v3438_v18 = vld [vmem:[%s4171_s7] ss:$0 sm:$0xff] }
  0x49   :  { %2816 = vmatprep.subr.mxu0 %v166_v6 }
  0x4a   :  { %2817 = vmatpush3.msra.mxu0 %v166_v6  ;;  %v350_v6 = vld [vmem:[#allocation7 + $0x18] sm:$0xff] }
  0x4b   :  { %2818 = vmatprep.subr.mxu0 %v165_v7 }
  0x4c   :  { %2819 = vmatpush3.msra.mxu0 %v165_v7 }
  0x4d   :  { %2820 = vmatprep.subr.mxu0 %v164_v8 }
  0x4e   :  { %2821 = vmatpush3.msra.mxu0 %v164_v8 }
  0x4f   :  { %2822 = vmatprep.subr.mxu0 %v163_v9 }
  0x50   :  { %2823 = vmatpush3.msra.mxu0 %v163_v9 }
  0x51   :  { %2824 = vmatprep.subr.mxu0 %v162_v10 }
  0x52   :  { %2825 = vmatpush3.msra.mxu0 %v162_v10  ;;  %v365_v10 = vld [vmem:[#allocation7 + $0x90] sm:$0xff] }
  0x53   :  { %2826 = vmatprep.subr.mxu0 %v161_v11 }
  0x54   :  { %2827 = vmatpush3.msra.mxu0 %v161_v11 }
  0x55   :  { %2828 = vmatprep.subr.mxu0 %v160_v12 }
  0x56   :  { %2829 = vmatpush3.msra.mxu0 %v160_v12 }
  0x57   :  { %2830 = vmatprep.subr.mxu0 %v159_v13 }
  0x58   :  { %2831 = vmatpush3.msra.mxu0 %v159_v13 }
  0x59   :  { %2832 = vmatprep.subr.mxu0 %v158_v14 }
  0x5a   :  { %2833 = vmatpush3.msra.mxu0 %v158_v14 }
  0x5b   :  { %2834 = vmatprep.subr.mxu0 %v157_v15 }
  0x5c   :  { %2835 = vmatpush3.msra.mxu0 %v157_v15 }
  0x5d   :  { %2836 = vmatprep.subr.mxu0 %v156_v16 }
  0x5e   :  { %2837 = vmatpush3.msra.mxu0 %v156_v16  ;;  %v352_v16 = vld [vmem:[#allocation7 + $0x28] sm:$0xff] }
  0x5f   :  { %2839 = vmatmul.mubr.f32.vlgmr.msra.gmra.mxu0 %v151_v17 }
 0x11f   :  { %v2840_v24 = vpop.f32.mrf.mxu0 }
 0x120   :  { %v298_v25 = vcombine.high %v2840_v24, %v2840_v24  ;;  %v305_v26 = vrot.slane %v2840_v24, %v3383_v23 }
 0x121   :  { %v238_v35 = vpop.f32.mrf.mxu0 }
 0x122   :  { %v313_v28 = vcombine.high %v305_v26, %v305_v26  ;;  %v321_v29 = vrot.slane %v305_v26, %v3383_v23  ;;  %v312_v30 = vrot.slane %v298_v25, %v3383_v23  ;;  %v256_v43 = vrot.slane %v238_v35, %v3383_v23 }
 0x123   :  { %v249_v57 = vcombine.high %v238_v35, %v238_v35  ;;  %v356_v35 = vld [vmem:[#allocation7 + $0x48] sm:$0xff] }
 0x124   :  { %v3392_v31 = vrot.slane %v313_v28, %v3383_v23  ;;  %v414_v33 = vrot.slane %v321_v29, %v3387_v27  ;;  %v3396_v36 = vrot.slane %v312_v30, %v3383_v23  ;;  %v343_v37 = vcombine.high %v321_v29, %v321_v29  ;;  %v367_v28 = vld [vmem:[#allocation7 + $0xa0] sm:$0xff] }
 0x125   :  { %v264_v50 = vcombine.high %v256_v43, %v256_v43  ;;  %v272_v51 = vrot.slane %v256_v43, %v3383_v23  ;;  %v314_v0 = vcombine.high %v312_v30, %v312_v30  ;;  %v263_v1 = vrot.slane %v249_v57, %v3383_v23 }
 0x126   :  { %v418_v38 = vrot.slane %v3392_v31, %v3387_v27  ;;  %v475_v39 = vadd.f32 %v414_v33, %v363_v32  ;;  %v476_v41 = vadd.f32 %v414_v33, %v364_v34  ;;  %v344_v44 = vcombine.high %v3396_v36, %v3396_v36 }
 0x127   :  { %v422_v45 = vrot.slane %v343_v37, %v3387_v27  ;;  %v3417_v56 = vrot.slane %v264_v50, %v3383_v23  ;;  %v382_v60 = vrot.slane %v272_v51, %v3387_v27  ;;  %v294_v4 = vcombine.high %v272_v51, %v272_v51  ;;  %v377_v51 = vld [vmem:[#allocation7 + $0xf0] sm:$0xff] }
 0x128   :  { %v478_v46 = vadd.f32 %v418_v38, %v366_v40  ;;  %v514_v47 = vadd.f32 %v3403_v42, %v475_v39  ;;  %v515_v49 = vadd.f32 %v3403_v42, %v476_v41  ;;  %v3413_v52 = vrot.slane %v344_v44, %v3387_v27  ;;  %v351_v44 = vld [vmem:[#allocation7 + $0x20] sm:$0xff] }
 0x129   :  { %v480_v53 = vadd.f32 %v422_v45, %v368_v48  ;;  %v386_v63 = vrot.slane %v3417_v56, %v3387_v27  ;;  %v459_v5 = vadd.f32 %v382_v60, %v347_v61  ;;  %v460_v7 = vadd.f32 %v382_v60, %v348_v62 }
 0x12a   :  { %v517_v54 = vadd.f32 %v3403_v42, %v478_v46  ;;  %2857 = vtanh.f32 %v514_v47  ;;  %v487_v58 = vadd.f32 %v3413_v52, %v375_v55  ;;  %v3427_v9 = vrot.slane %v314_v0, %v3383_v23  ;;  %v370_v46 = vld [vmem:[#allocation7 + $0xb8] sm:$0xff] }
 0x12b   :  { %2859 = vtanh.f32 %v515_v49  ;;  %v519_v59 = vadd.f32 %v3403_v42, %v480_v53  ;;  %v461_v8 = vadd.f32 %v386_v63, %v349_v2  ;;  %v3430_v11 = vrot.slane %v263_v1, %v3383_v23  ;;  %v378_v47 = vld [vmem:[#allocation7 + $0xf8] sm:$0xff] }
 0x12c   :  { %2861 = vtanh.f32 %v517_v54  ;;  %v526_v3 = vadd.f32 %v3403_v42, %v487_v58  ;;  %v390_v12 = vrot.slane %v294_v4, %v3387_v27  ;;  %v462_v13 = vadd.f32 %v386_v63, %v350_v6  ;;  %v355_v58 = vld [vmem:[#allocation7 + $0x40] sm:$0xff]  ;;  %v354_v0 = vld [vmem:[#allocation7 + $0x38] sm:$0xff] }
 0x12d   :  { %2863 = vtanh.f32 %v519_v59  ;;  %v498_v14 = vadd.f32 %v3403_v42, %v459_v5  ;;  %v499_v17 = vadd.f32 %v3403_v42, %v460_v7  ;;  %v477_v21 = vadd.f32 %v418_v38, %v365_v10 }
 0x12e   :  { %2865 = vtanh.f32 %v526_v3  ;;  %v500_v24 = vadd.f32 %v3403_v42, %v461_v8  ;;  %v345_v25 = vcombine.high %v3392_v31, %v3392_v31  ;;  %v346_v26 = vcombine.high %v3427_v9, %v3427_v9 }
 0x12f   :  { %v398_v29 = vrot.slane %v3430_v11, %v3387_v27  ;;  %v464_v30 = vadd.f32 %v390_v12, %v352_v16  ;;  %v501_v32 = vadd.f32 %v3403_v42, %v462_v13  ;;  %2867 = vtanh.f32 %v498_v14  ;;  %v358_v13 = vld [vmem:[#allocation7 + $0x58] sm:$0xff] }
 0x130   :  { %2869 = vtanh.f32 %v499_v17  ;;  %v479_v38 = vadd.f32 %v422_v45, %v367_v28  ;;  %v516_v31 = vadd.f32 %v3403_v42, %v477_v21  ;;  %v426_v39 = vrot.slane %v345_v25, %v3387_v27  ;;  %v353_v21 = vld [vmem:[#allocation7 + $0x30] sm:$0xff] }
 0x131   :  { %2871 = vtanh.f32 %v500_v24  ;;  %v442_v40 = vrot.slane %v346_v26, %v3387_v27  ;;  %v265_v41 = vcombine.high %v263_v1, %v263_v1  ;;  %v296_v43 = vcombine.high %v3417_v56, %v3417_v56 }
 0x132   :  { %v468_v48 = vadd.f32 %v398_v29, %v356_v35  ;;  %v503_v49 = vadd.f32 %v3403_v42, %v464_v30  ;;  %2873 = vtanh.f32 %v501_v32  ;;  %v518_v53 = vadd.f32 %v3403_v42, %v479_v38  ;;  %v360_v30 = vld [vmem:[#allocation7 + $0x68] sm:$0xff] }
 0x133   :  { %2875 = vtanh.f32 %v516_v31  ;;  %v463_v54 = vadd.f32 %v390_v12, %v351_v44  ;;  %v482_v55 = vadd.f32 %v426_v39, %v370_v46  ;;  %v490_v57 = vadd.f32 %v442_v40, %v378_v47 }
 0x134   :  { %v293_v56 = vrot.slane %v265_v41, %v3383_v23  ;;  %v394_v59 = vrot.slane %v296_v43, %v3387_v27  ;;  %v507_v60 = vadd.f32 %v3403_v42, %v468_v48  ;;  %2877 = vtanh.f32 %v503_v49  ;;  %v369_v23 = vld [vmem:[#allocation7 + $0xb0] sm:$0xff]  ;;  %v362_v43 = vld [vmem:[#allocation7 + $0x78] sm:$0xff] }
 0x135   :  { %v489_v63 = vadd.f32 %v442_v40, %v377_v51  ;;  %2879 = vtanh.f32 %v518_v53  ;;  %v467_v1 = vadd.f32 %v398_v29, %v355_v58  ;;  %v502_v2 = vadd.f32 %v3403_v42, %v463_v54 }
 0x136   :  { %v521_v4 = vadd.f32 %v3403_v42, %v482_v55  ;;  %v295_v5 = vcombine.high %v3430_v11, %v3430_v11  ;;  %v529_v6 = vadd.f32 %v3403_v42, %v490_v57  ;;  %v402_v7 = vrot.slane %v293_v56, %v3387_v27  ;;  %v372_v55 = vld [vmem:[#allocation7 + $0xc8] sm:$0xff]  ;;  %v361_v57 = vld [vmem:[#allocation7 + $0x70] sm:$0xff] }
 0x137   :  { %v2858_v15 = vpop.eup %2857  ;;  %v466_v8 = vadd.f32 %v394_v59, %v354_v0  ;;  %2881 = vtanh.f32 %v507_v60  ;;  %v528_v12 = vadd.f32 %v3403_v42, %v489_v63  ;;  %v506_v16 = vadd.f32 %v3403_v42, %v467_v1 }
 0x138   :  { %v2860_v19 = vpop.eup %2859  ;;  %v585_v37 = vmul.f32 %v2858_v15, %v3438_v18  ;;  %v481_v15 = vadd.f32 %v426_v39, %v369_v23  ;;  %2883 = vtanh.f32 %v502_v2  ;;  %v297_v11 = vcombine.high %v293_v56, %v293_v56  ;;  %v374_v2 = vld [vmem:[#allocation7 + $0xd8] sm:$0xff] }
 0x139   :  { %v586_v33 = vmul.f32 %v2860_v19, %v3438_v18  ;;  %v2862_v34 = vpop.eup %2861  ;;  %2885 = vtanh.f32 %v521_v4  ;;  %v406_v24 = vrot.slane %v295_v5, %v3387_v27  ;;  %v470_v25 = vadd.f32 %v402_v7, %v358_v13 }
 0x13a   :  { %633 = vadd.xlane.f32.xlu0 %v585_v37  ;;  %v588_v45 = vmul.f32 %v2862_v34, %v3438_v18  ;;  %v2864_v50 = vpop.eup %2863  ;;  %v505_v26 = vadd.f32 %v3403_v42, %v466_v8  ;;  %2887 = vtanh.f32 %v529_v6  ;;  %v520_v32 = vadd.f32 %v3403_v42, %v481_v15  ;;  %v357_v37 = vld [vmem:[#allocation7 + $0x50] sm:$0xff]  ;;  %v371_v8 = vld [vmem:[#allocation7 + $0xc0] sm:$0xff] }
 0x13b   :  { %635 = vadd.xlane.f32.xlu1 %v586_v33  ;;  %v590_v61 = vmul.f32 %v2864_v50, %v3438_v18  ;;  %v2866_v62 = vpop.eup %2865  ;;  %2889 = vtanh.f32 %v528_v12  ;;  %v465_v33 = vadd.f32 %v394_v59, %v353_v21  ;;  %v410_v38 = vrot.slane %v297_v11, %v3387_v27 }
 0x13c   :  { %v3464_v3 = vmul.f32 %v2866_v62, %v3438_v18  ;;  %v2868_v10 = vpop.eup %2867  ;;  %2891 = vtanh.f32 %v506_v16  ;;  %v472_v31 = vadd.f32 %v406_v24, %v360_v30  ;;  %v509_v39 = vadd.f32 %v3403_v42, %v470_v25  ;;  %v376_v16 = vld [vmem:[#allocation7 + $0xe8] sm:$0xff] }
 0x13d   :  { %v2870_v14 = vpop.eup %2869  ;;  %v569_v17 = vmul.f32 %v2868_v10, %v3438_v18  ;;  %2893 = vtanh.f32 %v505_v26  ;;  %v469_v44 = vadd.f32 %v402_v7, %v357_v37  ;;  %v504_v46 = vadd.f32 %v3403_v42, %v465_v33 }
 0x13e   :  { %v2872_v19 = vpop.eup %2871  ;;  %v570_v34 = vmul.f32 %v2870_v14, %v3438_v18  ;;  %2895 = vtanh.f32 %v520_v32  ;;  %v430_v49 = vrot.slane %v3396_v36, %v3387_v27  ;;  %v474_v50 = vadd.f32 %v410_v38, %v362_v43 }
 0x13f   :  { %639 = vadd.xlane.f32.xlu1 %v588_v45  ;;  %601 = vadd.xlane.f32.xlu0 %v569_v17  ;;  %v571_v28 = vmul.f32 %v2872_v19, %v3438_v18  ;;  %v2874_v29 = vpop.eup %2873  ;;  %v359_v45 = vld [vmem:[#allocation7 + $0x60] sm:$0xff]  ;;  %v511_v51 = vadd.f32 %v3403_v42, %v472_v31  ;;  %2897 = vtanh.f32 %v509_v39  ;;  %v508_v58 = vadd.f32 %v3403_v42, %v469_v44 }
 0x140   :  { %v2876_v35 = vpop.eup %2875  ;;  %v572_v40 = vmul.f32 %v2874_v29, %v3438_v18  ;;  %v471_v56 = vadd.f32 %v406_v24, %v359_v45  ;;  %2899 = vtanh.f32 %v504_v46  ;;  %v434_v36 = vrot.slane %v3427_v9, %v3387_v27  ;;  %v373_v24 = vld [vmem:[#allocation7 + $0xd0] sm:$0xff] }
 0x141   :  { %v2878_v41 = vpop.eup %2877  ;;  %v587_v47 = vmul.f32 %v2876_v35, %v3438_v18  ;;  %v484_v62 = vadd.f32 %v430_v49, %v372_v55  ;;  %v513_v63 = vadd.f32 %v3403_v42, %v474_v50  ;;  %2901 = vtanh.f32 %v511_v51 }
 0x142   :  { %v2880_v48 = vpop.eup %2879  ;;  %v574_v53 = vmul.f32 %v2878_v41, %v3438_v18  ;;  %v473_v23 = vadd.f32 %v410_v38, %v361_v57  ;;  %v510_v5 = vadd.f32 %v3403_v42, %v471_v56  ;;  %2903 = vtanh.f32 %v508_v58 }
 0x143   :  { %643 = vadd.xlane.f32.xlu1 %v590_v61  ;;  %603 = vadd.xlane.f32.xlu0 %v570_v34  ;;  %v589_v59 = vmul.f32 %v2880_v48, %v3438_v18  ;;  %v486_v12 = vadd.f32 %v434_v36, %v374_v2  ;;  %v523_v13 = vadd.f32 %v3403_v42, %v484_v62  ;;  %2905 = vtanh.f32 %v513_v63 }
 0x144   :  { %v2882_v54 = vpop.eup %2881  ;;  %v483_v17 = vadd.f32 %v430_v49, %v371_v8  ;;  %v512_v19 = vadd.f32 %v3403_v42, %v473_v23  ;;  %2907 = vtanh.f32 %v510_v5  ;;  %v488_v25 = vadd.f32 %v3413_v52, %v376_v16 }
 0x145   :  { %v2884_v60 = vpop.eup %2883  ;;  %v578_v0 = vmul.f32 %v2882_v54, %v3438_v18  ;;  %v525_v26 = vadd.f32 %v3403_v42, %v486_v12  ;;  %2909 = vtanh.f32 %v523_v13  ;;  %v485_v30 = vadd.f32 %v434_v36, %v373_v24 }
 0x146   :  { %v2886_v61 = vpop.eup %2885  ;;  %v573_v6 = vmul.f32 %v2884_v60, %v3438_v18  ;;  %v522_v32 = vadd.f32 %v3403_v42, %v483_v17  ;;  %2911 = vtanh.f32 %v512_v19  ;;  %v527_v35 = vadd.f32 %v3403_v42, %v488_v25 }
 0x147   :  { %605 = vadd.xlane.f32.xlu1 %v571_v28  ;;  %637 = vadd.xlane.f32.xlu0 %v587_v47  ;;  %v2888_v1 = vpop.eup %2887  ;;  %v592_v14 = vmul.f32 %v2886_v61, %v3438_v18  ;;  %2913 = vtanh.f32 %v525_v26  ;;  %v524_v38 = vadd.f32 %v3403_v42, %v485_v30 }
 0x148   :  { %v2890_v4 = vpop.eup %2889  ;;  %v3497_v9 = vmul.f32 %v2888_v1, %v3438_v18  ;;  %2915 = vtanh.f32 %v522_v32 }
 0x149   :  { %v2892_v7 = vpop.eup %2891  ;;  %v3500_v10 = vmul.f32 %v2890_v4, %v3438_v18  ;;  %2917 = vtanh.f32 %v527_v35 }
 0x14a   :  { %v2894_v15 = vpop.eup %2893  ;;  %v577_v11 = vmul.f32 %v2892_v7, %v3438_v18  ;;  %2919 = vtanh.f32 %v524_v38 }
 0x14b   :  { %607 = vadd.xlane.f32.xlu1 %v572_v40  ;;  %641 = vadd.xlane.f32.xlu0 %v589_v59  ;;  %v2896_v21 = vpop.eup %2895  ;;  %v576_v28 = vmul.f32 %v2894_v15, %v3438_v18 }
 0x14c   :  { %v2898_v29 = vpop.eup %2897  ;;  %v591_v33 = vmul.f32 %v2896_v21, %v3438_v18 }
 0x14d   :  { %v2900_v34 = vpop.eup %2899  ;;  %v580_v52 = vmul.f32 %v2898_v29, %v3438_v18 }
 0x14e   :  { %v2902_v37 = vpop.eup %2901  ;;  %v575_v31 = vmul.f32 %v2900_v34, %v3438_v18 }
 0x14f   :  { %611 = vadd.xlane.f32.xlu1 %v574_v53  ;;  %609 = vadd.xlane.f32.xlu0 %v573_v6  ;;  %v2904_v39 = vpop.eup %2903  ;;  %v582_v40 = vmul.f32 %v2902_v37, %v3438_v18  ;;  %v698_v6 = vand.u32 127, %v253_v20 }
 0x150   :  { %v2906_v41 = vpop.eup %2905  ;;  %v579_v43 = vmul.f32 %v2904_v39, %v3438_v18 }
 0x151   :  { %v2908_v44 = vpop.eup %2907  ;;  %v584_v46 = vmul.f32 %v2906_v41, %v3438_v18  ;;  %v703_v8 = vadd.s32 4294967288, %v698_v6 }
 0x152   :  { %v2910_v47 = vpop.eup %2909  ;;  %v581_v42 = vmul.f32 %v2908_v44, %v3438_v18 }
 0x153   :  { %619 = vadd.xlane.f32.xlu1 %v578_v0  ;;  %617 = vadd.xlane.f32.xlu0 %v577_v11  ;;  %v2912_v48 = vpop.eup %2911  ;;  %v594_v49 = vmul.f32 %v2910_v47, %v3438_v18  ;;  %v3566_v13 = vsub.s32 %v703_v8, %v3380_v22 }
 0x154   :  { %v2914_v45 = vpop.eup %2913  ;;  %v583_v50 = vmul.f32 %v2912_v48, %v3438_v18 }
 0x155   :  { %v2916_v51 = vpop.eup %2915  ;;  %v596_v53 = vmul.f32 %v2914_v45, %v3438_v18 }
 0x156   :  { %v2918_v54 = vpop.eup %2917  ;;  %v593_v55 = vmul.f32 %v2916_v51, %v3438_v18 }
 0x157   :  { %647 = vadd.xlane.f32.xlu1 %v592_v14  ;;  %645 = vadd.xlane.f32.xlu0 %v591_v33  ;;  %v2920_v57 = vpop.eup %2919  ;;  %v598_v56 = vmul.f32 %v2918_v54, %v3438_v18  ;;  %v3569_v14 = vsub.s32 %v698_v6, %v3380_v22 }
 0x158   :  { %v595_v58 = vmul.f32 %v2920_v57, %v3438_v18 }
 0x15b   :  { %615 = vadd.xlane.f32.xlu1 %v576_v28  ;;  %613 = vadd.xlane.f32.xlu0 %v575_v31 }
 0x15f   :  { %623 = vadd.xlane.f32.xlu1 %v580_v52  ;;  %621 = vadd.xlane.f32.xlu0 %v579_v43 }
 0x163   :  { %627 = vadd.xlane.f32.xlu1 %v582_v40  ;;  %625 = vadd.xlane.f32.xlu0 %v581_v42 }
 0x167   :  { %631 = vadd.xlane.f32.xlu1 %v584_v46  ;;  %629 = vadd.xlane.f32.xlu0 %v583_v50 }
 0x16b   :  { %651 = vadd.xlane.f32.xlu1 %v594_v49  ;;  %649 = vadd.xlane.f32.xlu0 %v593_v55 }
 0x16f   :  { %655 = vadd.xlane.f32.xlu1 %v596_v53  ;;  %653 = vadd.xlane.f32.xlu0 %v595_v58 }
 0x173   :  { %659 = vadd.xlane.f32.xlu1 %v598_v56  ;;  %657 = vadd.xlane.f32.xlu0 %v3464_v3 }
 0x177   :  { %663 = vadd.xlane.f32.xlu1 %v3497_v9  ;;  %661 = vadd.xlane.f32.xlu0 %v3500_v10 }
 0x1c3   :  { %v3532_v36 = vpop.xlane.xlu0 %633 }
 0x1c4   :  { %v3528_v59 = vpop.xlane.xlu1 %635 }
 0x1c8   :  { %v3530_v60 = vpop.xlane.xlu1 %639  ;;  %v3536_v62 = vpop.xlane.xlu0 %601 }
 0x1c9   :  { %v702_v28 = vrot.slane %v3536_v62, %v3569_v14 }
 0x1cc   :  { %v3534_v61 = vpop.xlane.xlu1 %643  ;;  %v3540_v18 = vpop.xlane.xlu0 %603 }
 0x1cd   :  { %v707_v11 = vrot.slane %v3540_v18, %v3566_v13 }
 0x1cf   :  { %v709_v33 = vsel %vm708_vm0, %v707_v11, %v702_v28 }
 0x1d0   :  { %v3538_v63 = vpop.xlane.xlu1 %605  ;;  %v3544_v1 = vpop.xlane.xlu0 %637 }
 0x1d1   :  { %v713_v21 = vrot.slane %v3538_v63, %v3569_v14 }
 0x1d4   :  { %v3542_v0 = vpop.xlane.xlu1 %607  ;;  %v3548_v2 = vpop.xlane.xlu0 %641 }
 0x1d5   :  { %v717_v20 = vrot.slane %v3542_v0, %v3566_v13 }
 0x1d7   :  { %v718_v29 = vsel %vm708_vm0, %v717_v20, %v713_v21  ;;  %v785_v20 = vrot.slane %v3544_v1, %v3569_v14  ;;  %v776_v21 = vrot.slane %v3532_v36, %v3569_v14 }
 0x1d8   :  { %v3546_v3 = vpop.xlane.xlu1 %611  ;;  %v3552_v4 = vpop.xlane.xlu0 %609  ;;  %v846_v37 = vsel %vm845_vm1, %v718_v29, %v709_v33  ;;  %v798_v29 = vrot.slane %v3534_v61, %v3566_v13 }
 0x1d9   :  { %v722_v16 = vrot.slane %v3552_v4, %v3569_v14  ;;  %v726_v17 = vrot.slane %v3546_v3, %v3566_v13 }
 0x1db   :  { %v727_v30 = vsel %vm708_vm0, %v726_v17, %v722_v16  ;;  %v780_v16 = vrot.slane %v3528_v59, %v3566_v13  ;;  %v794_v17 = vrot.slane %v3548_v2, %v3569_v14 }
 0x1dc   :  { %v3550_v23 = vpop.xlane.xlu1 %619  ;;  %v3557_v9 = vpop.xlane.xlu0 %617  ;;  %v848_v41 = vsel %vm847_vm2, %v727_v30, %v846_v37 }
 0x1dd   :  { %v744_v38 = vrot.slane %v3550_v23, %v3566_v13  ;;  %v740_v31 = vrot.slane %v3557_v9, %v3569_v14  ;;  %v799_v37 = vsel %vm708_vm0, %v798_v29, %v794_v17 }
 0x1df   :  { %v745_v48 = vsel %vm708_vm0, %v744_v38, %v740_v31 }
 0x1e0   :  { %v3554_v5 = vpop.xlane.xlu1 %647  ;;  %v3561_v10 = vpop.xlane.xlu0 %645 }
 0x1e1   :  { %v803_v28 = vrot.slane %v3561_v10, %v3569_v14 }
 0x1e4   :  { %v3559_v7 = vpop.xlane.xlu1 %615  ;;  %v3571_v15 = vpop.xlane.xlu0 %613 }
 0x1e5   :  { %v735_v24 = vrot.slane %v3559_v7, %v3566_v13  ;;  %v731_v25 = vrot.slane %v3571_v15, %v3569_v14 }
 0x1e7   :  { %v736_v34 = vsel %vm708_vm0, %v735_v24, %v731_v25  ;;  %v789_v24 = vrot.slane %v3530_v60, %v3566_v13  ;;  %v807_v25 = vrot.slane %v3554_v5, %v3566_v13 }
 0x1e8   :  { %v3563_v12 = vpop.xlane.xlu1 %623  ;;  %v3589_v26 = vpop.xlane.xlu0 %621  ;;  %v850_v44 = vsel %vm849_vm3, %v736_v34, %v848_v41  ;;  %v781_v41 = vsel %vm708_vm0, %v780_v16, %v776_v21 }
 0x1e9   :  { %v753_v35 = vrot.slane %v3563_v12, %v3566_v13  ;;  %v749_v52 = vrot.slane %v3589_v26, %v3569_v14  ;;  %v852_v51 = vsel %vm851_vm4, %v745_v48, %v850_v44  ;;  %v790_v34 = vsel %vm708_vm0, %v789_v24, %v785_v20 }
 0x1ea   :  { %v3216_v24 = vmov 0  }
 0x1eb   :  { %v754_v47 = vsel %vm708_vm0, %v753_v35, %v749_v52  ;;  %2856 = vset.pattern.permute.xlu0 %v3216_v24  ;;  %2855 = vset.pattern.permute.xlu1 %v3216_v24 }
 0x1ec   :  { %v3579_v19 = vpop.xlane.xlu1 %627  ;;  %v3610_v40 = vpop.xlane.xlu0 %625  ;;  %v854_v53 = vsel %vm853_vm5, %v754_v47, %v852_v51  ;;  %v859_v47 = vsel %vm845_vm1, %v790_v34, %v781_v41  ;;  %v3714_v41 = vsub.s32 3, %v3380_v22 }
 0x1ed   :  { %v762_v39 = vrot.slane %v3579_v19, %v3566_v13  ;;  %v758_v43 = vrot.slane %v3610_v40, %v3569_v14  ;;  %v860_v48 = vsel %vm847_vm2, %v799_v37, %v859_v47 }
 0x1ef   :  { %v763_v45 = vsel %vm708_vm0, %v762_v39, %v758_v43  ;;  %v808_v43 = vsel %vm708_vm0, %v807_v25, %v803_v28  ;;  %v3698_v28 = vsub.s32 1, %v3380_v22 }
 0x1f0   :  { %v3595_v32 = vpop.xlane.xlu1 %631  ;;  %v3622_v49 = vpop.xlane.xlu0 %629  ;;  %v856_v57 = vsel %vm855_vm6, %v763_v45, %v854_v53  ;;  %v861_v51 = vsel %vm849_vm3, %v808_v43, %v860_v48 }
 0x1f1   :  { %v771_v42 = vrot.slane %v3595_v32, %v3566_v13  ;;  %v767_v50 = vrot.slane %v3622_v49, %v3569_v14 }
 0x1f3   :  { %v772_v55 = vsel %vm708_vm0, %v771_v42, %v767_v50 }
 0x1f4   :  { %v3616_v46 = vpop.xlane.xlu1 %651  ;;  %v3633_v56 = vpop.xlane.xlu0 %649  ;;  %v858_v58 = vsel %vm857_vm7, %v772_v55, %v856_v57 }
 0x1f5   :  { %v869_v6 = vsel %vm868_vm8, %v858_v58, -inf  ;;  %v816_v30 = vrot.slane %v3616_v46, %v3566_v13  ;;  %v812_v33 = vrot.slane %v3633_v56, %v3569_v14 }
 0x1f6   :  { %870 = vmax.xlane.f32.xlu0 %v869_v6 }
 0x1f7   :  { %v817_v42 = vsel %vm708_vm0, %v816_v30, %v812_v33  ;;  %v3705_v33 = vsub.s32 2, %v3380_v22 }
 0x1f8   :  { %v3629_v54 = vpop.xlane.xlu1 %655  ;;  %v3645_v11 = vpop.xlane.xlu0 %653  ;;  %v862_v58 = vsel %vm851_vm4, %v817_v42, %v861_v51  ;;  %v3723_v51 = vsub.s32 4, %v3380_v22 }
 0x1f9   :  { %v825_v35 = vrot.slane %v3629_v54, %v3566_v13  ;;  %v821_v52 = vrot.slane %v3645_v11, %v3569_v14 }
 0x1fb   :  { %v826_v45 = vsel %vm708_vm0, %v825_v35, %v821_v52 }
 0x1fc   :  { %v3637_v8 = vpop.xlane.xlu1 %659  ;;  %v3669_v31 = vpop.xlane.xlu0 %657  ;;  %v863_v6 = vsel %vm853_vm5, %v826_v45, %v862_v58 }
 0x1fd   :  { %v834_v38 = vrot.slane %v3637_v8, %v3566_v13  ;;  %v830_v44 = vrot.slane %v3669_v31, %v3569_v14 }
 0x1ff   :  { %v835_v55 = vsel %vm708_vm0, %v834_v38, %v830_v44 }
 0x200   :  { %v3671_v39 = vpop.xlane.xlu1 %663  ;;  %v3684_v53 = vpop.xlane.xlu0 %661  ;;  %v864_v16 = vsel %vm855_vm6, %v835_v55, %v863_v6 }
 0x201   :  { %v843_v50 = vrot.slane %v3671_v39, %v3566_v13  ;;  %v839_v57 = vrot.slane %v3684_v53, %v3569_v14 }
 0x203   :  { %v844_v20 = vsel %vm708_vm0, %v843_v50, %v839_v57  ;;  %v3727_v57 = vsub.s32 5, %v3380_v22 }
 0x204   :  { %v865_v17 = vsel %vm857_vm7, %v844_v20, %v864_v16 }
 0x205   :  { %v872_v21 = vsel %vm868_vm8, %v865_v17, -inf }
 0x206   :  { %873 = vmax.xlane.f32.xlu1 %v872_v21 }
 0x28f   :  { %v3695_v25 = vpop.xlane.xlu1 %873 }
 0x290   :  { %v912_v29 = vrot.slane %v3695_v25, %v3387_v27  ;;  %v916_v30 = vrot.slane %v3695_v25, %v3698_v28  ;;  %v920_v52 = vrot.slane %v3695_v25, %v3705_v33  ;;  %v924_v47 = vrot.slane %v3695_v25, %v3714_v41 }
 0x292   :  { %v973_v34 = vsub.f32 %v3532_v36, %v912_v29  ;;  %v974_v35 = vsub.f32 %v3528_v59, %v912_v29  ;;  %v975_v37 = vsub.f32 %v3544_v1, %v916_v30  ;;  %v976_v38 = vsub.f32 %v3530_v60, %v916_v30  ;;  %v871_v59 = vpop.xlane.xlu0 %870 }
 0x293   :  { %v977_v42 = vsub.f32 %v3548_v2, %v920_v52  ;;  %v978_v48 = vsub.f32 %v3534_v61, %v920_v52  ;;  %v880_v1 = vrot.slane %v871_v59, %v3387_v27  ;;  %v979_v60 = vsub.f32 %v3561_v10, %v924_v47 }
 0x294   :  { %v1021_v43 = vmul.f32 1.442695, %v973_v34  ;;  %v1023_v44 = vmul.f32 1.442695, %v974_v35  ;;  %v1025_v36 = vmul.f32 1.442695, %v975_v37  ;;  %v980_v55 = vsub.f32 %v3554_v5, %v924_v47 }
 0x295   :  { %v1027_v45 = vmul.f32 1.442695, %v976_v38  ;;  %v1029_v50 = vmul.f32 1.442695, %v977_v42  ;;  %v1031_v2 = vmul.f32 1.442695, %v978_v48  ;;  %v884_v61 = vrot.slane %v871_v59, %v3698_v28 }
 0x296   :  { %2921 = vpow2.f32 %v1021_v43  ;;  %v958_v58 = vsub.f32 %v3540_v18, %v880_v1  ;;  %v1033_v6 = vmul.f32 1.442695, %v979_v60  ;;  %v3732_v10 = vrot.slane %v871_v59, %v3723_v51 }
 0x297   :  { %2923 = vpow2.f32 %v1023_v44  ;;  %v957_v20 = vsub.f32 %v3536_v62, %v880_v1  ;;  %v1035_v16 = vmul.f32 1.442695, %v980_v55  ;;  %v3736_v5 = vsub.s32 6, %v3380_v22 }
 0x298   :  { %2925 = vpow2.f32 %v1025_v36  ;;  %v959_v17 = vsub.f32 %v3538_v63, %v884_v61  ;;  %v991_v21 = vmul.f32 1.442695, %v958_v58  ;;  %v3742_v18 = vrot.slane %v871_v59, %v3727_v57 }
 0x299   :  { %2927 = vpow2.f32 %v1027_v45  ;;  %v966_v29 = vsub.f32 %v3550_v23, %v3732_v10  ;;  %v989_v30 = vmul.f32 1.442695, %v957_v20  ;;  %v3750_v34 = vsub.s32 7, %v3380_v22 }
 0x29a   :  { %2929 = vpow2.f32 %v1029_v50  ;;  %v888_v63 = vrot.slane %v871_v59, %v3705_v33  ;;  %v960_v35 = vsub.f32 %v3542_v0, %v884_v61  ;;  %v993_v52 = vmul.f32 1.442695, %v959_v17 }
 0x29b   :  { %2931 = vpow2.f32 %v1031_v2  ;;  %4191 = vst [vmem:[#allocation19_spill] sm:$0xff] %v3750_v34  ;;  %v3758_v23 = vrot.slane %v871_v59, %v3736_v5  ;;  %v968_v38 = vsub.f32 %v3563_v12, %v3742_v18  ;;  %v1007_v43 = vmul.f32 1.442695, %v966_v29 }
 0x29c   :  { %2933 = vpow2.f32 %v1033_v6  ;;  %v961_v0 = vsub.f32 %v3552_v4, %v888_v63  ;;  %v995_v44 = vmul.f32 1.442695, %v960_v35  ;;  %v3770_v42 = vrot.slane %v871_v59, %v3750_v34 }
 0x29d   :  { %2935 = vpow2.f32 %v1035_v16  ;;  %v970_v12 = vsub.f32 %v3579_v19, %v3758_v23  ;;  %v1011_v36 = vmul.f32 1.442695, %v968_v38  ;;  %v892_v4 = vrot.slane %v871_v59, %v3714_v41 }
 0x29e   :  { %2937 = vpow2.f32 %v991_v21  ;;  %v962_v45 = vsub.f32 %v3546_v3, %v888_v63  ;;  %v997_v1 = vmul.f32 1.442695, %v961_v0  ;;  %v972_v50 = vsub.f32 %v3595_v32, %v3770_v42 }
 0x29f   :  { %2939 = vpow2.f32 %v989_v30  ;;  %v1015_v19 = vmul.f32 1.442695, %v970_v12  ;;  %v3786_v55 = vrot.slane %v3695_v25, %v3723_v51  ;;  %v963_v3 = vsub.f32 %v3571_v15, %v892_v4 }
 0x2a0   :  { %2941 = vpow2.f32 %v993_v52  ;;  %v999_v59 = vmul.f32 1.442695, %v962_v45  ;;  %v1019_v32 = vmul.f32 1.442695, %v972_v50  ;;  %v3797_v58 = vrot.slane %v3695_v25, %v3727_v57 }
 0x2a1   :  { %2943 = vpow2.f32 %v1007_v43  ;;  %v982_v6 = vsub.f32 %v3616_v46, %v3786_v55  ;;  %v964_v15 = vsub.f32 %v3559_v7, %v892_v4  ;;  %v1001_v16 = vmul.f32 1.442695, %v963_v3 }
 0x2a2   :  { %2945 = vpow2.f32 %v995_v44  ;;  %v3810_v21 = vrot.slane %v3695_v25, %v3736_v5  ;;  %v984_v46 = vsub.f32 %v3629_v54, %v3797_v58  ;;  %v965_v7 = vsub.f32 %v3557_v9, %v3732_v10 }
 0x2a3   :  { %v3739_v24 = vpop.eup %2921  ;;  %2947 = vpow2.f32 %v1011_v36  ;;  %v1039_v29 = vmul.f32 1.442695, %v982_v6  ;;  %v1003_v63 = vmul.f32 1.442695, %v964_v15  ;;  %v940_v52 = vrot.slane %v3695_v25, %v3750_v34 }
 0x2a4   :  { %v3746_v62 = vpop.eup %2923  ;;  %1134 = vperm.xlu1 %2855, %v3739_v24   ;;  %2949 = vpow2.f32 %v997_v1  ;;  %v986_v54 = vsub.f32 %v3637_v8, %v3810_v21  ;;  %v1043_v38 = vmul.f32 1.442695, %v984_v46  ;;  %v967_v9 = vsub.f32 %v3589_v26, %v3742_v18 }
 0x2a5   :  { %1137 = vperm.xlu0 %2856, %v3746_v62   ;;  %v3755_v37 = vpop.eup %2925  ;;  %2951 = vpow2.f32 %v1015_v19  ;;  %v1005_v10 = vmul.f32 1.442695, %v965_v7  ;;  %v988_v25 = vsub.f32 %v3671_v39, %v940_v52  ;;  %v969_v12 = vsub.f32 %v3610_v40, %v3758_v23 }
 0x2a6   :  { %v3762_v22 = vpop.eup %2927  ;;  %2953 = vpow2.f32 %v999_v59  ;;  %v1047_v44 = vmul.f32 1.442695, %v986_v54  ;;  %v1009_v36 = vmul.f32 1.442695, %v967_v9  ;;  %v971_v39 = vsub.f32 %v3622_v49, %v3770_v42 }
 0x2a7   :  { %v3767_v47 = vpop.eup %2929  ;;  %2955 = vpow2.f32 %v1019_v32  ;;  %v1051_v18 = vmul.f32 1.442695, %v988_v25  ;;  %v1013_v45 = vmul.f32 1.442695, %v969_v12  ;;  %v981_v50 = vsub.f32 %v3633_v56, %v3786_v55 }
 0x2a8   :  { %1140 = vperm.xlu1 %2855, %v3755_v37   ;;  %v3774_v48 = vpop.eup %2931  ;;  %2957 = vpow2.f32 %v1001_v16  ;;  %v1017_v23 = vmul.f32 1.442695, %v971_v39  ;;  %v983_v49 = vsub.f32 %v3645_v11, %v3797_v58  ;;  %v985_v56 = vsub.f32 %v3669_v31, %v3810_v21 }
 0x2a9   :  { %1143 = vperm.xlu0 %2856, %v3762_v22   ;;  %v3780_v60 = vpop.eup %2933  ;;  %2959 = vpow2.f32 %v1039_v29  ;;  %v1037_v42 = vmul.f32 1.442695, %v981_v50  ;;  %v987_v11 = vsub.f32 %v3684_v53, %v940_v52 }
 0x2aa   :  { %v3788_v2 = vpop.eup %2935  ;;  %2961 = vpow2.f32 %v1003_v63  ;;  %v1041_v55 = vmul.f32 1.442695, %v983_v49  ;;  %v1045_v58 = vmul.f32 1.442695, %v985_v56 }
 0x2ab   :  { %v3793_v61 = vpop.eup %2937  ;;  %2963 = vpow2.f32 %v1043_v38  ;;  %v1049_v31 = vmul.f32 1.442695, %v987_v11 }
 0x2ac   :  { %1146 = vperm.xlu1 %2855, %v3767_v47   ;;  %v3801_v20 = vpop.eup %2939  ;;  %2965 = vpow2.f32 %v1005_v10 }
 0x2ad   :  { %1149 = vperm.xlu0 %2856, %v3774_v48   ;;  %v3806_v17 = vpop.eup %2941  ;;  %2967 = vpow2.f32 %v1047_v44 }
 0x2ae   :  { %v3814_v30 = vpop.eup %2943  ;;  %2969 = vpow2.f32 %v1009_v36 }
 0x2af   :  { %v3820_v35 = vpop.eup %2945  ;;  %2971 = vpow2.f32 %v1051_v18 }
 0x2b0   :  { %1152 = vperm.xlu1 %2855, %v3780_v60   ;;  %v3826_v43 = vpop.eup %2947  ;;  %2973 = vpow2.f32 %v1013_v45 }
 0x2b1   :  { %1155 = vperm.xlu0 %2856, %v3788_v2   ;;  %v3832_v0 = vpop.eup %2949  ;;  %2975 = vpow2.f32 %v1017_v23 }
 0x2b2   :  { %v3835_v8 = vpop.eup %2951  ;;  %2977 = vpow2.f32 %v1037_v42 }
 0x2b3   :  { %v3841_v26 = vpop.eup %2953  ;;  %2979 = vpow2.f32 %v1041_v55 }
 0x2b4   :  { %1089 = vperm.xlu1 %2855, %v3793_v61   ;;  %v3843_v4 = vpop.eup %2955  ;;  %2981 = vpow2.f32 %v1045_v58 }
 0x2b5   :  { %1086 = vperm.xlu0 %2856, %v3801_v20   ;;  %4192 = vst [vmem:[#allocation20_spill] sm:$0xff] %v3843_v4  ;;  %v3849_v1 = vpop.eup %2957  ;;  %2983 = vpow2.f32 %v1049_v31 }
 0x2b6   :  { %v3851_v40 = vpop.eup %2959 }
 0x2b7   :  { %4193 = vst [vmem:[#allocation21_spill] sm:$0xff] %v3851_v40  ;;  %v3857_v19 = vpop.eup %2961 }
 0x2b8   :  { %1092 = vperm.xlu1 %2855, %v3806_v17   ;;  %v3859_v3 = vpop.eup %2963 }
 0x2b9   :  { %1113 = vperm.xlu0 %2856, %v3814_v30   ;;  %4194 = vst [vmem:[#allocation22_spill] sm:$0xff] %v3859_v3  ;;  %v3865_v59 = vpop.eup %2965 }
 0x2ba   :  { %v3867_v32 = vpop.eup %2967 }
 0x2bb   :  { %4195 = vst [vmem:[#allocation23_spill] sm:$0xff] %v3867_v32  ;;  %v3873_v6 = vpop.eup %2969 }
 0x2bc   :  { %1095 = vperm.xlu1 %2855, %v3820_v35   ;;  %v3875_v15 = vpop.eup %2971 }
 0x2bd   :  { %1119 = vperm.xlu0 %2856, %v3826_v43   ;;  %4196 = vst [vmem:[#allocation24_spill] sm:$0xff] %v3875_v15  ;;  %v3880_v16 = vpop.eup %2973 }
 0x2be   :  { %v3883_v21 = vpop.eup %2975 }
 0x2bf   :  { %4197 = vst [vmem:[#allocation25_spill] sm:$0xff] %v3883_v21  ;;  %v3886_v46 = vpop.eup %2977 }
 0x2c0   :  { %1098 = vperm.xlu1 %2855, %v3832_v0   ;;  %4198 = vst [vmem:[#allocation26_spill] sm:$0xff] %v3886_v46  ;;  %v3889_v29 = vpop.eup %2979 }
 0x2c1   :  { %1125 = vperm.xlu0 %2856, %v3835_v8   ;;  %4199 = vst [vmem:[#allocation27_spill] sm:$0xff] %v3889_v29  ;;  %v3892_v53 = vpop.eup %2981 }
 0x2c2   :  { %4200 = vst [vmem:[#allocation28_spill] sm:$0xff] %v3892_v53  ;;  %v3895_v7 = vpop.eup %2983 }
 0x2c3   :  { %4201 = vst [vmem:[#allocation29_spill] sm:$0xff] %v3895_v7 }
 0x2c4   :  { %1101 = vperm.xlu1 %2855, %v3841_v26  }
 0x2c5   :  { %1131 = vperm.xlu0 %2856, %v3843_v4  }
 0x2c8   :  { %1104 = vperm.xlu1 %2855, %v3849_v1  }
 0x2c9   :  { %1161 = vperm.xlu0 %2856, %v3851_v40  }
 0x2cc   :  { %1107 = vperm.xlu1 %2855, %v3857_v19  }
 0x2cd   :  { %1167 = vperm.xlu0 %2856, %v3859_v3  }
 0x2d0   :  { %1110 = vperm.xlu1 %2855, %v3865_v59  }
 0x2d1   :  { %1173 = vperm.xlu0 %2856, %v3867_v32  }
 0x2d4   :  { %1116 = vperm.xlu1 %2855, %v3873_v6  }
 0x2d5   :  { %1179 = vperm.xlu0 %2856, %v3875_v15  }
 0x2d8   :  { %1122 = vperm.xlu1 %2855, %v3880_v16  }
 0x2dc   :  { %1128 = vperm.xlu1 %2855, %v3883_v21  }
 0x2e0   :  { %1158 = vperm.xlu1 %2855, %v3886_v46  }
 0x2e4   :  { %1164 = vperm.xlu1 %2855, %v3889_v29  }
 0x2e8   :  { %1170 = vperm.xlu1 %2855, %v3892_v53  }
 0x2ec   :  { %1176 = vperm.xlu1 %2855, %v3895_v7  }
 0x31f   :  { %v3898_v63 = vpop.permute.xlu1 %1134 }
 0x320   :  { %v3900_v52 = vpop.permute.xlu0 %1137 }
 0x323   :  { %v3902_v54 = vpop.permute.xlu1 %1140 }
 0x324   :  { %v3904_v38 = vpop.permute.xlu0 %1143 }
 0x327   :  { %v3906_v9 = vpop.permute.xlu1 %1146 }
 0x328   :  { %v3908_v10 = vpop.permute.xlu0 %1149 }
 0x32b   :  { %v3910_v25 = vpop.permute.xlu1 %1152 }
 0x32c   :  { %v3912_v44 = vpop.permute.xlu0 %1155 }
 0x32f   :  { %v1090_v12 = vpop.permute.xlu1 %1089 }
 0x330   :  { %v1087_v18 = vpop.permute.xlu0 %1086  ;;  %v1188_v53 = vrot.slane %v1090_v12, %v3566_v13 }
 0x331   :  { %v1184_v32 = vrot.slane %v1087_v18, %v3569_v14 }
 0x333   :  { %v1093_v36 = vpop.permute.xlu1 %1092 }
 0x334   :  { %v1114_v45 = vpop.permute.xlu0 %1113  ;;  %v1193_v29 = vrot.slane %v1093_v36, %v3569_v14  ;;  %v1189_v36 = vsel %vm708_vm0, %v1188_v53, %v1184_v32 }
 0x337   :  { %v1096_v39 = vpop.permute.xlu1 %1095 }
 0x338   :  { %v1120_v49 = vpop.permute.xlu0 %1119  ;;  %v1197_v31 = vrot.slane %v1096_v39, %v3566_v13 }
 0x33a   :  { %v1198_v21 = vsel %vm708_vm0, %v1197_v31, %v1193_v29 }
 0x33b   :  { %v1099_v23 = vpop.permute.xlu1 %1098  ;;  %v1325_v29 = vsel %vm845_vm1, %v1198_v21, %v1189_v36  ;;  %v1274_v36 = vrot.slane %v3906_v9, %v3569_v14 }
 0x33c   :  { %v1126_v56 = vpop.permute.xlu0 %1125  ;;  %v1202_v46 = vrot.slane %v1099_v23, %v3569_v14 }
 0x33f   :  { %v1102_v50 = vpop.permute.xlu1 %1101 }
 0x340   :  { %v1132_v58 = vpop.permute.xlu0 %1131  ;;  %v1206_v7 = vrot.slane %v1102_v50, %v3566_v13  ;;  %v1224_v50 = vrot.slane %v1114_v45, %v3566_v13 }
 0x342   :  { %v1207_v12 = vsel %vm708_vm0, %v1206_v7, %v1202_v46 }
 0x343   :  { %v1105_v42 = vpop.permute.xlu1 %1104  ;;  %v1326_v45 = vsel %vm847_vm2, %v1207_v12, %v1325_v29  ;;  %v1256_v29 = vrot.slane %v3898_v63, %v3569_v14 }
 0x344   :  { %v1211_v4 = vrot.slane %v1105_v42, %v3569_v14  ;;  %v1162_v34 = vpop.permute.xlu0 %1161  ;;  %v1242_v42 = vrot.slane %v1126_v56, %v3566_v13 }
 0x347   :  { %v1108_v55 = vpop.permute.xlu1 %1107 }
 0x348   :  { %v1215_v3 = vrot.slane %v1108_v55, %v3566_v13  ;;  %v1233_v55 = vrot.slane %v1120_v49, %v3566_v13  ;;  %v1251_v49 = vrot.slane %v1132_v58, %v3566_v13  ;;  %v1168_v21 = vpop.permute.xlu0 %1167  ;;  %v1265_v58 = vrot.slane %v3902_v54, %v3569_v14 }
 0x349   :  { %v1283_v54 = vrot.slane %v3910_v25, %v3569_v14  ;;  %v1305_v25 = vrot.slane %v1168_v21, %v3566_v13 }
 0x34a   :  { %v1216_v23 = vsel %vm708_vm0, %v1215_v3, %v1211_v4 }
 0x34b   :  { %v1111_v11 = vpop.permute.xlu1 %1110  ;;  %v1327_v7 = vsel %vm849_vm3, %v1216_v23, %v1326_v45 }
 0x34c   :  { %v1220_v40 = vrot.slane %v1111_v11, %v3569_v14  ;;  %v1174_v23 = vpop.permute.xlu0 %1173 }
 0x34f   :  { %v1117_v15 = vpop.permute.xlu1 %1116 }
 0x350   :  { %v1229_v39 = vrot.slane %v1117_v15, %v3569_v14  ;;  %v1225_v15 = vsel %vm708_vm0, %v1224_v50, %v1220_v40 }
 0x351   :  { %v1328_v4 = vsel %vm851_vm4, %v1225_v15, %v1327_v7 }
 0x352   :  { %v1234_v46 = vsel %vm708_vm0, %v1233_v55, %v1229_v39  ;;  %v1278_v55 = vrot.slane %v3908_v10, %v3566_v13 }
 0x353   :  { %v1123_v18 = vpop.permute.xlu1 %1122  ;;  %v1329_v56 = vsel %vm853_vm5, %v1234_v46, %v1328_v4  ;;  %v1296_v46 = vrot.slane %v1162_v34, %v3566_v13 }
 0x354   :  { %v1238_v11 = vrot.slane %v1123_v18, %v3569_v14  ;;  %v1269_v18 = vrot.slane %v3904_v38, %v3566_v13  ;;  %v1287_v38 = vrot.slane %v3912_v44, %v3566_v13  ;;  %v1279_v45 = vsel %vm708_vm0, %v1278_v55, %v1274_v36 }
 0x356   :  { %v1243_v32 = vsel %vm708_vm0, %v1242_v42, %v1238_v11  ;;  %v1260_v42 = vrot.slane %v3900_v52, %v3566_v13  ;;  %v1270_v9 = vsel %vm708_vm0, %v1269_v18, %v1265_v58  ;;  %v1288_v52 = vsel %vm708_vm0, %v1287_v38, %v1283_v54  ;;  %v1976_v54 = vld [vmem:[#allocation8 + $0x588] sm:$0xff]  ;;  %v1975_v38 = vld [vmem:[#allocation8 + $0x580] sm:$0xff] }
 0x357   :  { %v1129_v53 = vpop.permute.xlu1 %1128  ;;  %v1330_v31 = vsel %vm855_vm6, %v1243_v32, %v1329_v56 }
 0x358   :  { %v1247_v3 = vrot.slane %v1129_v53, %v3569_v14  ;;  %v1261_v7 = vsel %vm708_vm0, %v1260_v42, %v1256_v29  ;;  %v1314_v53 = vrot.slane %v1174_v23, %v3566_v13  ;;  %v1988_v23 = vld [vmem:[#allocation8 + $0x5e8] sm:$0xff] }
 0x359   :  { %v1332_v44 = vsel %vm845_vm1, %v1270_v9, %v1261_v7  ;;  %v1984_v29 = vld [vmem:[#allocation8 + $0x5c8] sm:$0xff]  ;;  %2090 = vmatprep.subr.mxu0 %v1988_v23  ;;  %v1967_v7 = vld [vmem:[#allocation8 + $0x540] sm:$0xff] }
 0x35a   :  { %v1252_v40 = vsel %vm708_vm0, %v1251_v49, %v1247_v3  ;;  %v1180_v49 = vpop.permute.xlu0 %1179  ;;  %v1333_v3 = vsel %vm847_vm2, %v1279_v45, %v1332_v44  ;;  %v1980_v42 = vld [vmem:[#allocation8 + $0x5a8] sm:$0xff]  ;;  %v1971_v45 = vld [vmem:[#allocation8 + $0x560] sm:$0xff] }
 0x35b   :  { %v1159_v50 = vpop.permute.xlu1 %1158  ;;  %v1331_v39 = vsel %vm857_vm7, %v1252_v40, %v1330_v31  ;;  %v1334_v56 = vsel %vm849_vm3, %v1288_v52, %v1333_v3  ;;  %v1323_v21 = vrot.slane %v1180_v49, %v3566_v13  ;;  %v1983_v13 = vld [vmem:[#allocation8 + $0x5c0] sm:$0xff]  ;;  %v1972_v9 = vld [vmem:[#allocation8 + $0x568] sm:$0xff] }
 0x35c   :  { %v1341_v12 = vsel %vm868_vm8, %v1331_v39, 0.0  ;;  %v1292_v15 = vrot.slane %v1159_v50, %v3569_v14  ;;  %v1964_v52 = vld [vmem:[#allocation8 + $0x528] sm:$0xff]  ;;  %v1959_v44 = vld [vmem:[#allocation8 + $0x500] sm:$0xff] }
 0x35d   :  { %1342 = vadd.xlane.f32.xlu1 %v1341_v12  ;;  %v1955_v49 = vld [vmem:[#allocation8 + $0x4e0] sm:$0xff] }
 0x35e   :  { %v1297_v4 = vsel %vm708_vm0, %v1296_v46, %v1292_v15  ;;  %v1860_v15 = vld [vmem:[#allocation8 + $0x1e8] sm:$0xff]  ;;  %v1951_v3 = vld [vmem:[#allocation8 + $0x4c0] sm:$0xff] }
 0x35f   :  { %v1165_v11 = vpop.permute.xlu1 %1164  ;;  %v1335_v50 = vsel %vm851_vm4, %v1297_v4, %v1334_v56  ;;  %2013 = vmatprep.subr.mxu1 %v1860_v15  ;;  %v1856_v46 = vld [vmem:[#allocation8 + $0x1c8] sm:$0xff]  ;;  %v1847_v15 = vld [vmem:[#allocation8 + $0x180] sm:$0xff] }
 0x360   :  { %v1301_v10 = vrot.slane %v1165_v11, %v3569_v14  ;;  %v1987_v11 = vld [vmem:[#allocation8 + $0x5e0] sm:$0xff]  ;;  %v1952_v4 = vld [vmem:[#allocation8 + $0x4c8] sm:$0xff] }
 0x361   :  { %2091 = vmatpush1.msra.mxu0 %v1987_v11  ;;  %v1855_v11 = vld [vmem:[#allocation8 + $0x1c0] sm:$0xff] }
 0x362   :  { %v1306_v34 = vsel %vm708_vm0, %v1305_v25, %v1301_v10  ;;  %2092 = vmatprep.subr.mxu0 %v1984_v29  ;;  %v1859_v10 = vld [vmem:[#allocation8 + $0x1e0] sm:$0xff]  ;;  %v1948_v29 = vld [vmem:[#allocation8 + $0x4a8] sm:$0xff] }
 0x363   :  { %v1171_v63 = vpop.permute.xlu1 %1170  ;;  %v1336_v12 = vsel %vm853_vm5, %v1306_v34, %v1335_v50  ;;  %2093 = vmatpush1.msra.mxu0 %v1983_v13  ;;  %2014 = vmatpush1.msra.mxu1 %v1859_v10  ;;  %v1963_v25 = vld [vmem:[#allocation8 + $0x520] sm:$0xff]  ;;  %v1852_v13 = vld [vmem:[#allocation8 + $0x1a8] sm:$0xff] }
 0x364   :  { %v1310_v32 = vrot.slane %v1171_v63, %v3569_v14  ;;  %2094 = vmatprep.subr.mxu0 %v1980_v42  ;;  %v1968_v63 = vld [vmem:[#allocation8 + $0x548] sm:$0xff]  ;;  %2015 = vmatprep.subr.mxu1 %v1856_v46  ;;  %v1843_v46 = vld [vmem:[#allocation8 + $0x160] sm:$0xff] }
 0x365   :  { %2016 = vmatpush1.msra.mxu1 %v1855_v11  ;;  %v1944_v42 = vld [vmem:[#allocation8 + $0x488] sm:$0xff]  ;;  %v1857_v11 = vld [vmem:[#allocation8 + $0x1d0] sm:$0xff] }
 0x366   :  { %v1315_v40 = vsel %vm708_vm0, %v1314_v53, %v1310_v32  ;;  %v1960_v32 = vld [vmem:[#allocation8 + $0x508] sm:$0xff]  ;;  %2017 = vmatprep.subr.mxu1 %v1852_v13  ;;  %v1854_v13 = vld [vmem:[#allocation8 + $0x1b8] sm:$0xff] }
 0x367   :  { %v1177_v31 = vpop.permute.xlu1 %1176  ;;  %v1337_v18 = vsel %vm855_vm6, %v1315_v40, %v1336_v12  ;;  %v1956_v53 = vld [vmem:[#allocation8 + $0x4e8] sm:$0xff] }
 0x368   :  { %v1319_v39 = vrot.slane %v1177_v31, %v3569_v14  ;;  %v1979_v14 = vld [vmem:[#allocation8 + $0x5a0] sm:$0xff]  ;;  %v1844_v10 = vld [vmem:[#allocation8 + $0x168] sm:$0xff] }
 0x369   :  { %2095 = vmatpush1.msra.mxu0 %v1979_v14  ;;  %v1848_v14 = vld [vmem:[#allocation8 + $0x188] sm:$0xff] }
 0x36a   :  { %v1324_v58 = vsel %vm708_vm0, %v1323_v21, %v1319_v39  ;;  %2096 = vmatprep.subr.mxu0 %v1976_v54  ;;  %v1943_v54 = vld [vmem:[#allocation8 + $0x480] sm:$0xff] }
 0x36b   :  { %v1338_v36 = vsel %vm857_vm7, %v1324_v58, %v1337_v18  ;;  %2097 = vmatpush1.msra.mxu0 %v1975_v38 }
 0x36c   :  { %v1344_v55 = vsel %vm868_vm8, %v1338_v36, 0.0  ;;  %2098 = vmatprep.subr.mxu0 %v1972_v9  ;;  %v1940_v9 = vld [vmem:[#allocation8 + $0x468] sm:$0xff] }
 0x36d   :  { %1345 = vadd.xlane.f32.xlu0 %v1344_v55  ;;  %2099 = vmatpush1.msra.mxu0 %v1971_v45  ;;  %v1939_v45 = vld [vmem:[#allocation8 + $0x460] sm:$0xff] }
 0x36e   :  { %2100 = vmatprep.subr.mxu0 %v1968_v63  ;;  %v1936_v63 = vld [vmem:[#allocation8 + $0x448] sm:$0xff] }
 0x36f   :  { %2101 = vmatpush1.msra.mxu0 %v1967_v7 }
 0x370   :  { %2102 = vmatprep.subr.mxu0 %v1964_v52  ;;  %v1840_v52 = vld [vmem:[#allocation8 + $0x148] sm:$0xff] }
 0x371   :  { %2103 = vmatpush1.msra.mxu0 %v1963_v25  ;;  %v1935_v25 = vld [vmem:[#allocation8 + $0x440] sm:$0xff] }
 0x372   :  { %2104 = vmatprep.subr.mxu0 %v1960_v32  ;;  %v1839_v32 = vld [vmem:[#allocation8 + $0x140] sm:$0xff] }
 0x373   :  { %2105 = vmatpush1.msra.mxu0 %v1959_v44  ;;  %v1932_v44 = vld [vmem:[#allocation8 + $0x428] sm:$0xff] }
 0x374   :  { %2106 = vmatprep.subr.mxu0 %v1956_v53  ;;  %v1836_v53 = vld [vmem:[#allocation8 + $0x128] sm:$0xff] }
 0x375   :  { %2107 = vmatpush1.msra.mxu0 %v1955_v49  ;;  %v1931_v49 = vld [vmem:[#allocation8 + $0x420] sm:$0xff] }
 0x376   :  { %2108 = vmatprep.subr.mxu0 %v1952_v4 }
 0x377   :  { %2109 = vmatpush1.msra.mxu0 %v1951_v3  ;;  %v1835_v3 = vld [vmem:[#allocation8 + $0x120] sm:$0xff] }
 0x378   :  { %2110 = vmatprep.subr.mxu0 %v1948_v29  ;;  %v1820_v29 = vld [vmem:[#allocation8 + $0xa8] sm:$0xff] }
 0x3e6   :  { %v1343_v56 = vpop.xlane.xlu1 %1342 }
 0x3f6   :  { %v1346_v34 = vpop.xlane.xlu0 %1345 }
 0x3f7   :  { %2985 = vrcp.f32 %v1346_v34  ;;  %v1928_v34 = vld [vmem:[#allocation8 + $0x408] sm:$0xff] }
 0x3f8   :  { %2987 = vrcp.f32 %v1343_v56  ;;  %v1832_v56 = vld [vmem:[#allocation8 + $0x108] sm:$0xff] }
 0x404   :  { %v3986_v40 = vpop.eup %2985 }
 0x405   :  { %v1386_v31 = vrot.slane %v3986_v40, %v3387_v27  ;;  %v1390_v39 = vrot.slane %v3986_v40, %v3698_v28  ;;  %v1394_v18 = vrot.slane %v3986_v40, %v3705_v33  ;;  %v4002_v55 = vpop.eup %2987 }
 0x406   :  { %v1354_v23 = vrot.slane %v4002_v55, %v3387_v27  ;;  %v1358_v38 = vrot.slane %v4002_v55, %v3698_v28  ;;  %v1362_v7 = vrot.slane %v4002_v55, %v3705_v33  ;;  %v1366_v4 = vrot.slane %v4002_v55, %v3714_v41 }
 0x407   :  { %v1448_v21 = vmul.f32 %v3746_v62, %v1386_v31  ;;  %v1447_v50 = vmul.f32 %v3739_v24, %v1386_v31  ;;  %v1450_v12 = vmul.f32 %v3762_v22, %v1390_v39  ;;  %v1449_v58 = vmul.f32 %v3755_v37, %v1390_v39  ;;  %v1927_v31 = vld [vmem:[#allocation8 + $0x400] sm:$0xff]  ;;  %v1862_v39 = vld [vmem:[#allocation8 + $0x1f8] sm:$0xff] }
 0x408   :  { %v1452_v36 = vmul.f32 %v3774_v48, %v1394_v18  ;;  %v1451_v62 = vmul.f32 %v3767_v47, %v1394_v18  ;;  %v1398_v24 = vrot.slane %v3986_v40, %v3714_v41  ;;  %v1947_v47 = vld [vmem:[#allocation8 + $0x4a0] sm:$0xff] }
 0x409   :  { %1550 = vperm.xlu0 %2856, %v1448_v21   ;;  %1545 = vperm.xlu1 %2855, %v1447_v50   ;;  %v1851_v48 = vld [vmem:[#allocation8 + $0x1a0] sm:$0xff]  ;;  %v1370_v50 = vrot.slane %v4002_v55, %v3723_v51 }
 0x40a   :  { %v1454_v22 = vmul.f32 %v3788_v2, %v1398_v24  ;;  %v1453_v37 = vmul.f32 %v3780_v60, %v1398_v24  ;;  %2111 = vmatpush1.msra.mxu0 %v1947_v47  ;;  %v1431_v2 = vmul.f32 %v3801_v20, %v1354_v23  ;;  %v1432_v60 = vmul.f32 %v3793_v61, %v1354_v23  ;;  %v1831_v21 = vld [vmem:[#allocation8 + $0x100] sm:$0xff] }
 0x40b   :  { %2018 = vmatpush1.msra.mxu1 %v1851_v48  ;;  %2112 = vmatprep.subr.mxu0 %v1944_v42  ;;  %v1434_v20 = vmul.f32 %v3820_v35, %v1358_v38  ;;  %v1433_v61 = vmul.f32 %v3806_v17, %v1358_v38  ;;  %v1436_v35 = vmul.f32 %v3841_v26, %v1362_v7  ;;  %v148_v18 = vld [vmem:[%s4165_s1] sm:$0xff]  ;;  %v1853_v42 = vld [vmem:[#allocation8 + $0x1b0] sm:$0xff]  ;;  %v1812_v38 = vld [vmem:[#allocation8 + $0x68] sm:$0xff] }
 0x40c   :  { %2019 = vmatprep.subr.mxu1 %v1848_v14  ;;  %2113 = vmatpush1.msra.mxu0 %v1943_v54  ;;  %v1435_v17 = vmul.f32 %v3832_v0, %v1362_v7  ;;  %v1438_v26 = vmul.f32 %v3857_v19, %v1366_v4  ;;  %v1437_v0 = vmul.f32 %v3849_v1, %v1366_v4  ;;  %v1861_v19 = vld [vmem:[#allocation8 + $0x1f0] sm:$0xff]  ;;  %v1824_v1 = vld [vmem:[#allocation8 + $0xc8] sm:$0xff]  ;;  %v1823_v23 = vld [vmem:[#allocation8 + $0xc0] sm:$0xff] }
 0x40d   :  { %1560 = vperm.xlu0 %2856, %v1450_v12   ;;  %1555 = vperm.xlu1 %2855, %v1449_v58   ;;  %v1828_v12 = vld [vmem:[#allocation8 + $0xe8] sm:$0xff]  ;;  %v3217_v58 = vmov 0.0   ;;  %v1439_v24 = vmul.f32 %v3865_v59, %v1370_v50  ;;  %v1819_v47 = vld [vmem:[#allocation8 + $0xa0] sm:$0xff]  ;;  %v1378_v48 = vrot.slane %v4002_v55, %v3736_v5  ;;  %v1850_v54 = vld [vmem:[#allocation8 + $0x198] sm:$0xff] }
 0x40e   :  { %2020 = vmatpush1.msra.mxu1 %v1847_v15  ;;  %2114 = vmatprep.subr.mxu0 %v1940_v9  ;;  %v1816_v14 = vld [vmem:[#allocation8 + $0x88] sm:$0xff]  ;;  %v4202_v15 = vld [vmem:[#allocation19_spill] sm:$0xff] }
 0x40f   :  { %2021 = vmatprep.subr.mxu1 %v1844_v10  ;;  %2115 = vmatpush1.msra.mxu0 %v1939_v45  ;;  %v1382_v9 = vrot.slane %v4002_v55, %v4202_v15  ;;  %v1846_v10 = vld [vmem:[#allocation8 + $0x178] sm:$0xff]  ;;  %v1811_v45 = vld [vmem:[#allocation8 + $0x60] sm:$0xff] }
 0x410   :  { %2022 = vmatpush1.msra.mxu1 %v1843_v46  ;;  %2116 = vmatprep.subr.mxu0 %v1936_v63  ;;  %v1845_v46 = vld [vmem:[#allocation8 + $0x170] sm:$0xff]  ;;  %v1808_v63 = vld [vmem:[#allocation8 + $0x48] sm:$0xff] }
 0x411   :  { %1570 = vperm.xlu0 %2856, %v1452_v36   ;;  %1565 = vperm.xlu1 %2855, %v1451_v62   ;;  %v1827_v36 = vld [vmem:[#allocation8 + $0xe0] sm:$0xff]  ;;  %v1440_v62 = vmul.f32 %v3814_v30, %v1370_v50 }
 0x412   :  { %2023 = vmatprep.subr.mxu1 %v1840_v52  ;;  %2117 = vmatpush1.msra.mxu0 %v1935_v25  ;;  %v1841_v25 = vld [vmem:[#allocation8 + $0x150] sm:$0xff]  ;;  %v1923_v50 = vld [vmem:[#allocation8 + $0x3e0] sm:$0xff] }
 0x413   :  { %2024 = vmatpush1.msra.mxu1 %v1839_v32  ;;  %2118 = vmatprep.subr.mxu0 %v1932_v44  ;;  %v1804_v32 = vld [vmem:[#allocation8 + $0x28] sm:$0xff]  ;;  %v1838_v44 = vld [vmem:[#allocation8 + $0x138] sm:$0xff] }
 0x414   :  { %2025 = vmatprep.subr.mxu1 %v1836_v53  ;;  %2119 = vmatpush1.msra.mxu0 %v1931_v49  ;;  %v1803_v53 = vld [vmem:[#allocation8 + $0x20] sm:$0xff]  ;;  %v1837_v49 = vld [vmem:[#allocation8 + $0x130] sm:$0xff] }
 0x415   :  { %1580 = vperm.xlu0 %2856, %v1454_v22   ;;  %1575 = vperm.xlu1 %2855, %v1453_v37   ;;  %v1374_v22 = vrot.slane %v4002_v55, %v3727_v57  ;;  %v1858_v37 = vld [vmem:[#allocation8 + $0x1d8] sm:$0xff]  ;;  %v1402_v55 = vrot.slane %v3986_v40, %v3723_v51  ;;  %v1406_v51 = vrot.slane %v3986_v40, %v3727_v57 }
 0x416   :  { %2026 = vmatpush1.msra.mxu1 %v1835_v3  ;;  %2120 = vmatprep.subr.mxu0 %v1928_v34  ;;  %v4206_v3 = vld [vmem:[#allocation26_spill] sm:$0xff]  ;;  %v1410_v57 = vrot.slane %v3986_v40, %v3736_v5  ;;  %v1414_v5 = vrot.slane %v3986_v40, %v4202_v15  ;;  %v1817_v40 = vld [vmem:[#allocation8 + $0x90] sm:$0xff]  ;;  %v1907_v15 = vld [vmem:[#allocation8 + $0x360] sm:$0xff] }
 0x417   :  { %2027 = vmatprep.subr.mxu1 %v1832_v56  ;;  %2121 = vmatpush1.msra.mxu0 %v1927_v31  ;;  %v1442_v30 = vmul.f32 %v3826_v43, %v1374_v22  ;;  %v1441_v59 = vmul.f32 %v3873_v6, %v1374_v22  ;;  %v1444_v43 = vmul.f32 %v3835_v8, %v1378_v48  ;;  %v4203_v8 = vld [vmem:[#allocation20_spill] sm:$0xff]  ;;  %v1834_v56 = vld [vmem:[#allocation8 + $0x118] sm:$0xff]  ;;  %v1799_v31 = vld [vmem:[#allocation8] sm:$0xff] }
 0x418   :  { %2028 = vmatpush1.msra.mxu1 %v1831_v21  ;;  %2154 = vmatprep.mubr.f32.mxu0 %v3217_v58  ;;  %v1443_v6 = vmul.f32 %v3880_v16, %v1378_v48  ;;  %v1446_v7 = vmul.f32 %v4203_v8, %v1382_v9  ;;  %v4204_v16 = vld [vmem:[#allocation25_spill] sm:$0xff]  ;;  %v1455_v34 = vmul.f32 %v4206_v3, %v1402_v55  ;;  %v1912_v48 = vld [vmem:[#allocation8 + $0x388] sm:$0xff]  ;;  %v1899_v8 = vld [vmem:[#allocation8 + $0x320] sm:$0xff] }
 0x419   :  { %1465 = vperm.xlu0 %2856, %v1431_v2   ;;  %1470 = vperm.xlu1 %2855, %v1432_v60   ;;  %v1815_v2 = vld [vmem:[#allocation8 + $0x80] sm:$0xff]  ;;  %v1849_v60 = vld [vmem:[#allocation8 + $0x190] sm:$0xff]  ;;  %v1445_v52 = vmul.f32 %v4204_v16, %v1382_v9  ;;  %v1896_v16 = vld [vmem:[#allocation8 + $0x308] sm:$0xff] }
 0x41a   :  { %2167 = vmatprep.subr.mxu0 %v1862_v39  ;;  %2029 = vmatprep.subr.mxu1 %v1828_v12  ;;  %v1833_v21 = vld [vmem:[#allocation8 + $0x110] sm:$0xff]  ;;  %v4207_v39 = vld [vmem:[#allocation22_spill] sm:$0xff] }
 0x41b   :  { %2155 = vmatmul.mubr.f32.vlgmr.msra.gmra.mxu0 %v148_v18  ;;  %2030 = vmatpush1.msra.mxu1 %v1827_v36  ;;  %v1458_v12 = vmul.f32 %v4207_v39, %v1406_v51  ;;  %v4208_v18 = vld [vmem:[#allocation27_spill] sm:$0xff]  ;;  %v1825_v22 = vld [vmem:[#allocation8 + $0xd0] sm:$0xff] }
 0x41c   :  { %2168 = vmatpush1.msra.mxu0 %v1861_v19  ;;  %2031 = vmatprep.subr.mxu1 %v1824_v1  ;;  %v1457_v36 = vmul.f32 %v4208_v18, %v1406_v51  ;;  %v1829_v19 = vld [vmem:[#allocation8 + $0xf0] sm:$0xff]  ;;  %v1920_v1 = vld [vmem:[#allocation8 + $0x3c8] sm:$0xff]  ;;  %v4061_v51 = vld [vmem:[%s4164_s0] sm:$0xff] }
 0x41d   :  { %1480 = vperm.xlu0 %2856, %v1434_v20   ;;  %1475 = vperm.xlu1 %2855, %v1433_v61   ;;  %v1842_v20 = vld [vmem:[#allocation8 + $0x158] sm:$0xff]  ;;  %v1807_v61 = vld [vmem:[#allocation8 + $0x40] sm:$0xff]  ;;  %v1813_v9 = vld [vmem:[#allocation8 + $0x70] sm:$0xff]  ;;  %2731 = vst [vmem:[%s4178_s14 + $0x10] sm:$0xff] %v4061_v51 }
 0x41e   :  { %2169 = vmatprep.subr.mxu0 %v1858_v37  ;;  %2032 = vmatpush1.msra.mxu1 %v1823_v23  ;;  %v1916_v37 = vld [vmem:[#allocation8 + $0x3a8] sm:$0xff]  ;;  %v4209_v23 = vld [vmem:[#allocation23_spill] sm:$0xff]  ;;  %v1921_v3 = vld [vmem:[#allocation8 + $0x3d0] sm:$0xff] }
 0x41f   :  { %2170 = vmatpush1.msra.mxu0 %v1857_v11  ;;  %2033 = vmatprep.subr.mxu1 %v1820_v29  ;;  %v1460_v11 = vmul.f32 %v4209_v23, %v1410_v57  ;;  %v4210_v29 = vld [vmem:[#allocation28_spill] sm:$0xff]  ;;  %v1913_v39 = vld [vmem:[#allocation8 + $0x390] sm:$0xff]  ;;  %v1910_v18 = vld [vmem:[#allocation8 + $0x378] sm:$0xff] }
 0x420   :  { %2171 = vmatprep.subr.mxu0 %v1854_v13  ;;  %2034 = vmatpush1.msra.mxu1 %v1819_v47  ;;  %v1459_v13 = vmul.f32 %v4210_v29, %v1410_v57  ;;  %v1822_v47 = vld [vmem:[#allocation8 + $0xb8] sm:$0xff]  ;;  %v1909_v57 = vld [vmem:[#allocation8 + $0x370] sm:$0xff]  ;;  %v1867_v23 = vld [vmem:[#allocation8 + $0x220] sm:$0xff] }
 0x421   :  { %1490 = vperm.xlu0 %2856, %v1436_v35   ;;  %1485 = vperm.xlu1 %2855, %v1435_v17   ;;  %v1800_v35 = vld [vmem:[#allocation8 + $0x8] sm:$0xff]  ;;  %v4205_v17 = vld [vmem:[#allocation21_spill] sm:$0xff] }
 0x422   :  { %2172 = vmatpush1.msra.mxu0 %v1853_v42  ;;  %2035 = vmatprep.subr.mxu1 %v1816_v14  ;;  %v1456_v4 = vmul.f32 %v4205_v17, %v1402_v55  ;;  %v1818_v42 = vld [vmem:[#allocation8 + $0x98] sm:$0xff]  ;;  %v1911_v14 = vld [vmem:[#allocation8 + $0x380] sm:$0xff]  ;;  %v1864_v29 = vld [vmem:[#allocation8 + $0x208] sm:$0xff] }
 0x423   :  { %2173 = vmatprep.subr.mxu0 %v1850_v54  ;;  %2036 = vmatpush1.msra.mxu1 %v1815_v2  ;;  %v4211_v54 = vld [vmem:[#allocation24_spill] sm:$0xff]  ;;  %v1895_v55 = vld [vmem:[#allocation8 + $0x300] sm:$0xff]  ;;  %v1922_v17 = vld [vmem:[#allocation8 + $0x3d8] sm:$0xff] }
 0x424   :  { %2174 = vmatpush1.msra.mxu0 %v1849_v60  ;;  %2037 = vmatprep.subr.mxu1 %v1812_v38  ;;  %v1462_v2 = vmul.f32 %v4211_v54, %v1414_v5  ;;  %v4212_v60 = vld [vmem:[#allocation29_spill] sm:$0xff]  ;;  %v1890_v54 = vld [vmem:[#allocation8 + $0x2d8] sm:$0xff] }
 0x425   :  { %1500 = vperm.xlu0 %2856, %v1438_v26   ;;  %1495 = vperm.xlu1 %2855, %v1437_v0   ;;  %v1924_v26 = vld [vmem:[#allocation8 + $0x3e8] sm:$0xff]  ;;  %v1830_v0 = vld [vmem:[#allocation8 + $0xf8] sm:$0xff]  ;;  %v1461_v38 = vmul.f32 %v4212_v60, %v1414_v5 }
 0x426   :  { %2175 = vmatprep.subr.mxu0 %v1846_v10  ;;  %2038 = vmatpush1.msra.mxu1 %v1811_v45  ;;  %v1904_v10 = vld [vmem:[#allocation8 + $0x348] sm:$0xff]  ;;  %v1810_v45 = vld [vmem:[#allocation8 + $0x58] sm:$0xff] }
 0x427   :  { %2176 = vmatpush1.msra.mxu0 %v1845_v46  ;;  %2039 = vmatprep.subr.mxu1 %v1808_v63  ;;  %v1903_v46 = vld [vmem:[#allocation8 + $0x340] sm:$0xff]  ;;  %v1809_v63 = vld [vmem:[#allocation8 + $0x50] sm:$0xff]  ;;  %v4070_v5 = vld [vmem:[%s4164_s0 + $0x8] sm:$0xff] }
 0x428   :  { %2177 = vmatprep.subr.mxu0 %v1842_v20  ;;  %2040 = vmatpush1.msra.mxu1 %v1807_v61  ;;  %v1900_v20 = vld [vmem:[#allocation8 + $0x328] sm:$0xff]  ;;  %v1806_v61 = vld [vmem:[#allocation8 + $0x38] sm:$0xff]  ;;  %2734 = vst [vmem:[%s4178_s14 + $0x28] sm:$0xff] %v4070_v5 }
 0x429   :  { %1510 = vperm.xlu0 %2856, %v1440_v62   ;;  %1505 = vperm.xlu1 %2855, %v1439_v24   ;;  %v1826_v62 = vld [vmem:[#allocation8 + $0xd8] sm:$0xff]  ;;  %v1919_v24 = vld [vmem:[#allocation8 + $0x3c0] sm:$0xff] }
 0x42a   :  { %2178 = vmatpush1.msra.mxu0 %v1841_v25  ;;  %2041 = vmatprep.subr.mxu1 %v1804_v32  ;;  %v1801_v25 = vld [vmem:[#allocation8 + $0x10] sm:$0xff]  ;;  %v1892_v32 = vld [vmem:[#allocation8 + $0x2e8] sm:$0xff]  ;;  %v1886_v60 = vld [vmem:[#allocation8 + $0x2b8] sm:$0xff] }
 0x42b   :  { %2179 = vmatprep.subr.mxu0 %v1838_v44  ;;  %2042 = vmatpush1.msra.mxu1 %v1803_v53  ;;  %v1926_v44 = vld [vmem:[#allocation8 + $0x3f8] sm:$0xff]  ;;  %v1891_v53 = vld [vmem:[#allocation8 + $0x2e0] sm:$0xff] }
 0x42c   :  { %2180 = vmatpush1.msra.mxu0 %v1837_v49  ;;  %2043 = vmatprep.subr.mxu1 %v1800_v35  ;;  %v1925_v49 = vld [vmem:[#allocation8 + $0x3f0] sm:$0xff]  ;;  %v1888_v35 = vld [vmem:[#allocation8 + $0x2c8] sm:$0xff] }
 0x42d   :  { %1520 = vperm.xlu0 %2856, %v1442_v30   ;;  %1515 = vperm.xlu1 %2855, %v1441_v59   ;;  %v1915_v30 = vld [vmem:[#allocation8 + $0x3a0] sm:$0xff]  ;;  %v1821_v59 = vld [vmem:[#allocation8 + $0xb0] sm:$0xff] }
 0x42e   :  { %2181 = vmatprep.subr.mxu0 %v1834_v56  ;;  %2044 = vmatpush1.msra.mxu1 %v1799_v31  ;;  %v1918_v56 = vld [vmem:[#allocation8 + $0x3b8] sm:$0xff]  ;;  %v1883_v31 = vld [vmem:[#allocation8 + $0x2a0] sm:$0xff] }
 0x42f   :  { %2182 = vmatpush1.msra.mxu0 %v1833_v21  ;;  %2045 = vmatprep.subr.mxu1 %v1924_v26  ;;  %v1917_v21 = vld [vmem:[#allocation8 + $0x3b0] sm:$0xff]  ;;  %v1880_v26 = vld [vmem:[#allocation8 + $0x288] sm:$0xff] }
 0x430   :  { %2183 = vmatprep.subr.mxu0 %v1830_v0  ;;  %2046 = vmatpush2.msra.mxu1 %v1923_v50  ;;  %v1914_v0 = vld [vmem:[#allocation8 + $0x398] sm:$0xff]  ;;  %v1879_v50 = vld [vmem:[#allocation8 + $0x280] sm:$0xff] }
 0x431   :  { %1530 = vperm.xlu0 %2856, %v1444_v43   ;;  %1525 = vperm.xlu1 %2855, %v1443_v6   ;;  %v1908_v43 = vld [vmem:[#allocation8 + $0x368] sm:$0xff]  ;;  %v1814_v6 = vld [vmem:[#allocation8 + $0x78] sm:$0xff] }
 0x432   :  { %2184 = vmatpush1.msra.mxu0 %v1829_v19  ;;  %2047 = vmatprep.subr.mxu1 %v1920_v1  ;;  %v1872_v19 = vld [vmem:[#allocation8 + $0x248] sm:$0xff]  ;;  %v1906_v1 = vld [vmem:[#allocation8 + $0x358] sm:$0xff] }
 0x433   :  { %2185 = vmatprep.subr.mxu0 %v1826_v62  ;;  %2048 = vmatpush2.msra.mxu1 %v1919_v24  ;;  %v1871_v62 = vld [vmem:[#allocation8 + $0x240] sm:$0xff]  ;;  %v1905_v24 = vld [vmem:[#allocation8 + $0x350] sm:$0xff] }
 0x434   :  { %2186 = vmatpush1.msra.mxu0 %v1825_v22  ;;  %2049 = vmatprep.subr.mxu1 %v1916_v37  ;;  %v1868_v22 = vld [vmem:[#allocation8 + $0x228] sm:$0xff]  ;;  %v1902_v37 = vld [vmem:[#allocation8 + $0x338] sm:$0xff] }
 0x435   :  { %1540 = vperm.xlu0 %2856, %v1446_v7   ;;  %1535 = vperm.xlu1 %2855, %v1445_v52   ;;  %v1805_v7 = vld [vmem:[#allocation8 + $0x30] sm:$0xff]  ;;  %v1802_v52 = vld [vmem:[#allocation8 + $0x18] sm:$0xff] }
 0x436   :  { %2187 = vmatprep.subr.mxu0 %v1822_v47  ;;  %2050 = vmatpush2.msra.mxu1 %v1915_v30  ;;  %v1897_v47 = vld [vmem:[#allocation8 + $0x310] sm:$0xff]  ;;  %v1863_v30 = vld [vmem:[#allocation8 + $0x200] sm:$0xff] }
 0x437   :  { %2188 = vmatpush1.msra.mxu0 %v1821_v59  ;;  %2051 = vmatprep.subr.mxu1 %v1912_v48  ;;  %v4079_v59 = vld [vmem:[%s4165_s1 + $0x8] sm:$0xff]  ;;  %v1894_v48 = vld [vmem:[#allocation8 + $0x2f8] sm:$0xff] }
 0x438   :  { %2189 = vmatprep.subr.mxu0 %v1818_v42  ;;  %2052 = vmatpush2.msra.mxu1 %v1911_v14  ;;  %v1893_v42 = vld [vmem:[#allocation8 + $0x2f0] sm:$0xff]  ;;  %v1990_v14 = vld [vmem:[#allocation8 + $0x5f8] sm:$0xff] }
 0x439   :  { %1590 = vperm.xlu0 %2856, %v1456_v4   ;;  %1585 = vperm.xlu1 %2855, %v1455_v34   ;;  %v1887_v4 = vld [vmem:[#allocation8 + $0x2c0] sm:$0xff]  ;;  %v1884_v34 = vld [vmem:[#allocation8 + $0x2a8] sm:$0xff] }
 0x43a   :  { %2190 = vmatpush1.msra.mxu0 %v1817_v40  ;;  %2053 = vmatprep.subr.mxu1 %v1908_v43  ;;  %v1882_v40 = vld [vmem:[#allocation8 + $0x298] sm:$0xff]  ;;  %v1881_v43 = vld [vmem:[#allocation8 + $0x290] sm:$0xff] }
 0x43b   :  { %2191 = vmatprep.subr.mxu0 %v1814_v6  ;;  %2054 = vmatpush2.msra.mxu1 %v1907_v15  ;;  %v1878_v6 = vld [vmem:[#allocation8 + $0x278] sm:$0xff]  ;;  %v1877_v15 = vld [vmem:[#allocation8 + $0x270] sm:$0xff] }
 0x43c   :  { %2192 = vmatpush1.msra.mxu0 %v1813_v9  ;;  %2055 = vmatprep.subr.mxu1 %v1904_v10  ;;  %v1874_v9 = vld [vmem:[#allocation8 + $0x258] sm:$0xff]  ;;  %v1873_v10 = vld [vmem:[#allocation8 + $0x250] sm:$0xff] }
 0x43d   :  { %1600 = vperm.xlu0 %2856, %v1458_v12   ;;  %1595 = vperm.xlu1 %2855, %v1457_v36   ;;  %v1876_v12 = vld [vmem:[#allocation8 + $0x268] sm:$0xff]  ;;  %v1875_v36 = vld [vmem:[#allocation8 + $0x260] sm:$0xff] }
 0x43e   :  { %2193 = vmatprep.subr.mxu0 %v1810_v45  ;;  %2056 = vmatpush2.msra.mxu1 %v1903_v46  ;;  %v1870_v45 = vld [vmem:[#allocation8 + $0x238] sm:$0xff]  ;;  %v1869_v46 = vld [vmem:[#allocation8 + $0x230] sm:$0xff] }
 0x43f   :  { %2194 = vmatpush1.msra.mxu0 %v1809_v63  ;;  %2057 = vmatprep.subr.mxu1 %v1900_v20  ;;  %v1866_v63 = vld [vmem:[#allocation8 + $0x218] sm:$0xff]  ;;  %v1865_v20 = vld [vmem:[#allocation8 + $0x210] sm:$0xff] }
 0x440   :  { %2195 = vmatprep.subr.mxu0 %v1806_v61  ;;  %2058 = vmatpush2.msra.mxu1 %v1899_v8 }
 0x441   :  { %1610 = vperm.xlu0 %2856, %v1460_v11   ;;  %1605 = vperm.xlu1 %2855, %v1459_v13   ;;  %v1901_v11 = vld [vmem:[#allocation8 + $0x330] sm:$0xff]  ;;  %v1898_v13 = vld [vmem:[#allocation8 + $0x318] sm:$0xff] }
 0x442   :  { %2196 = vmatpush1.msra.mxu0 %v1805_v7  ;;  %2059 = vmatprep.subr.mxu1 %v1896_v16 }
 0x443   :  { %2197 = vmatprep.subr.mxu0 %v1802_v52  ;;  %2060 = vmatpush2.msra.mxu1 %v1895_v55 }
 0x444   :  { %2198 = vmatpush1.msra.mxu0 %v1801_v25  ;;  %2061 = vmatprep.subr.mxu1 %v1892_v32 }
 0x445   :  { %1620 = vperm.xlu0 %2856, %v1462_v2   ;;  %1615 = vperm.xlu1 %2855, %v1461_v38   ;;  %v1889_v2 = vld [vmem:[#allocation8 + $0x2d0] sm:$0xff] }
 0x446   :  { %2199 = vmatprep.subr.mxu0 %v1926_v44  ;;  %2062 = vmatpush2.msra.mxu1 %v1891_v53  ;;  %v1885_v38 = vld [vmem:[#allocation8 + $0x2b0] sm:$0xff] }
 0x447   :  { %2200 = vmatpush2.msra.mxu0 %v1925_v49  ;;  %2063 = vmatprep.subr.mxu1 %v1888_v35  ;;  %v119_v49 = vld [vmem:[#allocation5 + $0x18] sm:$0xff]  ;;  %v118_v35 = vld [vmem:[#allocation5 + $0x10] sm:$0xff] }
 0x448   :  { %2201 = vmatprep.subr.mxu0 %v1922_v17  ;;  %2064 = vmatpush2.msra.mxu1 %v1887_v4 }
 0x449   :  { %2202 = vmatpush2.msra.mxu0 %v1921_v3  ;;  %2065 = vmatprep.subr.mxu1 %v1884_v34  ;;  %v116_v3 = vld [vmem:[#allocation5] sm:$0xff]  ;;  %v117_v34 = vld [vmem:[#allocation5 + $0x8] sm:$0xff] }
 0x44a   :  { %2203 = vmatprep.subr.mxu0 %v1918_v56  ;;  %2066 = vmatpush2.msra.mxu1 %v1883_v31 }
 0x44b   :  { %2204 = vmatpush2.msra.mxu0 %v1917_v21  ;;  %2067 = vmatprep.subr.mxu1 %v1880_v26  ;;  %v121_v21 = vld [vmem:[#allocation5 + $0x28] sm:$0xff]  ;;  %v120_v26 = vld [vmem:[#allocation5 + $0x20] sm:$0xff] }
 0x44c   :  { %2205 = vmatprep.subr.mxu0 %v1914_v0  ;;  %2068 = vmatpush2.msra.mxu1 %v1879_v50 }
 0x44d   :  { %2206 = vmatpush2.msra.mxu0 %v1913_v39  ;;  %2069 = vmatprep.subr.mxu1 %v1876_v12 }
 0x44e   :  { %2207 = vmatprep.subr.mxu0 %v1910_v18  ;;  %2070 = vmatpush2.msra.mxu1 %v1875_v36 }
 0x44f   :  { %2208 = vmatpush2.msra.mxu0 %v1909_v57  ;;  %2071 = vmatprep.subr.mxu1 %v1872_v19  ;;  %v123_v19 = vld [vmem:[#allocation5 + $0x38] sm:$0xff] }
 0x450   :  { %2209 = vmatprep.subr.mxu0 %v1906_v1  ;;  %2072 = vmatpush2.msra.mxu1 %v1871_v62  ;;  %v122_v1 = vld [vmem:[#allocation5 + $0x30] sm:$0xff]  ;;  %v133_v62 = vld [vmem:[#allocation5 + $0x88] sm:$0xff] }
 0x451   :  { %2210 = vmatpush2.msra.mxu0 %v1905_v24  ;;  %2073 = vmatprep.subr.mxu1 %v1868_v22  ;;  %v132_v24 = vld [vmem:[#allocation5 + $0x80] sm:$0xff] }
 0x452   :  { %2211 = vmatprep.subr.mxu0 %v1902_v37  ;;  %2074 = vmatpush2.msra.mxu1 %v1867_v23 }
 0x453   :  { %2212 = vmatpush2.msra.mxu0 %v1901_v11  ;;  %2075 = vmatprep.subr.mxu1 %v1864_v29 }
 0x454   :  { %2213 = vmatprep.subr.mxu0 %v1898_v13  ;;  %2160 = vmatprep.mubr.f32.mxu0 %v3217_v58 }
 0x455   :  { %2214 = vmatpush2.msra.mxu0 %v1897_v47  ;;  %2076 = vmatpush2.msra.mxu1 %v1863_v30  ;;  %v125_v30 = vld [vmem:[#allocation5 + $0x48] sm:$0xff] }
 0x456   :  { %2161 = vmatmul.mubr.f32.gmra.mxu0 %v4079_v59  ;;  %2215 = vmatprep.subr.mxu0 %v1894_v48  ;;  %v124_v48 = vld [vmem:[#allocation5 + $0x40] sm:$0xff] }
 0x457   :  { %2216 = vmatpush2.msra.mxu0 %v1893_v42  ;;  %2244 = vmatprep.subr.mxu1 %v1990_v14 }
 0x458   :  { %2217 = vmatprep.subr.mxu0 %v1890_v54 }
 0x459   :  { %2218 = vmatpush2.msra.mxu0 %v1889_v2 }
 0x45a   :  { %2219 = vmatprep.subr.mxu0 %v1886_v60 }
 0x45b   :  { %2220 = vmatpush2.msra.mxu0 %v1885_v38 }
 0x45c   :  { %2221 = vmatprep.subr.mxu0 %v1882_v40 }
 0x45d   :  { %2222 = vmatpush2.msra.mxu0 %v1881_v43  ;;  %v135_v43 = vld [vmem:[#allocation5 + $0x98] sm:$0xff] }
 0x45e   :  { %2223 = vmatprep.subr.mxu0 %v1878_v6 }
 0x45f   :  { %2224 = vmatpush2.msra.mxu0 %v1877_v15 }
 0x460   :  { %2225 = vmatprep.subr.mxu0 %v1874_v9  ;;  %v134_v9 = vld [vmem:[#allocation5 + $0x90] sm:$0xff] }
 0x461   :  { %2226 = vmatpush2.msra.mxu0 %v1873_v10  ;;  %v137_v10 = vld [vmem:[#allocation5 + $0xa8] sm:$0xff] }
 0x462   :  { %2227 = vmatprep.subr.mxu0 %v1870_v45 }
 0x463   :  { %2228 = vmatpush2.msra.mxu0 %v1869_v46 }
 0x464   :  { %2229 = vmatprep.subr.mxu0 %v1866_v63  ;;  %v127_v63 = vld [vmem:[#allocation5 + $0x58] sm:$0xff] }
 0x465   :  { %2230 = vmatpush2.msra.mxu0 %v1865_v20 }
 0x484   :  { %v1551_v61 = vpop.permute.xlu0 %1550  ;;  %v1546_v8 = vpop.permute.xlu1 %1545 }
 0x485   :  { %v1640_v42 = vmul.f32 %v1551_v61, %v133_v62  ;;  %v1639_v14 = vmul.f32 %v1546_v8, %v132_v24  ;;  %v139_v61 = vld [vmem:[#allocation5 + $0xb8] sm:$0xff] }
 0x487   :  { %v1711_v20 = vadd.f32 %v1640_v42, %v1639_v14 }
 0x488   :  { %v1561_v7 = vpop.permute.xlu0 %1560  ;;  %v1556_v16 = vpop.permute.xlu1 %1555 }
 0x48c   :  { %v1571_v52 = vpop.permute.xlu0 %1570  ;;  %v4083_v55 = vpop.permute.xlu1 %1565 }
 0x490   :  { %v4085_v25 = vpop.permute.xlu0 %1580  ;;  %v4087_v32 = vpop.permute.xlu1 %1575 }
 0x494   :  { %v1466_v44 = vpop.permute.xlu0 %1465  ;;  %v1471_v53 = vpop.permute.xlu1 %1470 }
 0x495   :  { %v1623_v0 = vmul.f32 %v1466_v44, %v116_v3  ;;  %v1624_v50 = vmul.f32 %v1471_v53, %v117_v34  ;;  %v136_v44 = vld [vmem:[#allocation5 + $0xa0] sm:$0xff]  ;;  %v1641_v34 = vmul.f32 %v1556_v16, %v134_v9 }
 0x497   :  { %v1655_v22 = vadd.f32 %v1624_v50, %v1623_v0  ;;  %v1643_v0 = vmul.f32 %v4083_v55, %v136_v44  ;;  %v141_v44 = vld [vmem:[#allocation5 + $0xc8] sm:$0xff] }
 0x498   :  { %v1481_v17 = vpop.permute.xlu0 %1480  ;;  %v1476_v4 = vpop.permute.xlu1 %1475 }
 0x499   :  { %v1626_v56 = vmul.f32 %v1481_v17, %v119_v49  ;;  %v1625_v31 = vmul.f32 %v1476_v4, %v118_v35  ;;  %v1656_v2 = vrot.slane %v1655_v22, 4  ;;  %v126_v49 = vld [vmem:[#allocation5 + $0x50] sm:$0xff]  ;;  %v1642_v35 = vmul.f32 %v1561_v7, %v135_v43 }
 0x49a   :  { %v1646_v7 = vmul.f32 %v4085_v25, %v139_v61 }
 0x49b   :  { %v1662_v57 = vadd.f32 %v1626_v56, %v1625_v31  ;;  %v1657_v8 = vadd.f32 %v1656_v2, %v1655_v22  ;;  %v1644_v56 = vmul.f32 %v1571_v52, %v137_v10  ;;  %v138_v31 = vld [vmem:[#allocation5 + $0xb0] sm:$0xff] }
 0x49c   :  { %v1491_v39 = vpop.permute.xlu0 %1490  ;;  %v1486_v12 = vpop.permute.xlu1 %1485 }
 0x49d   :  { %v1628_v18 = vmul.f32 %v1491_v39, %v121_v21  ;;  %v1627_v36 = vmul.f32 %v1486_v12, %v120_v26  ;;  %v1663_v47 = vrot.slane %v1662_v57, 4  ;;  %v1658_v62 = vrot.slane %v1657_v8, 2 }
 0x49e   :  { %v1725_v55 = vadd.f32 %v1644_v56, %v1643_v0 }
 0x49f   :  { %v1669_v37 = vadd.f32 %v1628_v18, %v1627_v36  ;;  %v1664_v45 = vadd.f32 %v1663_v47, %v1662_v57  ;;  %v129_v18 = vld [vmem:[#allocation5 + $0x68] sm:$0xff]  ;;  %v128_v36 = vld [vmem:[#allocation5 + $0x60] sm:$0xff]  ;;  %v1712_v57 = vrot.slane %v1711_v20, 4 }
 0x4a0   :  { %v1501_v23 = vpop.permute.xlu0 %1500  ;;  %v1496_v11 = vpop.permute.xlu1 %1495  ;;  %v1726_v10 = vrot.slane %v1725_v55, 4 }
 0x4a1   :  { %v1630_v29 = vmul.f32 %v1501_v23, %v123_v19  ;;  %v1629_v13 = vmul.f32 %v1496_v11, %v122_v1  ;;  %v1670_v60 = vrot.slane %v1669_v37, 4  ;;  %v1665_v50 = vrot.slane %v1664_v45, 2 }
 0x4a2   :  { %v1645_v1 = vmul.f32 %v4087_v32, %v138_v31  ;;  %v4092_v42 = vadd.f32 %v1712_v57, %v1711_v20  ;;  %v1659_v32 = vadd.f32 %v1658_v62, %v1657_v8  ;;  %v142_v62 = vld [vmem:[#allocation5 + $0xd0] sm:$0xff] }
 0x4a3   :  { %v1676_v54 = vadd.f32 %v1630_v29, %v1629_v13  ;;  %v1671_v17 = vadd.f32 %v1670_v60, %v1669_v37  ;;  %v1718_v37 = vadd.f32 %v1642_v35, %v1641_v34  ;;  %v1666_v29 = vadd.f32 %v1665_v50, %v1664_v45 }
 0x4a4   :  { %v1511_v38 = vpop.permute.xlu0 %1510  ;;  %v1506_v40 = vpop.permute.xlu1 %1505  ;;  %v1714_v20 = vrot.slane %v4092_v42, 2 }
 0x4a5   :  { %v1632_v6 = vmul.f32 %v1511_v38, %v125_v30  ;;  %v1631_v15 = vmul.f32 %v1506_v40, %v124_v48  ;;  %v1677_v46 = vrot.slane %v1676_v54, 4  ;;  %v1672_v24 = vrot.slane %v1671_v17, 2  ;;  %v131_v30 = vld [vmem:[#allocation5 + $0x78] sm:$0xff]  ;;  %v130_v48 = vld [vmem:[#allocation5 + $0x70] sm:$0xff] }
 0x4a6   :  { %v1719_v43 = vrot.slane %v1718_v37, 4  ;;  %v1667_v45 = vrot.slane %v1666_v29, 1 }
 0x4a7   :  { %v1683_v53 = vadd.f32 %v1632_v6, %v1631_v15  ;;  %v1678_v39 = vadd.f32 %v1677_v46, %v1676_v54  ;;  %v1732_v54 = vadd.f32 %v1646_v7, %v1645_v1  ;;  %v1673_v2 = vadd.f32 %v1672_v24, %v1671_v17 }
 0x4a8   :  { %v1521_v4 = vpop.permute.xlu0 %1520  ;;  %v1516_v3 = vpop.permute.xlu1 %1515  ;;  %v1660_v17 = vrot.slane %v1659_v32, 1  ;;  %v1720_v50 = vadd.f32 %v1719_v43, %v1718_v37 }
 0x4a9   :  { %v1684_v21 = vrot.slane %v1683_v53, 4  ;;  %v1634_v26 = vmul.f32 %v1521_v4, %v127_v63  ;;  %v1633_v12 = vmul.f32 %v1516_v3, %v126_v49  ;;  %v1679_v13 = vrot.slane %v1678_v39, 2 }
 0x4aa   :  { %v1733_v8 = vrot.slane %v1732_v54, 4  ;;  %v1674_v4 = vrot.slane %v1673_v2, 1  ;;  %v1721_v37 = vrot.slane %v1720_v50, 2 }
 0x4ab   :  { %v1685_v19 = vadd.f32 %v1684_v21, %v1683_v53  ;;  %v1690_v16 = vadd.f32 %v1634_v26, %v1633_v12  ;;  %v1680_v46 = vadd.f32 %v1679_v13, %v1678_v39  ;;  %v140_v53 = vld [vmem:[#allocation5 + $0xc0] sm:$0xff]  ;;  %v1727_v39 = vadd.f32 %v1726_v10, %v1725_v55 }
 0x4ac   :  { %v1531_v52 = vpop.permute.xlu0 %1530  ;;  %v1526_v22 = vpop.permute.xlu1 %1525  ;;  %v1668_v12 = vadd.f32 %v1667_v45, %v1666_v29  ;;  %v1734_v24 = vadd.f32 %v1733_v8, %v1732_v54  ;;  %v147_v8 = vld [vmem:[#allocation5 + $0xf8] sm:$0xff] }
 0x4ad   :  { %v1636_v23 = vmul.f32 %v1531_v52, %v129_v18  ;;  %v1635_v11 = vmul.f32 %v1526_v22, %v128_v36  ;;  %v1691_v47 = vrot.slane %v1690_v16, 4  ;;  %v1686_v25 = vrot.slane %v1685_v19, 2  ;;  %v143_v36 = vld [vmem:[#allocation5 + $0xd8] sm:$0xff] }
 0x4ae   :  { %v1681_v18 = vrot.slane %v1680_v46, 1  ;;  %v1675_v52 = vadd.f32 %v1674_v4, %v1673_v2  ;;  %v1728_v55 = vrot.slane %v1727_v39, 2  ;;  %v1722_v4 = vadd.f32 %v1721_v37, %v1720_v50 }
 0x4af   :  { %v1697_v14 = vadd.f32 %v1636_v23, %v1635_v11  ;;  %v1692_v60 = vadd.f32 %v1691_v47, %v1690_v16  ;;  %v1687_v49 = vadd.f32 %v1686_v25, %v1685_v19  ;;  %v1661_v16 = vadd.f32 %v1660_v17, %v1659_v32  ;;  %v146_v17 = vld [vmem:[#allocation5 + $0xf0] sm:$0xff] }
 0x4b0   :  { %v1541_v38 = vpop.permute.xlu0 %1540  ;;  %v1536_v40 = vpop.permute.xlu1 %1535  ;;  %v1682_v29 = vadd.f32 %v1681_v18, %v1680_v46  ;;  %v1735_v32 = vrot.slane %v1734_v24, 2  ;;  %v1715_v46 = vadd.f32 %v1714_v20, %v4092_v42 }
 0x4b1   :  { %v1698_v6 = vrot.slane %v1697_v14, 4  ;;  %v1638_v15 = vmul.f32 %v1541_v38, %v131_v30  ;;  %v1637_v9 = vmul.f32 %v1536_v40, %v130_v48  ;;  %v1693_v63 = vrot.slane %v1692_v60, 2 }
 0x4b2   :  { %v1688_v57 = vrot.slane %v1687_v49, 1  ;;  %v1783_v38 = vsel %vm845_vm1, %v1668_v12, %v1661_v16 }
 0x4b3   :  { %v1699_v35 = vadd.f32 %v1698_v6, %v1697_v14  ;;  %v1704_v61 = vadd.f32 %v1638_v15, %v1637_v9  ;;  %v1694_v3 = vadd.f32 %v1693_v63, %v1692_v60  ;;  %v145_v14 = vld [vmem:[#allocation5 + $0xe8] sm:$0xff]  ;;  %v144_v60 = vld [vmem:[#allocation5 + $0xe0] sm:$0xff]  ;;  %v1784_v10 = vsel %vm847_vm2, %v1675_v52, %v1783_v38  ;;  %v1978_v38 = vld [vmem:[#allocation8 + $0x598] sm:$0xff] }
 0x4b4   :  { %v1591_v34 = vpop.permute.xlu0 %1590  ;;  %v1586_v56 = vpop.permute.xlu1 %1585  ;;  %v1689_v40 = vadd.f32 %v1688_v57, %v1687_v49  ;;  %v1785_v49 = vsel %vm849_vm3, %v1682_v29, %v1784_v10 }
 0x4b5   :  { %v1700_v31 = vrot.slane %v1699_v35, 2  ;;  %v1705_v21 = vrot.slane %v1704_v61, 4  ;;  %v1648_v26 = vmul.f32 %v1591_v34, %v141_v44  ;;  %v1647_v0 = vmul.f32 %v1586_v56, %v140_v53 }
 0x4b6   :  { %v1695_v22 = vrot.slane %v1694_v3, 1  ;;  %v1786_v56 = vsel %vm851_vm4, %v1689_v40, %v1785_v49  ;;  %v1965_v49 = vld [vmem:[#allocation8 + $0x530] sm:$0xff] }
 0x4b7   :  { %v1701_v7 = vadd.f32 %v1700_v31, %v1699_v35  ;;  %v1706_v19 = vadd.f32 %v1705_v21, %v1704_v61  ;;  %v1739_v1 = vadd.f32 %v1648_v26, %v1647_v0  ;;  %v1729_v31 = vadd.f32 %v1728_v55, %v1727_v39  ;;  %v1986_v39 = vld [vmem:[#allocation8 + $0x5d8] sm:$0xff]  ;;  %v1981_v55 = vld [vmem:[#allocation8 + $0x5b0] sm:$0xff] }
 0x4b8   :  { %v1601_v23 = vpop.permute.xlu0 %1600  ;;  %v1596_v11 = vpop.permute.xlu1 %1595  ;;  %v1696_v2 = vadd.f32 %v1695_v22, %v1694_v3  ;;  %v1736_v21 = vadd.f32 %v1735_v32, %v1734_v24 }
 0x4b9   :  { %v1702_v13 = vrot.slane %v1701_v7, 1  ;;  %v1707_v47 = vrot.slane %v1706_v19, 2  ;;  %v1740_v30 = vrot.slane %v1739_v1, 4  ;;  %v1650_v48 = vmul.f32 %v1601_v23, %v143_v36  ;;  %v1985_v23 = vld [vmem:[#allocation8 + $0x5d0] sm:$0xff] }
 0x4ba   :  { %v1649_v25 = vmul.f32 %v1596_v11, %v142_v62  ;;  %v1787_v18 = vsel %vm853_vm5, %v1696_v2, %v1786_v56  ;;  %v1723_v62 = vrot.slane %v1722_v4, 1  ;;  %v1730_v24 = vrot.slane %v1729_v31, 1 }
 0x4bb   :  { %v1708_v43 = vadd.f32 %v1707_v47, %v1706_v19  ;;  %v1741_v54 = vadd.f32 %v1740_v30, %v1739_v1  ;;  %v1703_v44 = vadd.f32 %v1702_v13, %v1701_v7  ;;  %v1989_v1 = vld [vmem:[#allocation8 + $0x5f0] sm:$0xff]  ;;  %v1716_v11 = vrot.slane %v1715_v46, 1 }
 0x4bc   :  { %v1746_v6 = vadd.f32 %v1650_v48, %v1649_v25  ;;  %v1611_v15 = vpop.permute.xlu0 %1610  ;;  %v1606_v9 = vpop.permute.xlu1 %1605  ;;  %v1737_v13 = vrot.slane %v1736_v21, 1  ;;  %v1982_v48 = vld [vmem:[#allocation8 + $0x5b8] sm:$0xff]  ;;  %v1724_v29 = vadd.f32 %v1723_v62, %v1722_v4  ;;  %v1731_v40 = vadd.f32 %v1730_v24, %v1729_v31  ;;  %v1961_v31 = vld [vmem:[#allocation8 + $0x510] sm:$0xff] }
 0x4bd   :  { %v1652_v45 = vmul.f32 %v1611_v15, %v145_v14  ;;  %v1651_v63 = vmul.f32 %v1606_v9, %v144_v60  ;;  %v1709_v53 = vrot.slane %v1708_v43, 1  ;;  %v1742_v35 = vrot.slane %v1741_v54, 2  ;;  %v1973_v9 = vld [vmem:[#allocation8 + $0x570] sm:$0xff]  ;;  %v1938_v62 = vld [vmem:[#allocation8 + $0x458] sm:$0xff] }
 0x4be   :  { %v1747_v61 = vrot.slane %v1746_v6, 4  ;;  %v1788_v57 = vsel %vm855_vm6, %v1703_v44, %v1787_v18  ;;  %v1970_v44 = vld [vmem:[#allocation8 + $0x558] sm:$0xff]  ;;  %v1929_v24 = vld [vmem:[#allocation8 + $0x410] sm:$0xff] }
 0x4bf   :  { %v1753_v34 = vadd.f32 %v1652_v45, %v1651_v63  ;;  %v1710_v3 = vadd.f32 %v1709_v53, %v1708_v43  ;;  %v1743_v7 = vadd.f32 %v1742_v35, %v1741_v54  ;;  %v1977_v43 = vld [vmem:[#allocation8 + $0x590] sm:$0xff]  ;;  %v1717_v54 = vadd.f32 %v1716_v11, %v1715_v46  ;;  %v1966_v46 = vld [vmem:[#allocation8 + $0x538] sm:$0xff] }
 0x4c0   :  { %v1748_v26 = vadd.f32 %v1747_v61, %v1746_v6  ;;  %v1621_v0 = vpop.permute.xlu0 %1620  ;;  %v1616_v12 = vpop.permute.xlu1 %1615  ;;  %v1974_v6 = vld [vmem:[#allocation8 + $0x578] sm:$0xff]  ;;  %v1969_v53 = vld [vmem:[#allocation8 + $0x550] sm:$0xff] }
 0x4c1   :  { %v1754_v36 = vrot.slane %v1753_v34, 4  ;;  %v1654_v42 = vmul.f32 %v1621_v0, %v147_v8  ;;  %v1653_v20 = vmul.f32 %v1616_v12, %v146_v17  ;;  %v1789_v50 = vsel %vm857_vm7, %v1710_v3, %v1788_v57  ;;  %v1958_v0 = vld [vmem:[#allocation8 + $0x4f8] sm:$0xff]  ;;  %v1957_v12 = vld [vmem:[#allocation8 + $0x4f0] sm:$0xff] }
 0x4c2   :  { %v1749_v19 = vrot.slane %v1748_v26, 2  ;;  %2077 = vmatprep.mubr.f32.mxu1 %v1789_v50  ;;  %2730 = vst [vmem:[%s4178_s14 + $0x8] sm:$0xff] %v1789_v50  ;;  %2231 = vmatprep.mubr.f32.mxu0 %v1789_v50  ;;  %v1744_v37 = vrot.slane %v1743_v7, 1  ;;  %v1790_v10 = vsel %vm845_vm1, %v1724_v29, %v1717_v54  ;;  %v1954_v18 = vld [vmem:[#allocation8 + $0x4d8] sm:$0xff] }
 0x4c3   :  { %v1755_v16 = vadd.f32 %v1754_v36, %v1753_v34  ;;  %v1760_v52 = vadd.f32 %v1654_v42, %v1653_v20  ;;  %2078 = vmatmul.mubr.f32.vlgmr.msra.gmra.mxu1 %v4061_v51  ;;  %2232 = vmatmul.mubr.f32.vlgmr.msra.gmra.mxu0 %v4061_v51  ;;  %v1738_v51 = vadd.f32 %v1737_v13, %v1736_v21  ;;  %v1962_v34 = vld [vmem:[#allocation8 + $0x518] sm:$0xff]  ;;  %v1953_v36 = vld [vmem:[#allocation8 + $0x4d0] sm:$0xff]  ;;  %v2429_v13 = vld [vmem:[#allocation10 + $0x1e0] sm:$0xff] }
 0x4c4   :  { %v1750_v22 = vadd.f32 %v1749_v19, %v1748_v26  ;;  %2245 = vmatpush1.msra.mxu1 %v1989_v1  ;;  %v1745_v15 = vadd.f32 %v1744_v37, %v1743_v7  ;;  %v1791_v61 = vsel %vm847_vm2, %v1731_v40, %v1790_v10  ;;  %v1950_v42 = vld [vmem:[#allocation8 + $0x4b8] sm:$0xff]  ;;  %v1949_v20 = vld [vmem:[#allocation8 + $0x4b0] sm:$0xff]  ;;  %v2425_v37 = vld [vmem:[#allocation10 + $0x1c0] sm:$0xff] }
 0x4c5   :  { %v1756_v47 = vrot.slane %v1755_v16, 2  ;;  %v1761_v30 = vrot.slane %v1760_v52, 4  ;;  %2246 = vmatprep.subr.mxu1 %v1986_v39  ;;  %v1792_v17 = vsel %vm849_vm3, %v1738_v51, %v1791_v61  ;;  %v1946_v57 = vld [vmem:[#allocation8 + $0x498] sm:$0xff]  ;;  %v3053_v7 = vld [vmem:[%s4165_s1 + $0x10] sm:$0xff]  ;;  %v2413_v51 = vld [vmem:[#allocation10 + $0x160] sm:$0xff] }
 0x4c6   :  { %v1751_v25 = vrot.slane %v1750_v22, 1  ;;  %2247 = vmatpush1.msra.mxu1 %v1985_v23  ;;  %v1793_v4 = vsel %vm851_vm4, %v1745_v15, %v1792_v17  ;;  %v1945_v19 = vld [vmem:[#allocation8 + $0x490] sm:$0xff]  ;;  %v1942_v50 = vld [vmem:[#allocation8 + $0x478] sm:$0xff]  ;;  %v2430_v23 = vld [vmem:[#allocation10 + $0x1e8] sm:$0xff] }
 0x4c7   :  { %v1757_v14 = vadd.f32 %v1756_v47, %v1755_v16  ;;  %v1762_v60 = vadd.f32 %v1761_v30, %v1760_v52  ;;  %2248 = vmatprep.subr.mxu1 %v1982_v48  ;;  %v1941_v1 = vld [vmem:[#allocation8 + $0x470] sm:$0xff]  ;;  %v1934_v52 = vld [vmem:[#allocation8 + $0x438] sm:$0xff]  ;;  %v2426_v30 = vld [vmem:[#allocation10 + $0x1c8] sm:$0xff] }
 0x4c8   :  { %2249 = vmatpush1.msra.mxu1 %v1981_v55  ;;  %v1752_v45 = vadd.f32 %v1751_v25, %v1750_v22  ;;  %v1937_v16 = vld [vmem:[#allocation8 + $0x450] sm:$0xff]  ;;  %v1930_v39 = vld [vmem:[#allocation8 + $0x418] sm:$0xff]  ;;  %v3054_v22 = vld [vmem:[%s4165_s1] sm:$0xff] }
 0x4c9   :  { %v1758_v32 = vrot.slane %v1757_v14, 1  ;;  %v1763_v2 = vrot.slane %v1762_v60, 2  ;;  %2250 = vmatprep.subr.mxu1 %v1978_v38  ;;  %v2432_v11 = vld [vmem:[#allocation10 + $0x1f8] sm:$0xff]  ;;  %v2431_v47 = vld [vmem:[#allocation10 + $0x1f0] sm:$0xff]  ;;  %v2417_v38 = vld [vmem:[#allocation10 + $0x180] sm:$0xff] }
 0x4ca   :  { %2251 = vmatpush1.msra.mxu1 %v1977_v43  ;;  %v1794_v56 = vsel %vm853_vm5, %v1752_v45, %v1793_v4  ;;  %2596 = vmatprep.subr.mxu0 %v2432_v11  ;;  %v2428_v48 = vld [vmem:[#allocation10 + $0x1d8] sm:$0xff]  ;;  %v2427_v55 = vld [vmem:[#allocation10 + $0x1d0] sm:$0xff]  ;;  %v2414_v43 = vld [vmem:[#allocation10 + $0x168] sm:$0xff] }
 0x4cb   :  { %v1764_v63 = vadd.f32 %v1763_v2, %v1762_v60  ;;  %2252 = vmatprep.subr.mxu1 %v1974_v6  ;;  %v1759_v35 = vadd.f32 %v1758_v32, %v1757_v14  ;;  %2597 = vmatpush1.msra.mxu0 %v2431_v47  ;;  %v2424_v29 = vld [vmem:[#allocation10 + $0x1b8] sm:$0xff]  ;;  %v2423_v25 = vld [vmem:[#allocation10 + $0x1b0] sm:$0xff]  ;;  %v2418_v14 = vld [vmem:[#allocation10 + $0x188] sm:$0xff] }
 0x4cc   :  { %2253 = vmatpush1.msra.mxu1 %v1973_v9  ;;  %2598 = vmatprep.subr.mxu0 %v2428_v48  ;;  %v2420_v60 = vld [vmem:[#allocation10 + $0x198] sm:$0xff]  ;;  %v2419_v40 = vld [vmem:[#allocation10 + $0x190] sm:$0xff]  ;;  %v2410_v2 = vld [vmem:[#allocation10 + $0x148] sm:$0xff] }
 0x4cd   :  { %v1765_v8 = vrot.slane %v1764_v63, 1  ;;  %2254 = vmatprep.subr.mxu1 %v1970_v44  ;;  %v1795_v21 = vsel %vm855_vm6, %v1759_v35, %v1794_v56  ;;  %2599 = vmatpush1.msra.mxu0 %v2427_v55  ;;  %v2416_v54 = vld [vmem:[#allocation10 + $0x178] sm:$0xff]  ;;  %v2415_v32 = vld [vmem:[#allocation10 + $0x170] sm:$0xff]  ;;  %v2409_v15 = vld [vmem:[#allocation10 + $0x140] sm:$0xff] }
 0x4ce   :  { %2255 = vmatpush1.msra.mxu1 %v1969_v53  ;;  %2600 = vmatprep.subr.mxu0 %v2424_v29  ;;  %v2412_v6 = vld [vmem:[#allocation10 + $0x158] sm:$0xff]  ;;  %v2411_v9 = vld [vmem:[#allocation10 + $0x150] sm:$0xff]  ;;  %v2406_v10 = vld [vmem:[#allocation10 + $0x128] sm:$0xff] }
 0x4cf   :  { %v1766_v3 = vadd.f32 %v1765_v8, %v1764_v63  ;;  %2256 = vmatprep.subr.mxu1 %v1966_v46  ;;  %2601 = vmatpush1.msra.mxu0 %v2423_v25  ;;  %v2408_v45 = vld [vmem:[#allocation10 + $0x138] sm:$0xff]  ;;  %v2405_v63 = vld [vmem:[#allocation10 + $0x120] sm:$0xff]  ;;  %v2407_v44 = vld [vmem:[#allocation10 + $0x130] sm:$0xff] }
 0x4d0   :  { %2257 = vmatpush1.msra.mxu1 %v1965_v49  ;;  %2602 = vmatprep.subr.mxu0 %v2420_v60  ;;  %v2402_v53 = vld [vmem:[#allocation10 + $0x108] sm:$0xff]  ;;  %v2404_v35 = vld [vmem:[#allocation10 + $0x118] sm:$0xff]  ;;  %v2401_v61 = vld [vmem:[#allocation10 + $0x100] sm:$0xff] }
 0x4d1   :  { %v1796_v26 = vsel %vm857_vm7, %v1766_v3, %v1795_v21  ;;  %2258 = vmatprep.subr.mxu1 %v1962_v34  ;;  %2603 = vmatpush1.msra.mxu0 %v2419_v40  ;;  %v2403_v46 = vld [vmem:[#allocation10 + $0x110] sm:$0xff]  ;;  %v2398_v8 = vld [vmem:[#allocation10 + $0xe8] sm:$0xff]  ;;  %v2400_v17 = vld [vmem:[#allocation10 + $0xf8] sm:$0xff] }
 0x4d2   :  { %2083 = vmatprep.mubr.f32.mxu1 %v1796_v26  ;;  %2733 = vst [vmem:[%s4178_s14 + $0x20] sm:$0xff] %v1796_v26  ;;  %2259 = vmatpush1.msra.mxu1 %v1961_v31  ;;  %v2397_v49 = vld [vmem:[#allocation10 + $0xe0] sm:$0xff]  ;;  %v2399_v4 = vld [vmem:[#allocation10 + $0xf0] sm:$0xff]  ;;  %v2394_v34 = vld [vmem:[#allocation10 + $0xc8] sm:$0xff] }
 0x4d3   :  { %2237 = vmatprep.mubr.f32.mxu0 %v1796_v26  ;;  %2260 = vmatprep.subr.mxu1 %v1958_v0  ;;  %v2396_v3 = vld [vmem:[#allocation10 + $0xd8] sm:$0xff]  ;;  %v2393_v56 = vld [vmem:[#allocation10 + $0xc0] sm:$0xff]  ;;  %v2395_v31 = vld [vmem:[#allocation10 + $0xd0] sm:$0xff] }
 0x4d4   :  { %2084 = vmatmul.mubr.f32.gmra.mxu1 %v4070_v5  ;;  %2238 = vmatmul.mubr.f32.gmra.mxu0 %v4070_v5  ;;  %v1933_v5 = vld [vmem:[#allocation8 + $0x430] sm:$0xff]  ;;  %v2390_v21 = vld [vmem:[#allocation10 + $0xa8] sm:$0xff]  ;;  %v2392_v26 = vld [vmem:[#allocation10 + $0xb8] sm:$0xff] }
 0x4d5   :  { %2261 = vmatpush1.msra.mxu1 %v1957_v12  ;;  %2308 = vmatprep.mubr.f32.mxu1 %v3217_v58  ;;  %v2389_v0 = vld [vmem:[#allocation10 + $0xa0] sm:$0xff]  ;;  %v2391_v12 = vld [vmem:[#allocation10 + $0xb0] sm:$0xff]  ;;  %v2372_v11 = vld [vmem:[#allocation10 + $0x18] sm:$0xff] }
 0x4d6   :  { %2262 = vmatprep.subr.mxu1 %v1954_v18  ;;  %2660 = vmatprep.mubr.f32.mxu0 %v3053_v7  ;;  %v2386_v18 = vld [vmem:[#allocation10 + $0x88] sm:$0xff]  ;;  %v2371_v47 = vld [vmem:[#allocation10 + $0x10] sm:$0xff]  ;;  %v2496_v48 = vld [vmem:[#allocation10 + $0x3f8] sm:$0xff] }
 0x4d7   :  { %2263 = vmatpush1.msra.mxu1 %v1953_v36  ;;  %2604 = vmatprep.subr.mxu0 %v2416_v54  ;;  %v2388_v36 = vld [vmem:[#allocation10 + $0x98] sm:$0xff]  ;;  %v2495_v55 = vld [vmem:[#allocation10 + $0x3f0] sm:$0xff] }
 0x4d8   :  { %2264 = vmatprep.subr.mxu1 %v1950_v42  ;;  %2605 = vmatpush1.msra.mxu0 %v2415_v32  ;;  %v2385_v42 = vld [vmem:[#allocation10 + $0x80] sm:$0xff]  ;;  %v2492_v29 = vld [vmem:[#allocation10 + $0x3d8] sm:$0xff]  ;;  %v2491_v25 = vld [vmem:[#allocation10 + $0x3d0] sm:$0xff] }
 0x4d9   :  { %2265 = vmatpush1.msra.mxu1 %v1949_v20  ;;  %2606 = vmatprep.subr.mxu0 %v2412_v6  ;;  %v2387_v20 = vld [vmem:[#allocation10 + $0x90] sm:$0xff]  ;;  %v2488_v60 = vld [vmem:[#allocation10 + $0x3b8] sm:$0xff] }
 0x4da   :  { %2266 = vmatprep.subr.mxu1 %v1946_v57  ;;  %2607 = vmatpush1.msra.mxu0 %v2411_v9  ;;  %v2382_v57 = vld [vmem:[#allocation10 + $0x68] sm:$0xff]  ;;  %v2487_v40 = vld [vmem:[#allocation10 + $0x3b0] sm:$0xff]  ;;  %v2484_v54 = vld [vmem:[#allocation10 + $0x398] sm:$0xff] }
 0x4db   :  { %2267 = vmatpush1.msra.mxu1 %v1945_v19  ;;  %2608 = vmatprep.subr.mxu0 %v2408_v45  ;;  %v2381_v19 = vld [vmem:[#allocation10 + $0x60] sm:$0xff]  ;;  %v2483_v32 = vld [vmem:[#allocation10 + $0x390] sm:$0xff]  ;;  %v2480_v6 = vld [vmem:[#allocation10 + $0x378] sm:$0xff] }
 0x4dc   :  { %2268 = vmatprep.subr.mxu1 %v1942_v50  ;;  %2609 = vmatpush1.msra.mxu0 %v2407_v44  ;;  %v2383_v50 = vld [vmem:[#allocation10 + $0x70] sm:$0xff]  ;;  %v2476_v45 = vld [vmem:[#allocation10 + $0x358] sm:$0xff] }
 0x4dd   :  { %2269 = vmatpush1.msra.mxu1 %v1941_v1  ;;  %2610 = vmatprep.subr.mxu0 %v2404_v35  ;;  %v2378_v1 = vld [vmem:[#allocation10 + $0x48] sm:$0xff]  ;;  %v2479_v9 = vld [vmem:[#allocation10 + $0x370] sm:$0xff]  ;;  %v2472_v35 = vld [vmem:[#allocation10 + $0x338] sm:$0xff] }
 0x4de   :  { %2270 = vmatprep.subr.mxu1 %v1938_v62  ;;  %2611 = vmatpush1.msra.mxu0 %v2403_v46  ;;  %v2380_v62 = vld [vmem:[#allocation10 + $0x58] sm:$0xff]  ;;  %v2475_v44 = vld [vmem:[#allocation10 + $0x350] sm:$0xff] }
 0x4df   :  { %2271 = vmatpush1.msra.mxu1 %v1937_v16  ;;  %2612 = vmatprep.subr.mxu0 %v2400_v17  ;;  %v2377_v16 = vld [vmem:[#allocation10 + $0x40] sm:$0xff]  ;;  %v2471_v46 = vld [vmem:[#allocation10 + $0x330] sm:$0xff]  ;;  %v2468_v17 = vld [vmem:[#allocation10 + $0x318] sm:$0xff] }
 0x4e0   :  { %2272 = vmatprep.subr.mxu1 %v1934_v52  ;;  %2613 = vmatpush1.msra.mxu0 %v2399_v4  ;;  %v2379_v52 = vld [vmem:[#allocation10 + $0x50] sm:$0xff] }
 0x4e1   :  { %2273 = vmatpush1.msra.mxu1 %v1933_v5  ;;  %2614 = vmatprep.subr.mxu0 %v2396_v3  ;;  %v2374_v5 = vld [vmem:[#allocation10 + $0x28] sm:$0xff]  ;;  %v2467_v4 = vld [vmem:[#allocation10 + $0x310] sm:$0xff]  ;;  %v2464_v3 = vld [vmem:[#allocation10 + $0x2f8] sm:$0xff] }
 0x4e2   :  { %2274 = vmatprep.subr.mxu1 %v1930_v39  ;;  %2615 = vmatpush1.msra.mxu0 %v2395_v31  ;;  %v2376_v39 = vld [vmem:[#allocation10 + $0x38] sm:$0xff]  ;;  %v2463_v31 = vld [vmem:[#allocation10 + $0x2f0] sm:$0xff] }
 0x4e3   :  { %2275 = vmatpush1.msra.mxu1 %v1929_v24  ;;  %2616 = vmatprep.subr.mxu0 %v2392_v26  ;;  %v2373_v24 = vld [vmem:[#allocation10 + $0x20] sm:$0xff]  ;;  %v2460_v26 = vld [vmem:[#allocation10 + $0x2d8] sm:$0xff] }
 0x4e4   :  { %2309 = vmatmul.mubr.f32.vlgmr.msra.gmra.mxu1 %v3054_v22  ;;  %2519 = vmatprep.subr.mxu1 %v2430_v23  ;;  %v2375_v22 = vld [vmem:[#allocation10 + $0x30] sm:$0xff]  ;;  %v2370_v23 = vld [vmem:[#allocation10 + $0x8] sm:$0xff] }
 0x4e5   :  { %2314 = vmatprep.mubr.f32.mxu1 %v3217_v58  ;;  %2520 = vmatpush1.msra.mxu1 %v2429_v13  ;;  %v2422_v58 = vld [vmem:[#allocation10 + $0x1a8] sm:$0xff]  ;;  %v2369_v13 = vld [vmem:[#allocation10] sm:$0xff] }
 0x4e6   :  { %2521 = vmatprep.subr.mxu1 %v2426_v30  ;;  %2617 = vmatpush1.msra.mxu0 %v2391_v12  ;;  %v2494_v30 = vld [vmem:[#allocation10 + $0x3e8] sm:$0xff]  ;;  %v2459_v12 = vld [vmem:[#allocation10 + $0x2d0] sm:$0xff] }
 0x4e7   :  { %2522 = vmatpush1.msra.mxu1 %v2425_v37  ;;  %2618 = vmatprep.subr.mxu0 %v2388_v36  ;;  %v2493_v37 = vld [vmem:[#allocation10 + $0x3e0] sm:$0xff]  ;;  %v2456_v36 = vld [vmem:[#allocation10 + $0x2b8] sm:$0xff] }
 0x4e8   :  { %2315 = vmatmul.mubr.f32.gmra.mxu1 %v4079_v59  ;;  %2523 = vmatprep.subr.mxu1 %v2422_v58  ;;  %v2421_v59 = vld [vmem:[#allocation10 + $0x1a0] sm:$0xff]  ;;  %v2490_v58 = vld [vmem:[#allocation10 + $0x3c8] sm:$0xff] }
 0x4e9   :  { %2583 = vmatprep.mubr.f32.mxu1 %v3053_v7  ;;  %2524 = vmatpush1.msra.mxu1 %v2421_v59  ;;  %v2384_v7 = vld [vmem:[#allocation10 + $0x78] sm:$0xff]  ;;  %v2489_v59 = vld [vmem:[#allocation10 + $0x3c0] sm:$0xff] }
 0x4ea   :  { %2525 = vmatprep.subr.mxu1 %v2418_v14  ;;  %2619 = vmatpush1.msra.mxu0 %v2387_v20  ;;  %v2486_v14 = vld [vmem:[#allocation10 + $0x3a8] sm:$0xff]  ;;  %v2455_v20 = vld [vmem:[#allocation10 + $0x2b0] sm:$0xff] }
 0x4eb   :  { %2526 = vmatpush1.msra.mxu1 %v2417_v38  ;;  %2620 = vmatprep.subr.mxu0 %v2384_v7  ;;  %v2485_v38 = vld [vmem:[#allocation10 + $0x3a0] sm:$0xff]  ;;  %v2452_v7 = vld [vmem:[#allocation10 + $0x298] sm:$0xff] }
 0x4ec   :  { %2527 = vmatprep.subr.mxu1 %v2414_v43  ;;  %2621 = vmatpush1.msra.mxu0 %v2383_v50  ;;  %v2482_v43 = vld [vmem:[#allocation10 + $0x388] sm:$0xff]  ;;  %v2451_v50 = vld [vmem:[#allocation10 + $0x290] sm:$0xff] }
 0x4ed   :  { %2528 = vmatpush1.msra.mxu1 %v2413_v51  ;;  %2622 = vmatprep.subr.mxu0 %v2380_v62  ;;  %v2481_v51 = vld [vmem:[#allocation10 + $0x380] sm:$0xff]  ;;  %v2448_v62 = vld [vmem:[#allocation10 + $0x278] sm:$0xff] }
 0x4ee   :  { %2529 = vmatprep.subr.mxu1 %v2410_v2  ;;  %2623 = vmatpush1.msra.mxu0 %v2379_v52  ;;  %v2478_v2 = vld [vmem:[#allocation10 + $0x368] sm:$0xff]  ;;  %v2447_v52 = vld [vmem:[#allocation10 + $0x270] sm:$0xff] }
 0x4ef   :  { %2530 = vmatpush1.msra.mxu1 %v2409_v15  ;;  %2624 = vmatprep.subr.mxu0 %v2376_v39  ;;  %v2477_v15 = vld [vmem:[#allocation10 + $0x360] sm:$0xff]  ;;  %v2444_v39 = vld [vmem:[#allocation10 + $0x258] sm:$0xff] }
 0x4f0   :  { %2531 = vmatprep.subr.mxu1 %v2406_v10  ;;  %2625 = vmatpush1.msra.mxu0 %v2375_v22  ;;  %v2474_v10 = vld [vmem:[#allocation10 + $0x348] sm:$0xff]  ;;  %v2443_v22 = vld [vmem:[#allocation10 + $0x250] sm:$0xff] }
 0x4f1   :  { %2532 = vmatpush1.msra.mxu1 %v2405_v63  ;;  %2626 = vmatprep.subr.mxu0 %v2372_v11  ;;  %v2473_v63 = vld [vmem:[#allocation10 + $0x340] sm:$0xff]  ;;  %v2440_v11 = vld [vmem:[#allocation10 + $0x238] sm:$0xff] }
 0x4f2   :  { %2533 = vmatprep.subr.mxu1 %v2402_v53  ;;  %2627 = vmatpush1.msra.mxu0 %v2371_v47  ;;  %v2470_v53 = vld [vmem:[#allocation10 + $0x328] sm:$0xff]  ;;  %v2439_v47 = vld [vmem:[#allocation10 + $0x230] sm:$0xff] }
 0x4f3   :  { %2534 = vmatpush1.msra.mxu1 %v2401_v61  ;;  %2628 = vmatprep.subr.mxu0 %v2496_v48  ;;  %v2469_v61 = vld [vmem:[#allocation10 + $0x320] sm:$0xff]  ;;  %v2436_v48 = vld [vmem:[#allocation10 + $0x218] sm:$0xff] }
 0x4f4   :  { %2535 = vmatprep.subr.mxu1 %v2398_v8  ;;  %2629 = vmatpush2.msra.mxu0 %v2495_v55  ;;  %v2466_v8 = vld [vmem:[#allocation10 + $0x308] sm:$0xff]  ;;  %v2435_v55 = vld [vmem:[#allocation10 + $0x210] sm:$0xff] }
 0x4f5   :  { %2536 = vmatpush1.msra.mxu1 %v2397_v49  ;;  %2630 = vmatprep.subr.mxu0 %v2492_v29  ;;  %v2465_v49 = vld [vmem:[#allocation10 + $0x300] sm:$0xff] }
 0x4f6   :  { %2537 = vmatprep.subr.mxu1 %v2394_v34  ;;  %2631 = vmatpush2.msra.mxu0 %v2491_v25  ;;  %v2462_v34 = vld [vmem:[#allocation10 + $0x2e8] sm:$0xff]  ;;  %v2156_v25 = vpop.f32.mrf.mxu0 }
 0x4f7   :  { %2538 = vmatpush1.msra.mxu1 %v2393_v56  ;;  %2632 = vmatprep.subr.mxu0 %v2488_v60  ;;  %v2461_v56 = vld [vmem:[#allocation10 + $0x2e0] sm:$0xff] }
 0x4f8   :  { %2539 = vmatprep.subr.mxu1 %v2390_v21  ;;  %2633 = vmatpush2.msra.mxu0 %v2487_v40  ;;  %v2458_v21 = vld [vmem:[#allocation10 + $0x2c8] sm:$0xff] }
 0x4f9   :  { %2540 = vmatpush1.msra.mxu1 %v2389_v0  ;;  %2634 = vmatprep.subr.mxu0 %v2484_v54  ;;  %v2457_v0 = vld [vmem:[#allocation10 + $0x2c0] sm:$0xff] }
 0x4fa   :  { %2541 = vmatprep.subr.mxu1 %v2386_v18  ;;  %2635 = vmatpush2.msra.mxu0 %v2483_v32  ;;  %v2454_v18 = vld [vmem:[#allocation10 + $0x2a8] sm:$0xff] }
 0x4fb   :  { %2542 = vmatpush1.msra.mxu1 %v2385_v42  ;;  %2636 = vmatprep.subr.mxu0 %v2480_v6  ;;  %v2453_v42 = vld [vmem:[#allocation10 + $0x2a0] sm:$0xff] }
 0x4fc   :  { %2543 = vmatprep.subr.mxu1 %v2382_v57  ;;  %2637 = vmatpush2.msra.mxu0 %v2479_v9  ;;  %v2450_v57 = vld [vmem:[#allocation10 + $0x288] sm:$0xff] }
 0x4fd   :  { %2544 = vmatpush1.msra.mxu1 %v2381_v19  ;;  %2638 = vmatprep.subr.mxu0 %v2476_v45  ;;  %v2449_v19 = vld [vmem:[#allocation10 + $0x280] sm:$0xff] }
 0x4fe   :  { %2545 = vmatprep.subr.mxu1 %v2378_v1  ;;  %2639 = vmatpush2.msra.mxu0 %v2475_v44  ;;  %v2446_v1 = vld [vmem:[#allocation10 + $0x268] sm:$0xff] }
 0x4ff   :  { %2546 = vmatpush1.msra.mxu1 %v2377_v16  ;;  %2640 = vmatprep.subr.mxu0 %v2472_v35  ;;  %v2445_v16 = vld [vmem:[#allocation10 + $0x260] sm:$0xff] }
 0x500   :  { %2547 = vmatprep.subr.mxu1 %v2374_v5  ;;  %2641 = vmatpush2.msra.mxu0 %v2471_v46  ;;  %v2442_v5 = vld [vmem:[#allocation10 + $0x248] sm:$0xff] }
 0x501   :  { %2548 = vmatpush1.msra.mxu1 %v2373_v24  ;;  %2642 = vmatprep.subr.mxu0 %v2468_v17  ;;  %v2441_v24 = vld [vmem:[#allocation10 + $0x240] sm:$0xff] }
 0x502   :  { %2549 = vmatprep.subr.mxu1 %v2370_v23  ;;  %2643 = vmatpush2.msra.mxu0 %v2467_v4  ;;  %v2438_v23 = vld [vmem:[#allocation10 + $0x228] sm:$0xff] }
 0x503   :  { %2550 = vmatpush1.msra.mxu1 %v2369_v13  ;;  %2644 = vmatprep.subr.mxu0 %v2464_v3  ;;  %v2437_v13 = vld [vmem:[#allocation10 + $0x220] sm:$0xff] }
 0x504   :  { %2551 = vmatprep.subr.mxu1 %v2494_v30  ;;  %2645 = vmatpush2.msra.mxu0 %v2463_v31  ;;  %v2434_v30 = vld [vmem:[#allocation10 + $0x208] sm:$0xff] }
 0x505   :  { %2552 = vmatpush2.msra.mxu1 %v2493_v37  ;;  %2646 = vmatprep.subr.mxu0 %v2460_v26  ;;  %v2433_v37 = vld [vmem:[#allocation10 + $0x200] sm:$0xff] }
 0x506   :  { %2553 = vmatprep.subr.mxu1 %v2490_v58  ;;  %2647 = vmatpush2.msra.mxu0 %v2459_v12  ;;  %v1991_v58 = vld [vmem:[%s4173_s9] sm:$0xf] }
 0x507   :  { %2554 = vmatpush2.msra.mxu1 %v2489_v59  ;;  %2648 = vmatprep.subr.mxu0 %v2456_v36  ;;  %v1996_v29 = vrot.slane %v1991_v58, %v3387_v27  ;;  %v2000_v59 = vrot.slane %v1991_v58, %v3698_v28  ;;  %v2004_v17 = vrot.slane %v1991_v58, %v3705_v33 }
 0x508   :  { %2555 = vmatprep.subr.mxu1 %v2486_v14  ;;  %2649 = vmatpush2.msra.mxu0 %v2455_v20 }
 0x509   :  { %2556 = vmatpush2.msra.mxu1 %v2485_v38  ;;  %2650 = vmatprep.subr.mxu0 %v2452_v7 }
 0x50a   :  { %2557 = vmatprep.subr.mxu1 %v2482_v43  ;;  %2651 = vmatpush2.msra.mxu0 %v2451_v50  ;;  %v2158_v43 = vpop.f32.mrf.mxu0 }
 0x50b   :  { %2558 = vmatpush2.msra.mxu1 %v2481_v51  ;;  %2652 = vmatprep.subr.mxu0 %v2448_v62 }
 0x50c   :  { %2559 = vmatprep.subr.mxu1 %v2478_v2  ;;  %2653 = vmatpush2.msra.mxu0 %v2447_v52 }
 0x50d   :  { %2560 = vmatpush2.msra.mxu1 %v2477_v15  ;;  %2654 = vmatprep.subr.mxu0 %v2444_v39 }
 0x50e   :  { %2561 = vmatprep.subr.mxu1 %v2474_v10  ;;  %2655 = vmatpush2.msra.mxu0 %v2443_v22 }
 0x50f   :  { %2562 = vmatpush2.msra.mxu1 %v2473_v63  ;;  %2656 = vmatprep.subr.mxu0 %v2440_v11 }
 0x510   :  { %2563 = vmatprep.subr.mxu1 %v2470_v53  ;;  %2657 = vmatpush2.msra.mxu0 %v2439_v47 }
 0x511   :  { %2564 = vmatpush2.msra.mxu1 %v2469_v61  ;;  %2658 = vmatprep.subr.mxu0 %v2436_v48 }
 0x512   :  { %2565 = vmatprep.subr.mxu1 %v2466_v8  ;;  %2659 = vmatpush2.msra.mxu0 %v2435_v55 }
 0x513   :  { %2566 = vmatpush2.msra.mxu1 %v2465_v49 }
 0x514   :  { %2567 = vmatprep.subr.mxu1 %v2462_v34  ;;  %v2008_v34 = vrot.slane %v1991_v58, %v3714_v41 }
 0x515   :  { %2568 = vmatpush2.msra.mxu1 %v2461_v56 }
 0x516   :  { %2569 = vmatprep.subr.mxu1 %v2458_v21  ;;  %v2162_v6 = vpop.f32.mrf.mxu0 }
 0x517   :  { %2570 = vmatpush2.msra.mxu1 %v2457_v0 }
 0x518   :  { %2571 = vmatprep.subr.mxu1 %v2454_v18  ;;  %v2164_v45 = vpop.f32.mrf.mxu0 }
 0x519   :  { %2572 = vmatpush2.msra.mxu1 %v2453_v42 }
 0x51a   :  { %2573 = vmatprep.subr.mxu1 %v2450_v57 }
 0x51b   :  { %2574 = vmatpush2.msra.mxu1 %v2449_v19 }
 0x51c   :  { %2575 = vmatprep.subr.mxu1 %v2446_v1 }
 0x51d   :  { %2576 = vmatpush2.msra.mxu1 %v2445_v16 }
 0x51e   :  { %2577 = vmatprep.subr.mxu1 %v2442_v5 }
 0x51f   :  { %2578 = vmatpush2.msra.mxu1 %v2441_v24 }
 0x520   :  { %2579 = vmatprep.subr.mxu1 %v2438_v23  ;;  %v152_v23 = vld [vmem:[#allocation2] sm:$0xff] }
 0x521   :  { %2580 = vmatpush2.msra.mxu1 %v2437_v13 }
 0x522   :  { %2581 = vmatprep.subr.mxu1 %v2434_v30 }
 0x523   :  { %2582 = vmatpush2.msra.mxu1 %v2433_v37 }
 0x583   :  { %v2079_v14 = vpop.f32.mrf.mxu1  ;;  %v2233_v53 = vpop.f32.mrf.mxu0 }
 0x584   :  { %v2080_v60 = vadd.f32 %v2079_v14, %v1996_v29  ;;  %v2234_v31 = vadd.f32 %v2233_v53, %v2004_v17 }
 0x585   :  { %v2081_v38 = vpop.f32.mrf.mxu1  ;;  %v2235_v8 = vpop.f32.mrf.mxu0 }
 0x586   :  { %v2082_v40 = vadd.f32 %v2081_v38, %v2000_v59  ;;  %v2157_v51 = vadd.f32 %v2156_v25, %v2080_v60  ;;  %v2236_v26 = vadd.f32 %v2235_v8, %v2008_v34 }
 0x588   :  { %v2159_v54 = vadd.f32 %v2158_v43, %v2082_v40  ;;  %v2776_v2 = vmul.f32 -1.442695, %v2157_v51 }
 0x58a   :  { %v2778_v32 = vmul.f32 -1.442695, %v2159_v54 }
 0x58c   :  { %2989 = vpow2.f32 %v2778_v32 }
 0x58d   :  { %2991 = vpow2.f32 %v2776_v2 }
 0x594   :  { %v2085_v15 = vpop.f32.mrf.mxu1  ;;  %v2239_v3 = vpop.f32.mrf.mxu0 }
 0x595   :  { %v2086_v9 = vadd.f32 %v2085_v15, %v1996_v29  ;;  %v2240_v36 = vadd.f32 %v2239_v3, %v2004_v17  ;;  %v153_v29 = vld [vmem:[#allocation2 + $0x8] sm:$0xff] }
 0x596   :  { %v2087_v10 = vpop.f32.mrf.mxu1  ;;  %v2241_v12 = vpop.f32.mrf.mxu0 }
 0x597   :  { %v2163_v63 = vadd.f32 %v2162_v6, %v2086_v9  ;;  %v2088_v44 = vadd.f32 %v2087_v10, %v2000_v59  ;;  %v2242_v57 = vadd.f32 %v2241_v12, %v2008_v34  ;;  %v3055_v6 = vld [vmem:[%s4165_s1 + $0x18] sm:$0xff]  ;;  %v2497_v10 = vld [vmem:[%s4175_s11] sm:$0xf]  ;;  %s3218_s1 = smov [#allocation12]  }
 0x598   :  { %s2752_s11 = sshll.u32 %s3218_s1, 4  ;;  %s2753_s11 = int_to_ptr.vmem [resolvable:$true] %s2752_s11 }
 0x599   :  { %v2777_v35 = vmul.f32 -1.442695, %v2163_v63  ;;  %v2165_v61 = vadd.f32 %v2164_v45, %v2088_v44  ;;  %v2990_v49 = vpop.eup %2989  ;;  %v2502_v45 = vrot.slane %v2497_v10, %v3387_v27  ;;  %v2506_v63 = vrot.slane %v2497_v10, %v3698_v28  ;;  %s3156_s27 = scalar_lea.vmem %s2753_s11, 512  ;;  %p3161_p12 = scmp.lt.s32.totalorder %s2753_s11, %s2753_s11 }
 0x59a   :  { %v2992_v4 = vpop.eup %2991  ;;  %v2339_v56 = vadd.f32 1.0, %v2990_v49  ;;  %p3157_p11 = scmp.ne.s32.totalorder %s2753_s11, %s3156_s27  ;;  %p3162_p13 = scmp.lt.s32.totalorder %s3156_s27, %s3156_s27 }
 0x59b   :  { %v2779_v46 = vmul.f32 -1.442695, %v2165_v61  ;;  %2993 = vpow2.f32 %v2777_v35  ;;  %v2327_v21 = vadd.f32 1.0, %v2992_v4 }
 0x59c   :  { %p3163_p0 = por %p3162_p13, %p3161_p12 }
 0x59d   :  { %2995 = vpow2.f32 %v2779_v46 }
 0x59e   :  { %2997 = vrcp.f32 %v2339_v56  ;;  %v2514_v56 = vrot.slane %v2497_v10, %v3714_v41  ;;  %p3164_p1 = pnand %p3163_p0, %p3157_p11 }
 0x59f   :  { %2999 = vrcp.f32 %v2327_v21 }
 0x5a4   :  { %v2310_v0 = vpop.f32.mrf.mxu1 }
 0x5a5   :  { %v2311_v18 = vadd.f32 %v2310_v0, %v2234_v31  ;;  %v2510_v0 = vrot.slane %v2497_v10, %v3705_v33 }
 0x5a6   :  { %v2312_v42 = vpop.f32.mrf.mxu1 }
 0x5a7   :  { %3001 = vtanh.f32 %v2311_v18  ;;  %v2313_v20 = vadd.f32 %v2312_v42, %v2236_v26 }
 0x5a8   :  { %v2316_v7 = vpop.f32.mrf.mxu1  ;;  %v2994_v19 = vpop.eup %2993 }
 0x5a9   :  { %v2780_v50 = vmul.f32 -1.442695, %v2313_v20  ;;  %v2317_v1 = vadd.f32 %v2316_v7, %v2240_v36  ;;  %v2328_v62 = vadd.f32 1.0, %v2994_v19 }
 0x5aa   :  { %v2318_v16 = vpop.f32.mrf.mxu1  ;;  %v2996_v52 = vpop.eup %2995 }
 0x5ab   :  { %3003 = vpow2.f32 %v2780_v50  ;;  %v2319_v5 = vadd.f32 %v2318_v16, %v2242_v57  ;;  %v2340_v39 = vadd.f32 1.0, %v2996_v52  ;;  %v2998_v22 = vpop.eup %2997 }
 0x5ac   :  { %3005 = vrcp.f32 %v2328_v62  ;;  %v3000_v11 = vpop.eup %2999  ;;  %v2359_v47 = vmul.f32 %v2998_v22, %v152_v23 }
 0x5ad   :  { %3007 = vtanh.f32 %v2317_v1  ;;  %v2781_v24 = vmul.f32 -1.442695, %v2319_v5 }
 0x5ae   :  { %3009 = vrcp.f32 %v2340_v39  ;;  %v154_v39 = vld [vmem:[#allocation2 + $0x10] sm:$0xff] }
 0x5af   :  { %3011 = vpow2.f32 %v2781_v24 }
 0x5b4   :  { %v3002_v13 = vpop.eup %3001 }
 0x5b5   :  { %v2361_v30 = vmul.f32 %v3002_v13, %v3000_v11 }
 0x5b7   :  { %v2363_v48 = vadd.f32 %v2361_v30, %v2359_v47 }
 0x5b8   :  { %v3004_v37 = vpop.eup %3003 }
 0x5b9   :  { %v3006_v55 = vpop.eup %3005  ;;  %2725 = vst [vmem:[#allocation12] sm:$0xff] %v2363_v48  ;;  %v2353_v58 = vadd.f32 1.0, %v3004_v37  ;;  %3013 = vtanh.f32 %v2363_v48  ;;  %v155_v37 = vld [vmem:[#allocation2 + $0x18] sm:$0xff] }
 0x5ba   :  { %v3008_v59 = vpop.eup %3007 }
 0x5bb   :  { %v3010_v25 = vpop.eup %3009  ;;  %3015 = vrcp.f32 %v2353_v58  ;;  %v2362_v38 = vmul.f32 %v3008_v59, %v3006_v55 }
 0x5bc   :  { %v3012_v14 = vpop.eup %3011  ;;  %v2360_v60 = vmul.f32 %v3010_v25, %v153_v29 }
 0x5bd   :  { %v2354_v40 = vadd.f32 1.0, %v3012_v14 }
 0x5be   :  { %v2364_v43 = vadd.f32 %v2362_v38, %v2360_v60 }
 0x5bf   :  { %3017 = vrcp.f32 %v2354_v40 }
 0x5c0   :  { %2726 = vst [vmem:[#allocation12 + $0x8] sm:$0xff] %v2364_v43  ;;  %3019 = vtanh.f32 %v2364_v43 }
 0x5c6   :  { %v3014_v54 = vpop.eup %3013 }
 0x5c8   :  { %v3016_v51 = vpop.eup %3015 }
 0x5c9   :  { %v2367_v32 = vmul.f32 %v3016_v51, %v3014_v54 }
 0x5cb   :  { %2584 = vmatmul.mubr.f32.vlgmr.msra.gmra.mxu1 %v2367_v32  ;;  %2721 = vst [vmem:[#allocation11] sm:$0xff] %v2367_v32  ;;  %2661 = vmatmul.mubr.f32.vlgmr.msra.gmra.mxu0 %v2367_v32 }
 0x5cc   :  { %v3018_v2 = vpop.eup %3017  ;;  %2589 = vmatprep.mubr.f32.mxu1 %v3055_v6  ;;  %2666 = vmatprep.mubr.f32.mxu0 %v3055_v6 }
 0x5cd   :  { %v3020_v15 = vpop.eup %3019 }
 0x5ce   :  { %v2368_v9 = vmul.f32 %v3020_v15, %v3018_v2 }
 0x5d0   :  { %2590 = vmatmul.mubr.f32.gmra.mxu1 %v2368_v9  ;;  %2722 = vst [vmem:[#allocation11 + $0x8] sm:$0xff] %v2368_v9  ;;  %2667 = vmatmul.mubr.f32.gmra.mxu0 %v2368_v9 }
 0x68b   :  { %v2585_v44 = vpop.f32.mrf.mxu1  ;;  %v2662_v35 = vpop.f32.mrf.mxu0 }
 0x68c   :  { %v2586_v53 = vadd.f32 %v2585_v44, %v2502_v45  ;;  %v2663_v20 = vadd.f32 %v2662_v35, %v2510_v0 }
 0x68d   :  { %v2587_v61 = vpop.f32.mrf.mxu1  ;;  %v2664_v4 = vpop.f32.mrf.mxu0 }
 0x68e   :  { %v2782_v46 = vmul.f32 -1.442695, %v2586_v53  ;;  %v2588_v8 = vadd.f32 %v2587_v61, %v2506_v63  ;;  %v2665_v26 = vadd.f32 %v2664_v4, %v2514_v56 }
 0x690   :  { %3021 = vpow2.f32 %v2782_v46  ;;  %v2784_v17 = vmul.f32 -1.442695, %v2588_v8  ;;  %v2591_v49 = vpop.f32.mrf.mxu1  ;;  %v2668_v27 = vpop.f32.mrf.mxu0  ;;  %v2786_v18 = vmul.f32 -1.442695, %v2665_v26 }
 0x691   :  { %v2592_v34 = vadd.f32 %v2591_v49, %v2502_v45  ;;  %v2669_v1 = vadd.f32 %v2668_v27, %v2510_v0 }
 0x692   :  { %3023 = vpow2.f32 %v2784_v17  ;;  %v2593_v3 = vpop.f32.mrf.mxu1  ;;  %v2670_v12 = vpop.f32.mrf.mxu0 }
 0x693   :  { %v2783_v31 = vmul.f32 -1.442695, %v2592_v34  ;;  %v2594_v21 = vadd.f32 %v2593_v3, %v2506_v63  ;;  %v2671_v36 = vadd.f32 %v2670_v12, %v2514_v56 }
 0x695   :  { %3025 = vpow2.f32 %v2783_v31  ;;  %v2785_v28 = vmul.f32 -1.442695, %v2594_v21  ;;  %v2787_v41 = vmul.f32 -1.442695, %v2671_v36 }
 0x697   :  { %3027 = vpow2.f32 %v2785_v28 }
 0x698   :  { %3029 = vpow2.f32 %v2786_v18 }
 0x69d   :  { %v3022_v42 = vpop.eup %3021 }
 0x69e   :  { %v2679_v57 = vadd.f32 1.0, %v3022_v42 }
 0x69f   :  { %v3024_v7 = vpop.eup %3023 }
 0x6a0   :  { %3031 = vrcp.f32 %v2679_v57  ;;  %v2691_v19 = vadd.f32 1.0, %v3024_v7 }
 0x6a1   :  { %3033 = vtanh.f32 %v2663_v20 }
 0x6a2   :  { %v3026_v50 = vpop.eup %3025  ;;  %3035 = vrcp.f32 %v2691_v19 }
 0x6a3   :  { %v2680_v62 = vadd.f32 1.0, %v3026_v50  ;;  %3037 = vpow2.f32 %v2787_v41 }
 0x6a4   :  { %v3028_v16 = vpop.eup %3027 }
 0x6a5   :  { %3039 = vrcp.f32 %v2680_v62  ;;  %v2692_v33 = vadd.f32 1.0, %v3028_v16  ;;  %v3030_v52 = vpop.eup %3029 }
 0x6a6   :  { %3041 = vtanh.f32 %v2669_v1  ;;  %v2705_v23 = vadd.f32 1.0, %v3030_v52 }
 0x6a7   :  { %3043 = vrcp.f32 %v2692_v33 }
 0x6a8   :  { %3045 = vrcp.f32 %v2705_v23 }
 0x6ad   :  { %v3032_v5 = vpop.eup %3031 }
 0x6ae   :  { %v3034_v24 = vpop.eup %3033 }
 0x6af   :  { %v3036_v22 = vpop.eup %3035  ;;  %v2713_v11 = vmul.f32 %v3034_v24, %v3032_v5 }
 0x6b0   :  { %v2711_v13 = vmul.f32 %v3036_v22, %v154_v39  ;;  %v3038_v47 = vpop.eup %3037 }
 0x6b1   :  { %v2706_v29 = vadd.f32 1.0, %v3038_v47 }
 0x6b2   :  { %v3040_v30 = vpop.eup %3039  ;;  %v2715_v48 = vadd.f32 %v2713_v11, %v2711_v13 }
 0x6b3   :  { %v3042_v55 = vpop.eup %3041 }
 0x6b4   :  { %v3044_v58 = vpop.eup %3043  ;;  %3047 = vtanh.f32 %v2715_v48  ;;  %2727 = vst [vmem:[#allocation12 + $0x10] sm:$0xff] %v2715_v48  ;;  %v2714_v59 = vmul.f32 %v3042_v55, %v3040_v30 }
 0x6b5   :  { %v2712_v25 = vmul.f32 %v3044_v58, %v155_v37  ;;  %3049 = vrcp.f32 %v2706_v29 }
 0x6b7   :  { %v2716_v14 = vadd.f32 %v2714_v59, %v2712_v25 }
 0x6b9   :  { %3051 = vtanh.f32 %v2716_v14  ;;  %2728 = vst [vmem:[#allocation12 + $0x18] sm:$0xff] %v2716_v14 }
 0x6ba   :  { %3167 = shalt.err (!%p3164_p1)
}
 0x6bb   :  { %2758 = dma.vmem_to_hbm [thread:$0]  %s2753_s11, 512, %s4177_s13, [#allocation13], %s3208_s18, %s3208_s18, %s3209_s19   ;;  %v3046_v60 = vpop.eup %3045 }
 0x6bc   :  { %s3219_s10 = smov [#allocation11]  }
 0x6bd   :  { %s2740_s23 = sshll.u32 %s3219_s10, 4  ;;  %s2741_s23 = int_to_ptr.vmem [resolvable:$true] %s2740_s23 }
 0x6be   :  { %s3176_s13 = scalar_lea.vmem %s2741_s23, 512  ;;  %p3181_p3 = scmp.lt.s32.totalorder %s2741_s23, %s2741_s23 }
 0x6bf   :  { %p3177_p2 = scmp.ne.s32.totalorder %s2741_s23, %s3176_s13  ;;  %p3182_p4 = scmp.lt.s32.totalorder %s3176_s13, %s3176_s13 }
 0x6c1   :  { %v3048_v38 = vpop.eup %3047  ;;  %p3183_p5 = por %p3182_p4, %p3181_p3 }
 0x6c2   :  { %v2719_v40 = vmul.f32 %v3048_v38, %v3046_v60  ;;  %v3050_v43 = vpop.eup %3049 }
 0x6c3   :  { %p3184_p6 = pnand %p3183_p5, %p3177_p2 }
 0x6c4   :  { %2723 = vst [vmem:[#allocation11 + $0x10] sm:$0xff] %v2719_v40  ;;  %2729 = vst [vmem:[%s4178_s14] sm:$0xff] %v2719_v40 }
 0x6c6   :  { %v3052_v54 = vpop.eup %3051 }
 0x6c7   :  { %v2720_v51 = vmul.f32 %v3052_v54, %v3050_v43 }
 0x6c9   :  { %2724 = vst [vmem:[#allocation11 + $0x18] sm:$0xff] %v2720_v51  ;;  %2732 = vst [vmem:[%s4178_s14 + $0x18] sm:$0xff] %v2720_v51 }
 0x6ca   :  { %3187 = shalt.err (!%p3184_p6)
}
 0x6cb   :  { %2746 = dma.vmem_to_hbm [thread:$0]  %s2741_s23, 512, %s4176_s12, [#allocation4], %s3208_s18, %s3208_s18, %s3209_s19  }
 0x6cc   :  { %3202 = dma.done.wait [#allocation4], 512  }
 0x6cd   :  { %3203 = vsyncadd [#allocation4], 4294966784 }
 0x6ce   :  { %3204 = dma.done.wait [#allocation13], 512  }
 0x6cf   :  { %3205 = vsyncadd [#allocation13], 4294966784 }
 0x6d0   :  { %2769 = vsyncpa [#allocation3], 1 }
 0x6d1   :  { %2770 = vsyncpa [#allocation6], 1 }
 0x6d2   :  { %2771 = vsyncpa [#allocation9], 1 }
 0x6d3   :  { %2772 = vsyncpa [#allocation4], 1 }
 0x6d4   :  { %2773 = vsyncpa [#allocation13], 1 }

</bundles_post_ra>
